<compile_context>
chip_gen: v5e
topology: v5e:2x2
jax: 0.10.0
libtpu: 0.0.40
codegen_flags: <defaults>
</compile_context>

<pallas_src>
import functools

import jax
import jax.numpy as jnp
import numpy as np
from jax.experimental import pallas as pl
from jax.experimental.pallas import tpu as pltpu


# ------------------------------ Pallas kernel ------------------------------ #

def _make_bilstm_layer_kernel(T, B, H, n_parts, unroll):
    """Fused bidirectional-LSTM layer kernel. grid=(2,): program_id(0) = dir.

    Ref order:
      x_refs[p]    : (T*B, D_p)  layer-input part p (shared by both directions)
      w_ih_refs[p] : (D_p, 4H)   this direction's input weights for part p
      w_hh_ref     : (H, 4H)     this direction's recurrent weights
      b_ref        : (1, 4H)     folded bias (b_ih + b_hh), this direction
      y_ref        : (T, B, H)   hidden states (natural time order), output
      gx_scr       : (T, B, 4H)  VMEM scratch: hoisted input projection
      h_scr, c_scr : (B, H)      f32 carries in VMEM scratch
    """
    G = 4 * H

    def kernel(*refs):
        x_refs = refs[:n_parts]
        w_ih_refs = refs[n_parts:2 * n_parts]
        w_hh_ref, b_ref, y_ref, gx_scr, h_scr, c_scr = refs[2 * n_parts:]

        d = pl.program_id(0)          # 0 = forward, 1 = backward

        # --- Hoisted input projection: one big lane-dense matmul per part. ---
        # Done in-kernel so gx never goes through HBM; the MXU is otherwise
        # idle during the serial recurrence, so this overlaps for free.
        gx = jnp.dot(x_refs[0][...], w_ih_refs[0][...],
                     preferred_element_type=jnp.float32)
        for p in range(1, n_parts):
            gx = gx + jnp.dot(x_refs[p][...], w_ih_refs[p][...],
                              preferred_element_type=jnp.float32)
        gx = gx + b_ref[...]          # (T*B, 4H)

        # Scatter into a (T, B, 4H) scratch with static indices so the loop
        # below only needs cheap leading-dim dynamic indexing.
        for t in range(T):
            gx_scr[t] = gx[t * B:(t + 1) * B, :]

        h_scr[...] = jnp.zeros_like(h_scr)
        c_scr[...] = jnp.zeros_like(c_scr)

        w_hh = w_hh_ref[...]          # (H, 4H): resident for the whole sequence
        base = d * (T - 1)            # backward direction starts at last step
        sign = 1 - 2 * d              # +1 forward, -1 backward

        def step(t, carry):
            tt = base + sign * t      # natural-time index processed at step t
            h = h_scr[...]
            c = c_scr[...]
            gates = gx_scr[tt] + jnp.dot(h, w_hh,
                                         preferred_element_type=jnp.float32)
            # Full-width nonlinearities (1 sigmoid + 1 tanh EUP push on the
            # whole (B, 4H) tile), then lane-slice the gates.
            sg = jax.nn.sigmoid(gates)
            th = jnp.tanh(gates)
            i_g = sg[:, 0 * H:1 * H]
            f_g = sg[:, 1 * H:2 * H]
            o_g = sg[:, 3 * H:4 * H]
            g_g = th[:, 2 * H:3 * H]
            c_new = f_g * c + i_g * g_g
            h_new = o_g * jnp.tanh(c_new)     # 3rd (and last) EUP push per step
            h_scr[...] = h_new
            c_scr[...] = c_new
            y_ref[tt] = h_new.astype(y_ref.dtype)
            return carry

        jax.lax.fori_loop(0, T, step, 0, unroll=unroll)

    return kernel


# --------------------------- per-layer wrapper ------------------------------ #

def lstm_bidir_layer(x_parts, w_ih_parts, w_hh, bias, *, T, B, H):
    """One bidirectional LSTM layer.

    x_parts:    tuple of (T*B, D_p) f32 arrays (shared by both directions)
    w_ih_parts: tuple of (2, D_p, 4H) f32 arrays (per-direction input weights)
    w_hh:       (2, H, 4H);  bias: (2, 1, 4H)
    Returns y:  (2, T, B, H) — y[0] forward, y[1] backward, natural time order.
    """
    G = 4 * H
    TB = T * B
    n_parts = len(x_parts)
    kernel = _make_bilstm_layer_kernel(T, B, H, n_parts, unroll=min(T, 8))

    # All blocks below equal the full array dims, so the (8,128) rule holds.
    x_specs = [pl.BlockSpec((TB, int(xp.shape[-1])), lambda d: (0, 0))
               for xp in x_parts]
    w_ih_specs = [pl.BlockSpec((None, int(wp.shape[1]), G), lambda d: (d, 0, 0))
                  for wp in w_ih_parts]
    in_specs = x_specs + w_ih_specs + [
        pl.BlockSpec((None, H, G), lambda d: (d, 0, 0)),
        pl.BlockSpec((None, 1, G), lambda d: (d, 0, 0)),
    ]

    return pl.pallas_call(
        kernel,
        out_shape=jax.ShapeDtypeStruct((2, T, B, H), jnp.float32),
        grid_spec=pltpu.PrefetchScalarGridSpec(
            num_scalar_prefetch=0,
            grid=(2,),
            in_specs=in_specs,
            out_specs=pl.BlockSpec((None, T, B, H), lambda d: (d, 0, 0, 0)),
            scratch_shapes=[
                pltpu.VMEM((T, B, G), jnp.float32),   # gx: hoisted projection
                pltpu.VMEM((B, H), jnp.float32),      # h carry
                pltpu.VMEM((B, H), jnp.float32),      # c carry
            ],
        ),
        compiler_params=pltpu.CompilerParams(
            # TODO(synk): on v7x, CORE_PARALLEL here would put one direction on
            # each TensorCore; kept "parallel" for portability across chips.
            dimension_semantics=("parallel",),
            vmem_limit_bytes=32 * 1024 * 1024,
        ),
    )(*x_parts, *w_ih_parts, w_hh, bias)


# --------------------------- model (plain-JAX glue) ------------------------ #

def init_lstm_params(key, ninp, nhid, nlayers):
    """Deterministic init mirroring nn.LSTM(ninp, nhid, nlayers, bidirectional=True).

    PyTorch stores weight_ih_l{k}(_reverse): (4H, D_in); here the matmul-ready
    transposed form is used, b_ih + b_hh is folded, and directions are stacked.
    """
    k = 1.0 / np.sqrt(nhid)
    params = []
    for layer in range(nlayers):
        d_in = ninp if layer == 0 else 2 * nhid
        w_ih_dirs, w_hh_dirs, b_dirs = [], [], []
        for _direction in range(2):  # 0: forward, 1: reverse
            key, k1, k2, k3, k4 = jax.random.split(key, 5)
            w_ih = jax.random.uniform(k1, (d_in, 4 * nhid), jnp.float32, -k, k)
            w_hh = jax.random.uniform(k2, (nhid, 4 * nhid), jnp.float32, -k, k)
            b_ih = jax.random.uniform(k3, (4 * nhid,), jnp.float32, -k, k)
            b_hh = jax.random.uniform(k4, (4 * nhid,), jnp.float32, -k, k)
            w_ih_dirs.append(w_ih)
            w_hh_dirs.append(w_hh)
            b_dirs.append((b_ih + b_hh)[None, :])
        params.append((jnp.stack(w_ih_dirs, 0),    # (2, D_in, 4H)
                       jnp.stack(w_hh_dirs, 0),    # (2, H, 4H)
                       jnp.stack(b_dirs, 0)))      # (2, 1, 4H)
    return params


def seq_to_emb_forward(emb, input_type, params, nhid):
    """Equivalent of seq_to_emb.forward with model_type_list=['LSTM'], dropout=0.

    emb: (T, B, ninp).  input_type is ignored on the LSTM path (as in the
    original module).  Returns (output_emb:(B, 2H), hidden_states:(T, B, 2H)).
    """
    del input_type  # only used by the TRANS branch of the original module
    T, B, ninp = emb.shape
    H = nhid

    # RNN_encoder: bidirectional multi-layer LSTM; LockedDropout(p=0.0) == id.
    x_parts = (emb.reshape(T * B, ninp),)
    y = None
    for li, (w_ih, w_hh, bias) in enumerate(params):
        if li == 0:
            w_ih_parts = (w_ih,)
        else:
            # Consume the previous layer's fwd/bwd halves as two matmul parts:
            # y0 @ W_ih[:H] + y1 @ W_ih[H:]  — no (T,B,2H) concat between layers.
            w_ih_parts = (w_ih[:, :H, :], w_ih[:, H:, :])
        y = lstm_bidir_layer(x_parts, w_ih_parts, w_hh, bias, T=T, B=B, H=H)
        x_parts = (y[0].reshape(T * B, H), y[1].reshape(T * B, H))
    # TODO(synk): LockedDropout with p>0 uses a random per-sequence mask; with
    # dropout=0.0 it is the identity, which is what is implemented here.

    # Single concat, only for the module's return value.
    hidden_states = jnp.concatenate([y[0], y[1]], axis=-1)        # (T, B, 2H)
    # RNN_pooler: last step of forward dir ++ first step of backward dir.
    output_last = jnp.concatenate([y[0, -1], y[1, 0]], axis=1)    # (B, 2H)
    return output_last, hidden_states


# ------------------------------ reference ---------------------------------- #

def _lstm_direction_ref(x, w_ih, w_hh, b):
    H = w_hh.shape[0]
    B = x.shape[1]

    def step(carry, xt):
        h, c = carry
        gates = xt @ w_ih + h @ w_hh + b[0]
        i_g = jax.nn.sigmoid(gates[:, :H])
        f_g = jax.nn.sigmoid(gates[:, H:2 * H])
        g_g = jnp.tanh(gates[:, 2 * H:3 * H])
        o_g = jax.nn.sigmoid(gates[:, 3 * H:])
        c = f_g * c + i_g * g_g
        h = o_g * jnp.tanh(c)
        return (h, c), h

    init = (jnp.zeros((B, H), jnp.float32), jnp.zeros((B, H), jnp.float32))
    _, ys = jax.lax.scan(step, init, x)
    return ys


def seq_to_emb_forward_ref(emb, params, nhid):
    hidden_states = emb
    for (w_ih, w_hh, bias) in params:
        y_fwd = _lstm_direction_ref(hidden_states, w_ih[0], w_hh[0], bias[0])
        y_bwd = _lstm_direction_ref(hidden_states[::-1], w_ih[1], w_hh[1],
                                    bias[1])[::-1]
        hidden_states = jnp.concatenate([y_fwd, y_bwd], axis=-1)
    output_last = jnp.concatenate(
        [hidden_states[-1, :, :nhid], hidden_states[0, :, nhid:2 * nhid]], axis=1
    )
    return output_last, hidden_states


# --------------------------------- main ------------------------------------ #

if __name__ == "__main__":
    # Small shapes consistent with the module's forward:
    #   emb: (seq_len=8, batch=2, ninp=16); nhid=32; nlayers=2; dropout=0.0
    T, B, NINP, NHID, NLAYERS = 8, 2, 16, 32, 2

    key = jax.random.PRNGKey(0)
    key, k_emb, k_params = jax.random.split(key, 3)
    emb = jax.random.normal(k_emb, (T, B, NINP), dtype=jnp.float32)
    input_type = ()  # empty, as in the LSTM-only configuration

    params = init_lstm_params(k_params, NINP, NHID, NLAYERS)

    fwd = jax.jit(functools.partial(seq_to_emb_forward, nhid=NHID))
    output_emb, hidden_states = fwd(emb, input_type, params)
    jax.block_until_ready((output_emb, hidden_states))

    # Sanity check against a pure-JAX lax.scan reference (f32 path, 1e-4 tol).
    ref_out, ref_hs = seq_to_emb_forward_ref(emb, params, NHID)
    assert output_emb.shape == (B, 2 * NHID)
    assert hidden_states.shape == (T, B, 2 * NHID)
    np.testing.assert_allclose(np.asarray(output_emb), np.asarray(ref_out),
                               rtol=1e-4, atol=1e-4)
    np.testing.assert_allclose(np.asarray(hidden_states), np.asarray(ref_hs),
                               rtol=1e-4, atol=1e-4)

    print("KERNEL_OK")
</pallas_src>

<mosaic_0001>
module attributes {stable_mosaic.version = 11 : i64} {
  func.func @kernel(%arg0: i32, %arg1: memref<16x32xf32, #tpu.memory_space<vmem>>, %arg2: memref<16x32xf32, #tpu.memory_space<vmem>>, %arg3: memref<1x32x128xf32, #tpu.memory_space<vmem>>, %arg4: memref<1x32x128xf32, #tpu.memory_space<vmem>>, %arg5: memref<1x32x128xf32, #tpu.memory_space<vmem>>, %arg6: memref<1x1x128xf32, #tpu.memory_space<vmem>>, %arg7: memref<1x8x2x32xf32, #tpu.memory_space<vmem>>, %arg8: memref<8x2x128xf32, #tpu.memory_space<vmem>>, %arg9: memref<2x32xf32, #tpu.memory_space<vmem>>, %arg10: memref<2x32xf32, #tpu.memory_space<vmem>>) attributes {dimension_semantics = [#tpu.dimension_semantics<parallel>], iteration_bounds = array<i64: 2>, scalar_prefetch = 0 : i64, scratch_operands = 3 : i64, tpu.core_type = #tpu.core_type<tc>, window_params = [{pipeline_mode = #tpu.pipeline_mode<synchronous>, transform_indices = @transform_0, window_bounds = array<i64: 16, 32>}, {pipeline_mode = #tpu.pipeline_mode<synchronous>, transform_indices = @transform_1, window_bounds = array<i64: 16, 32>}, {transform_indices = @transform_2, window_bounds = array<i64: 1, 32, 128>}, {transform_indices = @transform_3, window_bounds = array<i64: 1, 32, 128>}, {transform_indices = @transform_4, window_bounds = array<i64: 1, 32, 128>}, {transform_indices = @transform_5, window_bounds = array<i64: 1, 1, 128>}, {transform_indices = @transform_6, window_bounds = array<i64: 1, 8, 2, 32>}]} {
    %c0 = arith.constant 0 : index
    %c0_0 = arith.constant 0 : index
    %0 = vector.load %arg1[%c0, %c0_0] : memref<16x32xf32, #tpu.memory_space<vmem>>, vector<16x32xf32>
    %c0_1 = arith.constant 0 : index
    %c0_2 = arith.constant 0 : index
    %c0_3 = arith.constant 0 : index
    %1 = vector.load %arg3[%c0_1, %c0_2, %c0_3] : memref<1x32x128xf32, #tpu.memory_space<vmem>>, vector<1x32x128xf32>
    %2 = vector.shape_cast %1 : vector<1x32x128xf32> to vector<32x128xf32>
    %cst = arith.constant dense<0.000000e+00> : vector<16x128xf32>
    %3 = tpu.matmul %0, %2, %cst {dimension_numbers = #tpu.dot_dimension_numbers<[1], [0], [0], [1], [0, 0, 1, 1], [], []>} : vector<16x32xf32>, vector<32x128xf32>, vector<16x128xf32> -> vector<16x128xf32>
    %c0_4 = arith.constant 0 : index
    %c0_5 = arith.constant 0 : index
    %4 = vector.load %arg2[%c0_4, %c0_5] : memref<16x32xf32, #tpu.memory_space<vmem>>, vector<16x32xf32>
    %c0_6 = arith.constant 0 : index
    %c0_7 = arith.constant 0 : index
    %c0_8 = arith.constant 0 : index
    %5 = vector.load %arg4[%c0_6, %c0_7, %c0_8] : memref<1x32x128xf32, #tpu.memory_space<vmem>>, vector<1x32x128xf32>
    %6 = vector.shape_cast %5 : vector<1x32x128xf32> to vector<32x128xf32>
    %cst_9 = arith.constant dense<0.000000e+00> : vector<16x128xf32>
    %7 = tpu.matmul %4, %6, %cst_9 {dimension_numbers = #tpu.dot_dimension_numbers<[1], [0], [0], [1], [0, 0, 1, 1], [], []>} : vector<16x32xf32>, vector<32x128xf32>, vector<16x128xf32> -> vector<16x128xf32>
    %8 = arith.addf %3, %7 : vector<16x128xf32>
    %c0_10 = arith.constant 0 : index
    %c0_11 = arith.constant 0 : index
    %c0_12 = arith.constant 0 : index
    %9 = vector.load %arg6[%c0_10, %c0_11, %c0_12] : memref<1x1x128xf32, #tpu.memory_space<vmem>>, vector<1x1x128xf32>
    %10 = vector.shape_cast %9 : vector<1x1x128xf32> to vector<1x128xf32>
    %11 = vector.broadcast %10 : vector<1x128xf32> to vector<16x128xf32>
    %12 = arith.addf %8, %11 : vector<16x128xf32>
    %13 = vector.extract_strided_slice %12 {offsets = [0, 0], sizes = [2, 128], strides = [1, 1]} : vector<16x128xf32> to vector<2x128xf32>
    %c0_13 = arith.constant 0 : index
    %c0_14 = arith.constant 0 : index
    %c0_15 = arith.constant 0 : index
    %14 = vector.load %arg8[%c0_13, %c0_14, %c0_15] : memref<8x2x128xf32, #tpu.memory_space<vmem>>, vector<1x2x128xf32>
    %15 = vector.shape_cast %14 : vector<1x2x128xf32> to vector<2x128xf32>
    %16 = vector.shape_cast %13 : vector<2x128xf32> to vector<1x2x128xf32>
    tpu.vector_store %arg8[%c0_13, %c0_14, %c0_15], %16 {strides = array<i32>} : memref<8x2x128xf32, #tpu.memory_space<vmem>>, vector<1x2x128xf32>,
    %17 = vector.extract_strided_slice %12 {offsets = [2, 0], sizes = [2, 128], strides = [1, 1]} : vector<16x128xf32> to vector<2x128xf32>
    %c1 = arith.constant 1 : index
    %c0_16 = arith.constant 0 : index
    %c0_17 = arith.constant 0 : index
    %18 = vector.load %arg8[%c1, %c0_16, %c0_17] : memref<8x2x128xf32, #tpu.memory_space<vmem>>, vector<1x2x128xf32>
    %19 = vector.shape_cast %18 : vector<1x2x128xf32> to vector<2x128xf32>
    %20 = vector.shape_cast %17 : vector<2x128xf32> to vector<1x2x128xf32>
    tpu.vector_store %arg8[%c1, %c0_16, %c0_17], %20 {strides = array<i32>} : memref<8x2x128xf32, #tpu.memory_space<vmem>>, vector<1x2x128xf32>,
    %21 = vector.extract_strided_slice %12 {offsets = [4, 0], sizes = [2, 128], strides = [1, 1]} : vector<16x128xf32> to vector<2x128xf32>
    %c2 = arith.constant 2 : index
    %c0_18 = arith.constant 0 : index
    %c0_19 = arith.constant 0 : index
    %22 = vector.load %arg8[%c2, %c0_18, %c0_19] : memref<8x2x128xf32, #tpu.memory_space<vmem>>, vector<1x2x128xf32>
    %23 = vector.shape_cast %22 : vector<1x2x128xf32> to vector<2x128xf32>
    %24 = vector.shape_cast %21 : vector<2x128xf32> to vector<1x2x128xf32>
    tpu.vector_store %arg8[%c2, %c0_18, %c0_19], %24 {strides = array<i32>} : memref<8x2x128xf32, #tpu.memory_space<vmem>>, vector<1x2x128xf32>,
    %25 = vector.extract_strided_slice %12 {offsets = [6, 0], sizes = [2, 128], strides = [1, 1]} : vector<16x128xf32> to vector<2x128xf32>
    %c3 = arith.constant 3 : index
    %c0_20 = arith.constant 0 : index
    %c0_21 = arith.constant 0 : index
    %26 = vector.load %arg8[%c3, %c0_20, %c0_21] : memref<8x2x128xf32, #tpu.memory_space<vmem>>, vector<1x2x128xf32>
    %27 = vector.shape_cast %26 : vector<1x2x128xf32> to vector<2x128xf32>
    %28 = vector.shape_cast %25 : vector<2x128xf32> to vector<1x2x128xf32>
    tpu.vector_store %arg8[%c3, %c0_20, %c0_21], %28 {strides = array<i32>} : memref<8x2x128xf32, #tpu.memory_space<vmem>>, vector<1x2x128xf32>,
    %29 = vector.extract_strided_slice %12 {offsets = [8, 0], sizes = [2, 128], strides = [1, 1]} : vector<16x128xf32> to vector<2x128xf32>
    %c4 = arith.constant 4 : index
    %c0_22 = arith.constant 0 : index
    %c0_23 = arith.constant 0 : index
    %30 = vector.load %arg8[%c4, %c0_22, %c0_23] : memref<8x2x128xf32, #tpu.memory_space<vmem>>, vector<1x2x128xf32>
    %31 = vector.shape_cast %30 : vector<1x2x128xf32> to vector<2x128xf32>
    %32 = vector.shape_cast %29 : vector<2x128xf32> to vector<1x2x128xf32>
    tpu.vector_store %arg8[%c4, %c0_22, %c0_23], %32 {strides = array<i32>} : memref<8x2x128xf32, #tpu.memory_space<vmem>>, vector<1x2x128xf32>,
    %33 = vector.extract_strided_slice %12 {offsets = [10, 0], sizes = [2, 128], strides = [1, 1]} : vector<16x128xf32> to vector<2x128xf32>
    %c5 = arith.constant 5 : index
    %c0_24 = arith.constant 0 : index
    %c0_25 = arith.constant 0 : index
    %34 = vector.load %arg8[%c5, %c0_24, %c0_25] : memref<8x2x128xf32, #tpu.memory_space<vmem>>, vector<1x2x128xf32>
    %35 = vector.shape_cast %34 : vector<1x2x128xf32> to vector<2x128xf32>
    %36 = vector.shape_cast %33 : vector<2x128xf32> to vector<1x2x128xf32>
    tpu.vector_store %arg8[%c5, %c0_24, %c0_25], %36 {strides = array<i32>} : memref<8x2x128xf32, #tpu.memory_space<vmem>>, vector<1x2x128xf32>,
    %37 = vector.extract_strided_slice %12 {offsets = [12, 0], sizes = [2, 128], strides = [1, 1]} : vector<16x128xf32> to vector<2x128xf32>
    %c6 = arith.constant 6 : index
    %c0_26 = arith.constant 0 : index
    %c0_27 = arith.constant 0 : index
    %38 = vector.load %arg8[%c6, %c0_26, %c0_27] : memref<8x2x128xf32, #tpu.memory_space<vmem>>, vector<1x2x128xf32>
    %39 = vector.shape_cast %38 : vector<1x2x128xf32> to vector<2x128xf32>
    %40 = vector.shape_cast %37 : vector<2x128xf32> to vector<1x2x128xf32>
    tpu.vector_store %arg8[%c6, %c0_26, %c0_27], %40 {strides = array<i32>} : memref<8x2x128xf32, #tpu.memory_space<vmem>>, vector<1x2x128xf32>,
    %41 = vector.extract_strided_slice %12 {offsets = [14, 0], sizes = [2, 128], strides = [1, 1]} : vector<16x128xf32> to vector<2x128xf32>
    %c7 = arith.constant 7 : index
    %c0_28 = arith.constant 0 : index
    %c0_29 = arith.constant 0 : index
    %42 = vector.load %arg8[%c7, %c0_28, %c0_29] : memref<8x2x128xf32, #tpu.memory_space<vmem>>, vector<1x2x128xf32>
    %43 = vector.shape_cast %42 : vector<1x2x128xf32> to vector<2x128xf32>
    %44 = vector.shape_cast %41 : vector<2x128xf32> to vector<1x2x128xf32>
    tpu.vector_store %arg8[%c7, %c0_28, %c0_29], %44 {strides = array<i32>} : memref<8x2x128xf32, #tpu.memory_space<vmem>>, vector<1x2x128xf32>,
    %cst_30 = arith.constant 0.000000e+00 : f32
    %45 = vector.broadcast %cst_30 : f32 to vector<2x32xf32>
    %c0_31 = arith.constant 0 : index
    %c0_32 = arith.constant 0 : index
    %46 = vector.load %arg9[%c0_31, %c0_32] : memref<2x32xf32, #tpu.memory_space<vmem>>, vector<2x32xf32>
    tpu.vector_store %arg9[%c0_31, %c0_32], %45 {strides = array<i32>} : memref<2x32xf32, #tpu.memory_space<vmem>>, vector<2x32xf32>,
    %cst_33 = arith.constant 0.000000e+00 : f32
    %47 = vector.broadcast %cst_33 : f32 to vector<2x32xf32>
    %c0_34 = arith.constant 0 : index
    %c0_35 = arith.constant 0 : index
    %48 = vector.load %arg10[%c0_34, %c0_35] : memref<2x32xf32, #tpu.memory_space<vmem>>, vector<2x32xf32>
    tpu.vector_store %arg10[%c0_34, %c0_35], %47 {strides = array<i32>} : memref<2x32xf32, #tpu.memory_space<vmem>>, vector<2x32xf32>,
    %c0_36 = arith.constant 0 : index
    %c0_37 = arith.constant 0 : index
    %c0_38 = arith.constant 0 : index
    %49 = vector.load %arg5[%c0_36, %c0_37, %c0_38] : memref<1x32x128xf32, #tpu.memory_space<vmem>>, vector<1x32x128xf32>
    %50 = vector.shape_cast %49 : vector<1x32x128xf32> to vector<32x128xf32>
    %c7_i32 = arith.constant 7 : i32
    %51 = arith.muli %arg0, %c7_i32 : i32
    %c2_i32 = arith.constant 2 : i32
    %52 = arith.muli %c2_i32, %arg0 : i32
    %c1_i32 = arith.constant 1 : i32
    %53 = arith.subi %c1_i32, %52 : i32
    %c0_i32 = arith.constant 0 : i32
    %54 = arith.muli %53, %c0_i32 : i32
    %55 = arith.addi %51, %54 : i32
    %c0_39 = arith.constant 0 : index
    %c0_40 = arith.constant 0 : index
    %56 = vector.load %arg9[%c0_39, %c0_40] : memref<2x32xf32, #tpu.memory_space<vmem>>, vector<2x32xf32>
    %c0_41 = arith.constant 0 : index
    %c0_42 = arith.constant 0 : index
    %57 = vector.load %arg10[%c0_41, %c0_42] : memref<2x32xf32, #tpu.memory_space<vmem>>, vector<2x32xf32>
    %58 = arith.index_cast %55 : i32 to index
    %c0_43 = arith.constant 0 : index
    %c0_44 = arith.constant 0 : index
    %59 = vector.load %arg8[%58, %c0_43, %c0_44] : memref<8x2x128xf32, #tpu.memory_space<vmem>>, vector<1x2x128xf32>
    %60 = vector.shape_cast %59 : vector<1x2x128xf32> to vector<2x128xf32>
    %cst_45 = arith.constant dense<0.000000e+00> : vector<2x128xf32>
    %61 = tpu.matmul %56, %50, %cst_45 {dimension_numbers = #tpu.dot_dimension_numbers<[1], [0], [0], [1], [0, 0, 1, 1], [], []>} : vector<2x32xf32>, vector<32x128xf32>, vector<2x128xf32> -> vector<2x128xf32>
    %62 = arith.addf %60, %61 : vector<2x128xf32>
    %63 = arith.negf %62 : vector<2x128xf32>
    %64 = math.exp %63 : vector<2x128xf32>
    %cst_46 = arith.constant 1.000000e+00 : f32
    %65 = vector.broadcast %cst_46 : f32 to vector<2x128xf32>
    %66 = arith.addf %65, %64 : vector<2x128xf32>
    %67 = arith.divf %65, %66 : vector<2x128xf32>
    %68 = math.tanh %62 : vector<2x128xf32>
    %69 = vector.extract_strided_slice %67 {offsets = [0, 0], sizes = [2, 32], strides = [1, 1]} : vector<2x128xf32> to vector<2x32xf32>
    %70 = vector.extract_strided_slice %67 {offsets = [0, 32], sizes = [2, 32], strides = [1, 1]} : vector<2x128xf32> to vector<2x32xf32>
    %71 = vector.extract_strided_slice %67 {offsets = [0, 96], sizes = [2, 32], strides = [1, 1]} : vector<2x128xf32> to vector<2x32xf32>
    %72 = vector.extract_strided_slice %68 {offsets = [0, 64], sizes = [2, 32], strides = [1, 1]} : vector<2x128xf32> to vector<2x32xf32>
    %73 = arith.mulf %70, %57 : vector<2x32xf32>
    %74 = arith.mulf %69, %72 : vector<2x32xf32>
    %75 = arith.addf %73, %74 : vector<2x32xf32>
    %76 = math.tanh %75 : vector<2x32xf32>
    %77 = arith.mulf %71, %76 : vector<2x32xf32>
    %c0_47 = arith.constant 0 : index
    %c0_48 = arith.constant 0 : index
    %78 = vector.load %arg9[%c0_47, %c0_48] : memref<2x32xf32, #tpu.memory_space<vmem>>, vector<2x32xf32>
    tpu.vector_store %arg9[%c0_47, %c0_48], %77 {strides = array<i32>} : memref<2x32xf32, #tpu.memory_space<vmem>>, vector<2x32xf32>,
    %c0_49 = arith.constant 0 : index
    %c0_50 = arith.constant 0 : index
    %79 = vector.load %arg10[%c0_49, %c0_50] : memref<2x32xf32, #tpu.memory_space<vmem>>, vector<2x32xf32>
    tpu.vector_store %arg10[%c0_49, %c0_50], %75 {strides = array<i32>} : memref<2x32xf32, #tpu.memory_space<vmem>>, vector<2x32xf32>,
    %c0_51 = arith.constant 0 : index
    %80 = arith.index_cast %55 : i32 to index
    %c0_52 = arith.constant 0 : index
    %c0_53 = arith.constant 0 : index
    %81 = vector.load %arg7[%c0_51, %80, %c0_52, %c0_53] : memref<1x8x2x32xf32, #tpu.memory_space<vmem>>, vector<1x1x2x32xf32>
    %82 = vector.shape_cast %81 : vector<1x1x2x32xf32> to vector<2x32xf32>
    %83 = vector.shape_cast %77 : vector<2x32xf32> to vector<1x1x2x32xf32>
    tpu.vector_store %arg7[%c0_51, %80, %c0_52, %c0_53], %83 {strides = array<i32>} : memref<1x8x2x32xf32, #tpu.memory_space<vmem>>, vector<1x1x2x32xf32>,
    %c1_i32_54 = arith.constant 1 : i32
    %84 = arith.muli %53, %c1_i32_54 : i32
    %85 = arith.addi %51, %84 : i32
    %c0_55 = arith.constant 0 : index
    %c0_56 = arith.constant 0 : index
    %86 = vector.load %arg9[%c0_55, %c0_56] : memref<2x32xf32, #tpu.memory_space<vmem>>, vector<2x32xf32>
    %c0_57 = arith.constant 0 : index
    %c0_58 = arith.constant 0 : index
    %87 = vector.load %arg10[%c0_57, %c0_58] : memref<2x32xf32, #tpu.memory_space<vmem>>, vector<2x32xf32>
    %88 = arith.index_cast %85 : i32 to index
    %c0_59 = arith.constant 0 : index
    %c0_60 = arith.constant 0 : index
    %89 = vector.load %arg8[%88, %c0_59, %c0_60] : memref<8x2x128xf32, #tpu.memory_space<vmem>>, vector<1x2x128xf32>
    %90 = vector.shape_cast %89 : vector<1x2x128xf32> to vector<2x128xf32>
    %cst_61 = arith.constant dense<0.000000e+00> : vector<2x128xf32>
    %91 = tpu.matmul %86, %50, %cst_61 {dimension_numbers = #tpu.dot_dimension_numbers<[1], [0], [0], [1], [0, 0, 1, 1], [], []>} : vector<2x32xf32>, vector<32x128xf32>, vector<2x128xf32> -> vector<2x128xf32>
    %92 = arith.addf %90, %91 : vector<2x128xf32>
    %93 = arith.negf %92 : vector<2x128xf32>
    %94 = math.exp %93 : vector<2x128xf32>
    %cst_62 = arith.constant 1.000000e+00 : f32
    %95 = vector.broadcast %cst_62 : f32 to vector<2x128xf32>
    %96 = arith.addf %95, %94 : vector<2x128xf32>
    %97 = arith.divf %95, %96 : vector<2x128xf32>
    %98 = math.tanh %92 : vector<2x128xf32>
    %99 = vector.extract_strided_slice %97 {offsets = [0, 0], sizes = [2, 32], strides = [1, 1]} : vector<2x128xf32> to vector<2x32xf32>
    %100 = vector.extract_strided_slice %97 {offsets = [0, 32], sizes = [2, 32], strides = [1, 1]} : vector<2x128xf32> to vector<2x32xf32>
    %101 = vector.extract_strided_slice %97 {offsets = [0, 96], sizes = [2, 32], strides = [1, 1]} : vector<2x128xf32> to vector<2x32xf32>
    %102 = vector.extract_strided_slice %98 {offsets = [0, 64], sizes = [2, 32], strides = [1, 1]} : vector<2x128xf32> to vector<2x32xf32>
    %103 = arith.mulf %100, %87 : vector<2x32xf32>
    %104 = arith.mulf %99, %102 : vector<2x32xf32>
    %105 = arith.addf %103, %104 : vector<2x32xf32>
    %106 = math.tanh %105 : vector<2x32xf32>
    %107 = arith.mulf %101, %106 : vector<2x32xf32>
    %c0_63 = arith.constant 0 : index
    %c0_64 = arith.constant 0 : index
    %108 = vector.load %arg9[%c0_63, %c0_64] : memref<2x32xf32, #tpu.memory_space<vmem>>, vector<2x32xf32>
    tpu.vector_store %arg9[%c0_63, %c0_64], %107 {strides = array<i32>} : memref<2x32xf32, #tpu.memory_space<vmem>>, vector<2x32xf32>,
    %c0_65 = arith.constant 0 : index
    %c0_66 = arith.constant 0 : index
    %109 = vector.load %arg10[%c0_65, %c0_66] : memref<2x32xf32, #tpu.memory_space<vmem>>, vector<2x32xf32>
    tpu.vector_store %arg10[%c0_65, %c0_66], %105 {strides = array<i32>} : memref<2x32xf32, #tpu.memory_space<vmem>>, vector<2x32xf32>,
    %c0_67 = arith.constant 0 : index
    %110 = arith.index_cast %85 : i32 to index
    %c0_68 = arith.constant 0 : index
    %c0_69 = arith.constant 0 : index
    %111 = vector.load %arg7[%c0_67, %110, %c0_68, %c0_69] : memref<1x8x2x32xf32, #tpu.memory_space<vmem>>, vector<1x1x2x32xf32>
    %112 = vector.shape_cast %111 : vector<1x1x2x32xf32> to vector<2x32xf32>
    %113 = vector.shape_cast %107 : vector<2x32xf32> to vector<1x1x2x32xf32>
    tpu.vector_store %arg7[%c0_67, %110, %c0_68, %c0_69], %113 {strides = array<i32>} : memref<1x8x2x32xf32, #tpu.memory_space<vmem>>, vector<1x1x2x32xf32>,
    %c2_i32_70 = arith.constant 2 : i32
    %114 = arith.muli %53, %c2_i32_70 : i32
    %115 = arith.addi %51, %114 : i32
    %c0_71 = arith.constant 0 : index
    %c0_72 = arith.constant 0 : index
    %116 = vector.load %arg9[%c0_71, %c0_72] : memref<2x32xf32, #tpu.memory_space<vmem>>, vector<2x32xf32>
    %c0_73 = arith.constant 0 : index
    %c0_74 = arith.constant 0 : index
    %117 = vector.load %arg10[%c0_73, %c0_74] : memref<2x32xf32, #tpu.memory_space<vmem>>, vector<2x32xf32>
    %118 = arith.index_cast %115 : i32 to index
    %c0_75 = arith.constant 0 : index
    %c0_76 = arith.constant 0 : index
    %119 = vector.load %arg8[%118, %c0_75, %c0_76] : memref<8x2x128xf32, #tpu.memory_space<vmem>>, vector<1x2x128xf32>
    %120 = vector.shape_cast %119 : vector<1x2x128xf32> to vector<2x128xf32>
    %cst_77 = arith.constant dense<0.000000e+00> : vector<2x128xf32>
    %121 = tpu.matmul %116, %50, %cst_77 {dimension_numbers = #tpu.dot_dimension_numbers<[1], [0], [0], [1], [0, 0, 1, 1], [], []>} : vector<2x32xf32>, vector<32x128xf32>, vector<2x128xf32> -> vector<2x128xf32>
    %122 = arith.addf %120, %121 : vector<2x128xf32>
    %123 = arith.negf %122 : vector<2x128xf32>
    %124 = math.exp %123 : vector<2x128xf32>
    %cst_78 = arith.constant 1.000000e+00 : f32
    %125 = vector.broadcast %cst_78 : f32 to vector<2x128xf32>
    %126 = arith.addf %125, %124 : vector<2x128xf32>
    %127 = arith.divf %125, %126 : vector<2x128xf32>
    %128 = math.tanh %122 : vector<2x128xf32>
    %129 = vector.extract_strided_slice %127 {offsets = [0, 0], sizes = [2, 32], strides = [1, 1]} : vector<2x128xf32> to vector<2x32xf32>
    %130 = vector.extract_strided_slice %127 {offsets = [0, 32], sizes = [2, 32], strides = [1, 1]} : vector<2x128xf32> to vector<2x32xf32>
    %131 = vector.extract_strided_slice %127 {offsets = [0, 96], sizes = [2, 32], strides = [1, 1]} : vector<2x128xf32> to vector<2x32xf32>
    %132 = vector.extract_strided_slice %128 {offsets = [0, 64], sizes = [2, 32], strides = [1, 1]} : vector<2x128xf32> to vector<2x32xf32>
    %133 = arith.mulf %130, %117 : vector<2x32xf32>
    %134 = arith.mulf %129, %132 : vector<2x32xf32>
    %135 = arith.addf %133, %134 : vector<2x32xf32>
    %136 = math.tanh %135 : vector<2x32xf32>
    %137 = arith.mulf %131, %136 : vector<2x32xf32>
    %c0_79 = arith.constant 0 : index
    %c0_80 = arith.constant 0 : index
    %138 = vector.load %arg9[%c0_79, %c0_80] : memref<2x32xf32, #tpu.memory_space<vmem>>, vector<2x32xf32>
    tpu.vector_store %arg9[%c0_79, %c0_80], %137 {strides = array<i32>} : memref<2x32xf32, #tpu.memory_space<vmem>>, vector<2x32xf32>,
    %c0_81 = arith.constant 0 : index
    %c0_82 = arith.constant 0 : index
    %139 = vector.load %arg10[%c0_81, %c0_82] : memref<2x32xf32, #tpu.memory_space<vmem>>, vector<2x32xf32>
    tpu.vector_store %arg10[%c0_81, %c0_82], %135 {strides = array<i32>} : memref<2x32xf32, #tpu.memory_space<vmem>>, vector<2x32xf32>,
    %c0_83 = arith.constant 0 : index
    %140 = arith.index_cast %115 : i32 to index
    %c0_84 = arith.constant 0 : index
    %c0_85 = arith.constant 0 : index
    %141 = vector.load %arg7[%c0_83, %140, %c0_84, %c0_85] : memref<1x8x2x32xf32, #tpu.memory_space<vmem>>, vector<1x1x2x32xf32>
    %142 = vector.shape_cast %141 : vector<1x1x2x32xf32> to vector<2x32xf32>
    %143 = vector.shape_cast %137 : vector<2x32xf32> to vector<1x1x2x32xf32>
    tpu.vector_store %arg7[%c0_83, %140, %c0_84, %c0_85], %143 {strides = array<i32>} : memref<1x8x2x32xf32, #tpu.memory_space<vmem>>, vector<1x1x2x32xf32>,
    %c3_i32 = arith.constant 3 : i32
    %144 = arith.muli %53, %c3_i32 : i32
    %145 = arith.addi %51, %144 : i32
    %c0_86 = arith.constant 0 : index
    %c0_87 = arith.constant 0 : index
    %146 = vector.load %arg9[%c0_86, %c0_87] : memref<2x32xf32, #tpu.memory_space<vmem>>, vector<2x32xf32>
    %c0_88 = arith.constant 0 : index
    %c0_89 = arith.constant 0 : index
    %147 = vector.load %arg10[%c0_88, %c0_89] : memref<2x32xf32, #tpu.memory_space<vmem>>, vector<2x32xf32>
    %148 = arith.index_cast %145 : i32 to index
    %c0_90 = arith.constant 0 : index
    %c0_91 = arith.constant 0 : index
    %149 = vector.load %arg8[%148, %c0_90, %c0_91] : memref<8x2x128xf32, #tpu.memory_space<vmem>>, vector<1x2x128xf32>
    %150 = vector.shape_cast %149 : vector<1x2x128xf32> to vector<2x128xf32>
    %cst_92 = arith.constant dense<0.000000e+00> : vector<2x128xf32>
    %151 = tpu.matmul %146, %50, %cst_92 {dimension_numbers = #tpu.dot_dimension_numbers<[1], [0], [0], [1], [0, 0, 1, 1], [], []>} : vector<2x32xf32>, vector<32x128xf32>, vector<2x128xf32> -> vector<2x128xf32>
    %152 = arith.addf %150, %151 : vector<2x128xf32>
    %153 = arith.negf %152 : vector<2x128xf32>
    %154 = math.exp %153 : vector<2x128xf32>
    %cst_93 = arith.constant 1.000000e+00 : f32
    %155 = vector.broadcast %cst_93 : f32 to vector<2x128xf32>
    %156 = arith.addf %155, %154 : vector<2x128xf32>
    %157 = arith.divf %155, %156 : vector<2x128xf32>
    %158 = math.tanh %152 : vector<2x128xf32>
    %159 = vector.extract_strided_slice %157 {offsets = [0, 0], sizes = [2, 32], strides = [1, 1]} : vector<2x128xf32> to vector<2x32xf32>
    %160 = vector.extract_strided_slice %157 {offsets = [0, 32], sizes = [2, 32], strides = [1, 1]} : vector<2x128xf32> to vector<2x32xf32>
    %161 = vector.extract_strided_slice %157 {offsets = [0, 96], sizes = [2, 32], strides = [1, 1]} : vector<2x128xf32> to vector<2x32xf32>
    %162 = vector.extract_strided_slice %158 {offsets = [0, 64], sizes = [2, 32], strides = [1, 1]} : vector<2x128xf32> to vector<2x32xf32>
    %163 = arith.mulf %160, %147 : vector<2x32xf32>
    %164 = arith.mulf %159, %162 : vector<2x32xf32>
    %165 = arith.addf %163, %164 : vector<2x32xf32>
    %166 = math.tanh %165 : vector<2x32xf32>
    %167 = arith.mulf %161, %166 : vector<2x32xf32>
    %c0_94 = arith.constant 0 : index
    %c0_95 = arith.constant 0 : index
    %168 = vector.load %arg9[%c0_94, %c0_95] : memref<2x32xf32, #tpu.memory_space<vmem>>, vector<2x32xf32>
    tpu.vector_store %arg9[%c0_94, %c0_95], %167 {strides = array<i32>} : memref<2x32xf32, #tpu.memory_space<vmem>>, vector<2x32xf32>,
    %c0_96 = arith.constant 0 : index
    %c0_97 = arith.constant 0 : index
    %169 = vector.load %arg10[%c0_96, %c0_97] : memref<2x32xf32, #tpu.memory_space<vmem>>, vector<2x32xf32>
    tpu.vector_store %arg10[%c0_96, %c0_97], %165 {strides = array<i32>} : memref<2x32xf32, #tpu.memory_space<vmem>>, vector<2x32xf32>,
    %c0_98 = arith.constant 0 : index
    %170 = arith.index_cast %145 : i32 to index
    %c0_99 = arith.constant 0 : index
    %c0_100 = arith.constant 0 : index
    %171 = vector.load %arg7[%c0_98, %170, %c0_99, %c0_100] : memref<1x8x2x32xf32, #tpu.memory_space<vmem>>, vector<1x1x2x32xf32>
    %172 = vector.shape_cast %171 : vector<1x1x2x32xf32> to vector<2x32xf32>
    %173 = vector.shape_cast %167 : vector<2x32xf32> to vector<1x1x2x32xf32>
    tpu.vector_store %arg7[%c0_98, %170, %c0_99, %c0_100], %173 {strides = array<i32>} : memref<1x8x2x32xf32, #tpu.memory_space<vmem>>, vector<1x1x2x32xf32>,
    %c4_i32 = arith.constant 4 : i32
    %174 = arith.muli %53, %c4_i32 : i32
    %175 = arith.addi %51, %174 : i32
    %c0_101 = arith.constant 0 : index
    %c0_102 = arith.constant 0 : index
    %176 = vector.load %arg9[%c0_101, %c0_102] : memref<2x32xf32, #tpu.memory_space<vmem>>, vector<2x32xf32>
    %c0_103 = arith.constant 0 : index
    %c0_104 = arith.constant 0 : index
    %177 = vector.load %arg10[%c0_103, %c0_104] : memref<2x32xf32, #tpu.memory_space<vmem>>, vector<2x32xf32>
    %178 = arith.index_cast %175 : i32 to index
    %c0_105 = arith.constant 0 : index
    %c0_106 = arith.constant 0 : index
    %179 = vector.load %arg8[%178, %c0_105, %c0_106] : memref<8x2x128xf32, #tpu.memory_space<vmem>>, vector<1x2x128xf32>
    %180 = vector.shape_cast %179 : vector<1x2x128xf32> to vector<2x128xf32>
    %cst_107 = arith.constant dense<0.000000e+00> : vector<2x128xf32>
    %181 = tpu.matmul %176, %50, %cst_107 {dimension_numbers = #tpu.dot_dimension_numbers<[1], [0], [0], [1], [0, 0, 1, 1], [], []>} : vector<2x32xf32>, vector<32x128xf32>, vector<2x128xf32> -> vector<2x128xf32>
    %182 = arith.addf %180, %181 : vector<2x128xf32>
    %183 = arith.negf %182 : vector<2x128xf32>
    %184 = math.exp %183 : vector<2x128xf32>
    %cst_108 = arith.constant 1.000000e+00 : f32
    %185 = vector.broadcast %cst_108 : f32 to vector<2x128xf32>
    %186 = arith.addf %185, %184 : vector<2x128xf32>
    %187 = arith.divf %185, %186 : vector<2x128xf32>
    %188 = math.tanh %182 : vector<2x128xf32>
    %189 = vector.extract_strided_slice %187 {offsets = [0, 0], sizes = [2, 32], strides = [1, 1]} : vector<2x128xf32> to vector<2x32xf32>
    %190 = vector.extract_strided_slice %187 {offsets = [0, 32], sizes = [2, 32], strides = [1, 1]} : vector<2x128xf32> to vector<2x32xf32>
    %191 = vector.extract_strided_slice %187 {offsets = [0, 96], sizes = [2, 32], strides = [1, 1]} : vector<2x128xf32> to vector<2x32xf32>
    %192 = vector.extract_strided_slice %188 {offsets = [0, 64], sizes = [2, 32], strides = [1, 1]} : vector<2x128xf32> to vector<2x32xf32>
    %193 = arith.mulf %190, %177 : vector<2x32xf32>
    %194 = arith.mulf %189, %192 : vector<2x32xf32>
    %195 = arith.addf %193, %194 : vector<2x32xf32>
    %196 = math.tanh %195 : vector<2x32xf32>
    %197 = arith.mulf %191, %196 : vector<2x32xf32>
    %c0_109 = arith.constant 0 : index
    %c0_110 = arith.constant 0 : index
    %198 = vector.load %arg9[%c0_109, %c0_110] : memref<2x32xf32, #tpu.memory_space<vmem>>, vector<2x32xf32>
    tpu.vector_store %arg9[%c0_109, %c0_110], %197 {strides = array<i32>} : memref<2x32xf32, #tpu.memory_space<vmem>>, vector<2x32xf32>,
    %c0_111 = arith.constant 0 : index
    %c0_112 = arith.constant 0 : index
    %199 = vector.load %arg10[%c0_111, %c0_112] : memref<2x32xf32, #tpu.memory_space<vmem>>, vector<2x32xf32>
    tpu.vector_store %arg10[%c0_111, %c0_112], %195 {strides = array<i32>} : memref<2x32xf32, #tpu.memory_space<vmem>>, vector<2x32xf32>,
    %c0_113 = arith.constant 0 : index
    %200 = arith.index_cast %175 : i32 to index
    %c0_114 = arith.constant 0 : index
    %c0_115 = arith.constant 0 : index
    %201 = vector.load %arg7[%c0_113, %200, %c0_114, %c0_115] : memref<1x8x2x32xf32, #tpu.memory_space<vmem>>, vector<1x1x2x32xf32>
    %202 = vector.shape_cast %201 : vector<1x1x2x32xf32> to vector<2x32xf32>
    %203 = vector.shape_cast %197 : vector<2x32xf32> to vector<1x1x2x32xf32>
    tpu.vector_store %arg7[%c0_113, %200, %c0_114, %c0_115], %203 {strides = array<i32>} : memref<1x8x2x32xf32, #tpu.memory_space<vmem>>, vector<1x1x2x32xf32>,
    %c5_i32 = arith.constant 5 : i32
    %204 = arith.muli %53, %c5_i32 : i32
    %205 = arith.addi %51, %204 : i32
    %c0_116 = arith.constant 0 : index
    %c0_117 = arith.constant 0 : index
    %206 = vector.load %arg9[%c0_116, %c0_117] : memref<2x32xf32, #tpu.memory_space<vmem>>, vector<2x32xf32>
    %c0_118 = arith.constant 0 : index
    %c0_119 = arith.constant 0 : index
    %207 = vector.load %arg10[%c0_118, %c0_119] : memref<2x32xf32, #tpu.memory_space<vmem>>, vector<2x32xf32>
    %208 = arith.index_cast %205 : i32 to index
    %c0_120 = arith.constant 0 : index
    %c0_121 = arith.constant 0 : index
    %209 = vector.load %arg8[%208, %c0_120, %c0_121] : memref<8x2x128xf32, #tpu.memory_space<vmem>>, vector<1x2x128xf32>
    %210 = vector.shape_cast %209 : vector<1x2x128xf32> to vector<2x128xf32>
    %cst_122 = arith.constant dense<0.000000e+00> : vector<2x128xf32>
    %211 = tpu.matmul %206, %50, %cst_122 {dimension_numbers = #tpu.dot_dimension_numbers<[1], [0], [0], [1], [0, 0, 1, 1], [], []>} : vector<2x32xf32>, vector<32x128xf32>, vector<2x128xf32> -> vector<2x128xf32>
    %212 = arith.addf %210, %211 : vector<2x128xf32>
    %213 = arith.negf %212 : vector<2x128xf32>
    %214 = math.exp %213 : vector<2x128xf32>
    %cst_123 = arith.constant 1.000000e+00 : f32
    %215 = vector.broadcast %cst_123 : f32 to vector<2x128xf32>
    %216 = arith.addf %215, %214 : vector<2x128xf32>
    %217 = arith.divf %215, %216 : vector<2x128xf32>
    %218 = math.tanh %212 : vector<2x128xf32>
    %219 = vector.extract_strided_slice %217 {offsets = [0, 0], sizes = [2, 32], strides = [1, 1]} : vector<2x128xf32> to vector<2x32xf32>
    %220 = vector.extract_strided_slice %217 {offsets = [0, 32], sizes = [2, 32], strides = [1, 1]} : vector<2x128xf32> to vector<2x32xf32>
    %221 = vector.extract_strided_slice %217 {offsets = [0, 96], sizes = [2, 32], strides = [1, 1]} : vector<2x128xf32> to vector<2x32xf32>
    %222 = vector.extract_strided_slice %218 {offsets = [0, 64], sizes = [2, 32], strides = [1, 1]} : vector<2x128xf32> to vector<2x32xf32>
    %223 = arith.mulf %220, %207 : vector<2x32xf32>
    %224 = arith.mulf %219, %222 : vector<2x32xf32>
    %225 = arith.addf %223, %224 : vector<2x32xf32>
    %226 = math.tanh %225 : vector<2x32xf32>
    %227 = arith.mulf %221, %226 : vector<2x32xf32>
    %c0_124 = arith.constant 0 : index
    %c0_125 = arith.constant 0 : index
    %228 = vector.load %arg9[%c0_124, %c0_125] : memref<2x32xf32, #tpu.memory_space<vmem>>, vector<2x32xf32>
    tpu.vector_store %arg9[%c0_124, %c0_125], %227 {strides = array<i32>} : memref<2x32xf32, #tpu.memory_space<vmem>>, vector<2x32xf32>,
    %c0_126 = arith.constant 0 : index
    %c0_127 = arith.constant 0 : index
    %229 = vector.load %arg10[%c0_126, %c0_127] : memref<2x32xf32, #tpu.memory_space<vmem>>, vector<2x32xf32>
    tpu.vector_store %arg10[%c0_126, %c0_127], %225 {strides = array<i32>} : memref<2x32xf32, #tpu.memory_space<vmem>>, vector<2x32xf32>,
    %c0_128 = arith.constant 0 : index
    %230 = arith.index_cast %205 : i32 to index
    %c0_129 = arith.constant 0 : index
    %c0_130 = arith.constant 0 : index
    %231 = vector.load %arg7[%c0_128, %230, %c0_129, %c0_130] : memref<1x8x2x32xf32, #tpu.memory_space<vmem>>, vector<1x1x2x32xf32>
    %232 = vector.shape_cast %231 : vector<1x1x2x32xf32> to vector<2x32xf32>
    %233 = vector.shape_cast %227 : vector<2x32xf32> to vector<1x1x2x32xf32>
    tpu.vector_store %arg7[%c0_128, %230, %c0_129, %c0_130], %233 {strides = array<i32>} : memref<1x8x2x32xf32, #tpu.memory_space<vmem>>, vector<1x1x2x32xf32>,
    %c6_i32 = arith.constant 6 : i32
    %234 = arith.muli %53, %c6_i32 : i32
    %235 = arith.addi %51, %234 : i32
    %c0_131 = arith.constant 0 : index
    %c0_132 = arith.constant 0 : index
    %236 = vector.load %arg9[%c0_131, %c0_132] : memref<2x32xf32, #tpu.memory_space<vmem>>, vector<2x32xf32>
    %c0_133 = arith.constant 0 : index
    %c0_134 = arith.constant 0 : index
    %237 = vector.load %arg10[%c0_133, %c0_134] : memref<2x32xf32, #tpu.memory_space<vmem>>, vector<2x32xf32>
    %238 = arith.index_cast %235 : i32 to index
    %c0_135 = arith.constant 0 : index
    %c0_136 = arith.constant 0 : index
    %239 = vector.load %arg8[%238, %c0_135, %c0_136] : memref<8x2x128xf32, #tpu.memory_space<vmem>>, vector<1x2x128xf32>
    %240 = vector.shape_cast %239 : vector<1x2x128xf32> to vector<2x128xf32>
    %cst_137 = arith.constant dense<0.000000e+00> : vector<2x128xf32>
    %241 = tpu.matmul %236, %50, %cst_137 {dimension_numbers = #tpu.dot_dimension_numbers<[1], [0], [0], [1], [0, 0, 1, 1], [], []>} : vector<2x32xf32>, vector<32x128xf32>, vector<2x128xf32> -> vector<2x128xf32>
    %242 = arith.addf %240, %241 : vector<2x128xf32>
    %243 = arith.negf %242 : vector<2x128xf32>
    %244 = math.exp %243 : vector<2x128xf32>
    %cst_138 = arith.constant 1.000000e+00 : f32
    %245 = vector.broadcast %cst_138 : f32 to vector<2x128xf32>
    %246 = arith.addf %245, %244 : vector<2x128xf32>
    %247 = arith.divf %245, %246 : vector<2x128xf32>
    %248 = math.tanh %242 : vector<2x128xf32>
    %249 = vector.extract_strided_slice %247 {offsets = [0, 0], sizes = [2, 32], strides = [1, 1]} : vector<2x128xf32> to vector<2x32xf32>
    %250 = vector.extract_strided_slice %247 {offsets = [0, 32], sizes = [2, 32], strides = [1, 1]} : vector<2x128xf32> to vector<2x32xf32>
    %251 = vector.extract_strided_slice %247 {offsets = [0, 96], sizes = [2, 32], strides = [1, 1]} : vector<2x128xf32> to vector<2x32xf32>
    %252 = vector.extract_strided_slice %248 {offsets = [0, 64], sizes = [2, 32], strides = [1, 1]} : vector<2x128xf32> to vector<2x32xf32>
    %253 = arith.mulf %250, %237 : vector<2x32xf32>
    %254 = arith.mulf %249, %252 : vector<2x32xf32>
    %255 = arith.addf %253, %254 : vector<2x32xf32>
    %256 = math.tanh %255 : vector<2x32xf32>
    %257 = arith.mulf %251, %256 : vector<2x32xf32>
    %c0_139 = arith.constant 0 : index
    %c0_140 = arith.constant 0 : index
    %258 = vector.load %arg9[%c0_139, %c0_140] : memref<2x32xf32, #tpu.memory_space<vmem>>, vector<2x32xf32>
    tpu.vector_store %arg9[%c0_139, %c0_140], %257 {strides = array<i32>} : memref<2x32xf32, #tpu.memory_space<vmem>>, vector<2x32xf32>,
    %c0_141 = arith.constant 0 : index
    %c0_142 = arith.constant 0 : index
    %259 = vector.load %arg10[%c0_141, %c0_142] : memref<2x32xf32, #tpu.memory_space<vmem>>, vector<2x32xf32>
    tpu.vector_store %arg10[%c0_141, %c0_142], %255 {strides = array<i32>} : memref<2x32xf32, #tpu.memory_space<vmem>>, vector<2x32xf32>,
    %c0_143 = arith.constant 0 : index
    %260 = arith.index_cast %235 : i32 to index
    %c0_144 = arith.constant 0 : index
    %c0_145 = arith.constant 0 : index
    %261 = vector.load %arg7[%c0_143, %260, %c0_144, %c0_145] : memref<1x8x2x32xf32, #tpu.memory_space<vmem>>, vector<1x1x2x32xf32>
    %262 = vector.shape_cast %261 : vector<1x1x2x32xf32> to vector<2x32xf32>
    %263 = vector.shape_cast %257 : vector<2x32xf32> to vector<1x1x2x32xf32>
    tpu.vector_store %arg7[%c0_143, %260, %c0_144, %c0_145], %263 {strides = array<i32>} : memref<1x8x2x32xf32, #tpu.memory_space<vmem>>, vector<1x1x2x32xf32>,
    %c7_i32_146 = arith.constant 7 : i32
    %264 = arith.muli %53, %c7_i32_146 : i32
    %265 = arith.addi %51, %264 : i32
    %c0_147 = arith.constant 0 : index
    %c0_148 = arith.constant 0 : index
    %266 = vector.load %arg9[%c0_147, %c0_148] : memref<2x32xf32, #tpu.memory_space<vmem>>, vector<2x32xf32>
    %c0_149 = arith.constant 0 : index
    %c0_150 = arith.constant 0 : index
    %267 = vector.load %arg10[%c0_149, %c0_150] : memref<2x32xf32, #tpu.memory_space<vmem>>, vector<2x32xf32>
    %268 = arith.index_cast %265 : i32 to index
    %c0_151 = arith.constant 0 : index
    %c0_152 = arith.constant 0 : index
    %269 = vector.load %arg8[%268, %c0_151, %c0_152] : memref<8x2x128xf32, #tpu.memory_space<vmem>>, vector<1x2x128xf32>
    %270 = vector.shape_cast %269 : vector<1x2x128xf32> to vector<2x128xf32>
    %cst_153 = arith.constant dense<0.000000e+00> : vector<2x128xf32>
    %271 = tpu.matmul %266, %50, %cst_153 {dimension_numbers = #tpu.dot_dimension_numbers<[1], [0], [0], [1], [0, 0, 1, 1], [], []>} : vector<2x32xf32>, vector<32x128xf32>, vector<2x128xf32> -> vector<2x128xf32>
    %272 = arith.addf %270, %271 : vector<2x128xf32>
    %273 = arith.negf %272 : vector<2x128xf32>
    %274 = math.exp %273 : vector<2x128xf32>
    %cst_154 = arith.constant 1.000000e+00 : f32
    %275 = vector.broadcast %cst_154 : f32 to vector<2x128xf32>
    %276 = arith.addf %275, %274 : vector<2x128xf32>
    %277 = arith.divf %275, %276 : vector<2x128xf32>
    %278 = math.tanh %272 : vector<2x128xf32>
    %279 = vector.extract_strided_slice %277 {offsets = [0, 0], sizes = [2, 32], strides = [1, 1]} : vector<2x128xf32> to vector<2x32xf32>
    %280 = vector.extract_strided_slice %277 {offsets = [0, 32], sizes = [2, 32], strides = [1, 1]} : vector<2x128xf32> to vector<2x32xf32>
    %281 = vector.extract_strided_slice %277 {offsets = [0, 96], sizes = [2, 32], strides = [1, 1]} : vector<2x128xf32> to vector<2x32xf32>
    %282 = vector.extract_strided_slice %278 {offsets = [0, 64], sizes = [2, 32], strides = [1, 1]} : vector<2x128xf32> to vector<2x32xf32>
    %283 = arith.mulf %280, %267 : vector<2x32xf32>
    %284 = arith.mulf %279, %282 : vector<2x32xf32>
    %285 = arith.addf %283, %284 : vector<2x32xf32>
    %286 = math.tanh %285 : vector<2x32xf32>
    %287 = arith.mulf %281, %286 : vector<2x32xf32>
    %c0_155 = arith.constant 0 : index
    %c0_156 = arith.constant 0 : index
    %288 = vector.load %arg9[%c0_155, %c0_156] : memref<2x32xf32, #tpu.memory_space<vmem>>, vector<2x32xf32>
    tpu.vector_store %arg9[%c0_155, %c0_156], %287 {strides = array<i32>} : memref<2x32xf32, #tpu.memory_space<vmem>>, vector<2x32xf32>,
    %c0_157 = arith.constant 0 : index
    %c0_158 = arith.constant 0 : index
    %289 = vector.load %arg10[%c0_157, %c0_158] : memref<2x32xf32, #tpu.memory_space<vmem>>, vector<2x32xf32>
    tpu.vector_store %arg10[%c0_157, %c0_158], %285 {strides = array<i32>} : memref<2x32xf32, #tpu.memory_space<vmem>>, vector<2x32xf32>,
    %c0_159 = arith.constant 0 : index
    %290 = arith.index_cast %265 : i32 to index
    %c0_160 = arith.constant 0 : index
    %c0_161 = arith.constant 0 : index
    %291 = vector.load %arg7[%c0_159, %290, %c0_160, %c0_161] : memref<1x8x2x32xf32, #tpu.memory_space<vmem>>, vector<1x1x2x32xf32>
    %292 = vector.shape_cast %291 : vector<1x1x2x32xf32> to vector<2x32xf32>
    %293 = vector.shape_cast %287 : vector<2x32xf32> to vector<1x1x2x32xf32>
    tpu.vector_store %arg7[%c0_159, %290, %c0_160, %c0_161], %293 {strides = array<i32>} : memref<1x8x2x32xf32, #tpu.memory_space<vmem>>, vector<1x1x2x32xf32>,
    %c8_i32 = arith.constant 8 : i32
    return
  }
  func.func @transform_0(%arg0: i32) -> (i32, i32) {
    %c0_i32 = arith.constant 0 : i32
    %c0_i32_0 = arith.constant 0 : i32
    %c0_i32_1 = arith.constant 0 : i32
    return %c0_i32, %c0_i32_0 : i32, i32
  }
  func.func @transform_1(%arg0: i32) -> (i32, i32) {
    %c0_i32 = arith.constant 0 : i32
    %c0_i32_0 = arith.constant 0 : i32
    %c0_i32_1 = arith.constant 0 : i32
    return %c0_i32, %c0_i32_0 : i32, i32
  }
  func.func @transform_2(%arg0: i32) -> (i32, i32, i32) {
    %c0_i32 = arith.constant 0 : i32
    %c0_i32_0 = arith.constant 0 : i32
    %c0_i32_1 = arith.constant 0 : i32
    return %arg0, %c0_i32, %c0_i32_0 : i32, i32, i32
  }
  func.func @transform_3(%arg0: i32) -> (i32, i32, i32) {
    %c0_i32 = arith.constant 0 : i32
    %c0_i32_0 = arith.constant 0 : i32
    %c0_i32_1 = arith.constant 0 : i32
    return %arg0, %c0_i32, %c0_i32_0 : i32, i32, i32
  }
  func.func @transform_4(%arg0: i32) -> (i32, i32, i32) {
    %c0_i32 = arith.constant 0 : i32
    %c0_i32_0 = arith.constant 0 : i32
    %c0_i32_1 = arith.constant 0 : i32
    return %arg0, %c0_i32, %c0_i32_0 : i32, i32, i32
  }
  func.func @transform_5(%arg0: i32) -> (i32, i32, i32) {
    %c0_i32 = arith.constant 0 : i32
    %c0_i32_0 = arith.constant 0 : i32
    %c0_i32_1 = arith.constant 0 : i32
    return %arg0, %c0_i32, %c0_i32_0 : i32, i32, i32
  }
  func.func @transform_6(%arg0: i32) -> (i32, i32, i32, i32) {
    %c0_i32 = arith.constant 0 : i32
    %c0_i32_0 = arith.constant 0 : i32
    %c0_i32_1 = arith.constant 0 : i32
    %c0_i32_2 = arith.constant 0 : i32
    return %arg0, %c0_i32, %c0_i32_0, %c0_i32_1 : i32, i32, i32, i32
  }
}

module attributes {stable_mosaic.version = 11 : i64} {
  func.func @kernel(%arg0: i32, %arg1: memref<16x16xf32, #tpu.memory_space<vmem>>, %arg2: memref<1x16x128xf32, #tpu.memory_space<vmem>>, %arg3: memref<1x32x128xf32, #tpu.memory_space<vmem>>, %arg4: memref<1x1x128xf32, #tpu.memory_space<vmem>>, %arg5: memref<1x8x2x32xf32, #tpu.memory_space<vmem>>, %arg6: memref<8x2x128xf32, #tpu.memory_space<vmem>>, %arg7: memref<2x32xf32, #tpu.memory_space<vmem>>, %arg8: memref<2x32xf32, #tpu.memory_space<vmem>>) attributes {dimension_semantics = [#tpu.dimension_semantics<parallel>], iteration_bounds = array<i64: 2>, scalar_prefetch = 0 : i64, scratch_operands = 3 : i64, tpu.core_type = #tpu.core_type<tc>, window_params = [{pipeline_mode = #tpu.pipeline_mode<synchronous>, transform_indices = @transform_0, window_bounds = array<i64: 16, 16>}, {transform_indices = @transform_1, window_bounds = array<i64: 1, 16, 128>}, {transform_indices = @transform_2, window_bounds = array<i64: 1, 32, 128>}, {transform_indices = @transform_3, window_bounds = array<i64: 1, 1, 128>}, {transform_indices = @transform_4, window_bounds = array<i64: 1, 8, 2, 32>}]} {
    %c0 = arith.constant 0 : index
    %c0_0 = arith.constant 0 : index
    %0 = vector.load %arg1[%c0, %c0_0] : memref<16x16xf32, #tpu.memory_space<vmem>>, vector<16x16xf32>
    %c0_1 = arith.constant 0 : index
    %c0_2 = arith.constant 0 : index
    %c0_3 = arith.constant 0 : index
    %1 = vector.load %arg2[%c0_1, %c0_2, %c0_3] : memref<1x16x128xf32, #tpu.memory_space<vmem>>, vector<1x16x128xf32>
    %2 = vector.shape_cast %1 : vector<1x16x128xf32> to vector<16x128xf32>
    %cst = arith.constant dense<0.000000e+00> : vector<16x128xf32>
    %3 = tpu.matmul %0, %2, %cst {dimension_numbers = #tpu.dot_dimension_numbers<[1], [0], [0], [1], [0, 0, 1, 1], [], []>} : vector<16x16xf32>, vector<16x128xf32>, vector<16x128xf32> -> vector<16x128xf32>
    %c0_4 = arith.constant 0 : index
    %c0_5 = arith.constant 0 : index
    %c0_6 = arith.constant 0 : index
    %4 = vector.load %arg4[%c0_4, %c0_5, %c0_6] : memref<1x1x128xf32, #tpu.memory_space<vmem>>, vector<1x1x128xf32>
    %5 = vector.shape_cast %4 : vector<1x1x128xf32> to vector<1x128xf32>
    %6 = vector.broadcast %5 : vector<1x128xf32> to vector<16x128xf32>
    %7 = arith.addf %3, %6 : vector<16x128xf32>
    %8 = vector.extract_strided_slice %7 {offsets = [0, 0], sizes = [2, 128], strides = [1, 1]} : vector<16x128xf32> to vector<2x128xf32>
    %c0_7 = arith.constant 0 : index
    %c0_8 = arith.constant 0 : index
    %c0_9 = arith.constant 0 : index
    %9 = vector.load %arg6[%c0_7, %c0_8, %c0_9] : memref<8x2x128xf32, #tpu.memory_space<vmem>>, vector<1x2x128xf32>
    %10 = vector.shape_cast %9 : vector<1x2x128xf32> to vector<2x128xf32>
    %11 = vector.shape_cast %8 : vector<2x128xf32> to vector<1x2x128xf32>
    tpu.vector_store %arg6[%c0_7, %c0_8, %c0_9], %11 {strides = array<i32>} : memref<8x2x128xf32, #tpu.memory_space<vmem>>, vector<1x2x128xf32>,
    %12 = vector.extract_strided_slice %7 {offsets = [2, 0], sizes = [2, 128], strides = [1, 1]} : vector<16x128xf32> to vector<2x128xf32>
    %c1 = arith.constant 1 : index
    %c0_10 = arith.constant 0 : index
    %c0_11 = arith.constant 0 : index
    %13 = vector.load %arg6[%c1, %c0_10, %c0_11] : memref<8x2x128xf32, #tpu.memory_space<vmem>>, vector<1x2x128xf32>
    %14 = vector.shape_cast %13 : vector<1x2x128xf32> to vector<2x128xf32>
    %15 = vector.shape_cast %12 : vector<2x128xf32> to vector<1x2x128xf32>
    tpu.vector_store %arg6[%c1, %c0_10, %c0_11], %15 {strides = array<i32>} : memref<8x2x128xf32, #tpu.memory_space<vmem>>, vector<1x2x128xf32>,
    %16 = vector.extract_strided_slice %7 {offsets = [4, 0], sizes = [2, 128], strides = [1, 1]} : vector<16x128xf32> to vector<2x128xf32>
    %c2 = arith.constant 2 : index
    %c0_12 = arith.constant 0 : index
    %c0_13 = arith.constant 0 : index
    %17 = vector.load %arg6[%c2, %c0_12, %c0_13] : memref<8x2x128xf32, #tpu.memory_space<vmem>>, vector<1x2x128xf32>
    %18 = vector.shape_cast %17 : vector<1x2x128xf32> to vector<2x128xf32>
    %19 = vector.shape_cast %16 : vector<2x128xf32> to vector<1x2x128xf32>
    tpu.vector_store %arg6[%c2, %c0_12, %c0_13], %19 {strides = array<i32>} : memref<8x2x128xf32, #tpu.memory_space<vmem>>, vector<1x2x128xf32>,
    %20 = vector.extract_strided_slice %7 {offsets = [6, 0], sizes = [2, 128], strides = [1, 1]} : vector<16x128xf32> to vector<2x128xf32>
    %c3 = arith.constant 3 : index
    %c0_14 = arith.constant 0 : index
    %c0_15 = arith.constant 0 : index
    %21 = vector.load %arg6[%c3, %c0_14, %c0_15] : memref<8x2x128xf32, #tpu.memory_space<vmem>>, vector<1x2x128xf32>
    %22 = vector.shape_cast %21 : vector<1x2x128xf32> to vector<2x128xf32>
    %23 = vector.shape_cast %20 : vector<2x128xf32> to vector<1x2x128xf32>
    tpu.vector_store %arg6[%c3, %c0_14, %c0_15], %23 {strides = array<i32>} : memref<8x2x128xf32, #tpu.memory_space<vmem>>, vector<1x2x128xf32>,
    %24 = vector.extract_strided_slice %7 {offsets = [8, 0], sizes = [2, 128], strides = [1, 1]} : vector<16x128xf32> to vector<2x128xf32>
    %c4 = arith.constant 4 : index
    %c0_16 = arith.constant 0 : index
    %c0_17 = arith.constant 0 : index
    %25 = vector.load %arg6[%c4, %c0_16, %c0_17] : memref<8x2x128xf32, #tpu.memory_space<vmem>>, vector<1x2x128xf32>
    %26 = vector.shape_cast %25 : vector<1x2x128xf32> to vector<2x128xf32>
    %27 = vector.shape_cast %24 : vector<2x128xf32> to vector<1x2x128xf32>
    tpu.vector_store %arg6[%c4, %c0_16, %c0_17], %27 {strides = array<i32>} : memref<8x2x128xf32, #tpu.memory_space<vmem>>, vector<1x2x128xf32>,
    %28 = vector.extract_strided_slice %7 {offsets = [10, 0], sizes = [2, 128], strides = [1, 1]} : vector<16x128xf32> to vector<2x128xf32>
    %c5 = arith.constant 5 : index
    %c0_18 = arith.constant 0 : index
    %c0_19 = arith.constant 0 : index
    %29 = vector.load %arg6[%c5, %c0_18, %c0_19] : memref<8x2x128xf32, #tpu.memory_space<vmem>>, vector<1x2x128xf32>
    %30 = vector.shape_cast %29 : vector<1x2x128xf32> to vector<2x128xf32>
    %31 = vector.shape_cast %28 : vector<2x128xf32> to vector<1x2x128xf32>
    tpu.vector_store %arg6[%c5, %c0_18, %c0_19], %31 {strides = array<i32>} : memref<8x2x128xf32, #tpu.memory_space<vmem>>, vector<1x2x128xf32>,
    %32 = vector.extract_strided_slice %7 {offsets = [12, 0], sizes = [2, 128], strides = [1, 1]} : vector<16x128xf32> to vector<2x128xf32>
    %c6 = arith.constant 6 : index
    %c0_20 = arith.constant 0 : index
    %c0_21 = arith.constant 0 : index
    %33 = vector.load %arg6[%c6, %c0_20, %c0_21] : memref<8x2x128xf32, #tpu.memory_space<vmem>>, vector<1x2x128xf32>
    %34 = vector.shape_cast %33 : vector<1x2x128xf32> to vector<2x128xf32>
    %35 = vector.shape_cast %32 : vector<2x128xf32> to vector<1x2x128xf32>
    tpu.vector_store %arg6[%c6, %c0_20, %c0_21], %35 {strides = array<i32>} : memref<8x2x128xf32, #tpu.memory_space<vmem>>, vector<1x2x128xf32>,
    %36 = vector.extract_strided_slice %7 {offsets = [14, 0], sizes = [2, 128], strides = [1, 1]} : vector<16x128xf32> to vector<2x128xf32>
    %c7 = arith.constant 7 : index
    %c0_22 = arith.constant 0 : index
    %c0_23 = arith.constant 0 : index
    %37 = vector.load %arg6[%c7, %c0_22, %c0_23] : memref<8x2x128xf32, #tpu.memory_space<vmem>>, vector<1x2x128xf32>
    %38 = vector.shape_cast %37 : vector<1x2x128xf32> to vector<2x128xf32>
    %39 = vector.shape_cast %36 : vector<2x128xf32> to vector<1x2x128xf32>
    tpu.vector_store %arg6[%c7, %c0_22, %c0_23], %39 {strides = array<i32>} : memref<8x2x128xf32, #tpu.memory_space<vmem>>, vector<1x2x128xf32>,
    %cst_24 = arith.constant 0.000000e+00 : f32
    %40 = vector.broadcast %cst_24 : f32 to vector<2x32xf32>
    %c0_25 = arith.constant 0 : index
    %c0_26 = arith.constant 0 : index
    %41 = vector.load %arg7[%c0_25, %c0_26] : memref<2x32xf32, #tpu.memory_space<vmem>>, vector<2x32xf32>
    tpu.vector_store %arg7[%c0_25, %c0_26], %40 {strides = array<i32>} : memref<2x32xf32, #tpu.memory_space<vmem>>, vector<2x32xf32>,
    %cst_27 = arith.constant 0.000000e+00 : f32
    %42 = vector.broadcast %cst_27 : f32 to vector<2x32xf32>
    %c0_28 = arith.constant 0 : index
    %c0_29 = arith.constant 0 : index
    %43 = vector.load %arg8[%c0_28, %c0_29] : memref<2x32xf32, #tpu.memory_space<vmem>>, vector<2x32xf32>
    tpu.vector_store %arg8[%c0_28, %c0_29], %42 {strides = array<i32>} : memref<2x32xf32, #tpu.memory_space<vmem>>, vector<2x32xf32>,
    %c0_30 = arith.constant 0 : index
    %c0_31 = arith.constant 0 : index
    %c0_32 = arith.constant 0 : index
    %44 = vector.load %arg3[%c0_30, %c0_31, %c0_32] : memref<1x32x128xf32, #tpu.memory_space<vmem>>, vector<1x32x128xf32>
    %45 = vector.shape_cast %44 : vector<1x32x128xf32> to vector<32x128xf32>
    %c7_i32 = arith.constant 7 : i32
    %46 = arith.muli %arg0, %c7_i32 : i32
    %c2_i32 = arith.constant 2 : i32
    %47 = arith.muli %c2_i32, %arg0 : i32
    %c1_i32 = arith.constant 1 : i32
    %48 = arith.subi %c1_i32, %47 : i32
    %c0_i32 = arith.constant 0 : i32
    %49 = arith.muli %48, %c0_i32 : i32
    %50 = arith.addi %46, %49 : i32
    %c0_33 = arith.constant 0 : index
    %c0_34 = arith.constant 0 : index
    %51 = vector.load %arg7[%c0_33, %c0_34] : memref<2x32xf32, #tpu.memory_space<vmem>>, vector<2x32xf32>
    %c0_35 = arith.constant 0 : index
    %c0_36 = arith.constant 0 : index
    %52 = vector.load %arg8[%c0_35, %c0_36] : memref<2x32xf32, #tpu.memory_space<vmem>>, vector<2x32xf32>
    %53 = arith.index_cast %50 : i32 to index
    %c0_37 = arith.constant 0 : index
    %c0_38 = arith.constant 0 : index
    %54 = vector.load %arg6[%53, %c0_37, %c0_38] : memref<8x2x128xf32, #tpu.memory_space<vmem>>, vector<1x2x128xf32>
    %55 = vector.shape_cast %54 : vector<1x2x128xf32> to vector<2x128xf32>
    %cst_39 = arith.constant dense<0.000000e+00> : vector<2x128xf32>
    %56 = tpu.matmul %51, %45, %cst_39 {dimension_numbers = #tpu.dot_dimension_numbers<[1], [0], [0], [1], [0, 0, 1, 1], [], []>} : vector<2x32xf32>, vector<32x128xf32>, vector<2x128xf32> -> vector<2x128xf32>
    %57 = arith.addf %55, %56 : vector<2x128xf32>
    %58 = arith.negf %57 : vector<2x128xf32>
    %59 = math.exp %58 : vector<2x128xf32>
    %cst_40 = arith.constant 1.000000e+00 : f32
    %60 = vector.broadcast %cst_40 : f32 to vector<2x128xf32>
    %61 = arith.addf %60, %59 : vector<2x128xf32>
    %62 = arith.divf %60, %61 : vector<2x128xf32>
    %63 = math.tanh %57 : vector<2x128xf32>
    %64 = vector.extract_strided_slice %62 {offsets = [0, 0], sizes = [2, 32], strides = [1, 1]} : vector<2x128xf32> to vector<2x32xf32>
    %65 = vector.extract_strided_slice %62 {offsets = [0, 32], sizes = [2, 32], strides = [1, 1]} : vector<2x128xf32> to vector<2x32xf32>
    %66 = vector.extract_strided_slice %62 {offsets = [0, 96], sizes = [2, 32], strides = [1, 1]} : vector<2x128xf32> to vector<2x32xf32>
    %67 = vector.extract_strided_slice %63 {offsets = [0, 64], sizes = [2, 32], strides = [1, 1]} : vector<2x128xf32> to vector<2x32xf32>
    %68 = arith.mulf %65, %52 : vector<2x32xf32>
    %69 = arith.mulf %64, %67 : vector<2x32xf32>
    %70 = arith.addf %68, %69 : vector<2x32xf32>
    %71 = math.tanh %70 : vector<2x32xf32>
    %72 = arith.mulf %66, %71 : vector<2x32xf32>
    %c0_41 = arith.constant 0 : index
    %c0_42 = arith.constant 0 : index
    %73 = vector.load %arg7[%c0_41, %c0_42] : memref<2x32xf32, #tpu.memory_space<vmem>>, vector<2x32xf32>
    tpu.vector_store %arg7[%c0_41, %c0_42], %72 {strides = array<i32>} : memref<2x32xf32, #tpu.memory_space<vmem>>, vector<2x32xf32>,
    %c0_43 = arith.constant 0 : index
    %c0_44 = arith.constant 0 : index
    %74 = vector.load %arg8[%c0_43, %c0_44] : memref<2x32xf32, #tpu.memory_space<vmem>>, vector<2x32xf32>
    tpu.vector_store %arg8[%c0_43, %c0_44], %70 {strides = array<i32>} : memref<2x32xf32, #tpu.memory_space<vmem>>, vector<2x32xf32>,
    %c0_45 = arith.constant 0 : index
    %75 = arith.index_cast %50 : i32 to index
    %c0_46 = arith.constant 0 : index
    %c0_47 = arith.constant 0 : index
    %76 = vector.load %arg5[%c0_45, %75, %c0_46, %c0_47] : memref<1x8x2x32xf32, #tpu.memory_space<vmem>>, vector<1x1x2x32xf32>
    %77 = vector.shape_cast %76 : vector<1x1x2x32xf32> to vector<2x32xf32>
    %78 = vector.shape_cast %72 : vector<2x32xf32> to vector<1x1x2x32xf32>
    tpu.vector_store %arg5[%c0_45, %75, %c0_46, %c0_47], %78 {strides = array<i32>} : memref<1x8x2x32xf32, #tpu.memory_space<vmem>>, vector<1x1x2x32xf32>,
    %c1_i32_48 = arith.constant 1 : i32
    %79 = arith.muli %48, %c1_i32_48 : i32
    %80 = arith.addi %46, %79 : i32
    %c0_49 = arith.constant 0 : index
    %c0_50 = arith.constant 0 : index
    %81 = vector.load %arg7[%c0_49, %c0_50] : memref<2x32xf32, #tpu.memory_space<vmem>>, vector<2x32xf32>
    %c0_51 = arith.constant 0 : index
    %c0_52 = arith.constant 0 : index
    %82 = vector.load %arg8[%c0_51, %c0_52] : memref<2x32xf32, #tpu.memory_space<vmem>>, vector<2x32xf32>
    %83 = arith.index_cast %80 : i32 to index
    %c0_53 = arith.constant 0 : index
    %c0_54 = arith.constant 0 : index
    %84 = vector.load %arg6[%83, %c0_53, %c0_54] : memref<8x2x128xf32, #tpu.memory_space<vmem>>, vector<1x2x128xf32>
    %85 = vector.shape_cast %84 : vector<1x2x128xf32> to vector<2x128xf32>
    %cst_55 = arith.constant dense<0.000000e+00> : vector<2x128xf32>
    %86 = tpu.matmul %81, %45, %cst_55 {dimension_numbers = #tpu.dot_dimension_numbers<[1], [0], [0], [1], [0, 0, 1, 1], [], []>} : vector<2x32xf32>, vector<32x128xf32>, vector<2x128xf32> -> vector<2x128xf32>
    %87 = arith.addf %85, %86 : vector<2x128xf32>
    %88 = arith.negf %87 : vector<2x128xf32>
    %89 = math.exp %88 : vector<2x128xf32>
    %cst_56 = arith.constant 1.000000e+00 : f32
    %90 = vector.broadcast %cst_56 : f32 to vector<2x128xf32>
    %91 = arith.addf %90, %89 : vector<2x128xf32>
    %92 = arith.divf %90, %91 : vector<2x128xf32>
    %93 = math.tanh %87 : vector<2x128xf32>
    %94 = vector.extract_strided_slice %92 {offsets = [0, 0], sizes = [2, 32], strides = [1, 1]} : vector<2x128xf32> to vector<2x32xf32>
    %95 = vector.extract_strided_slice %92 {offsets = [0, 32], sizes = [2, 32], strides = [1, 1]} : vector<2x128xf32> to vector<2x32xf32>
    %96 = vector.extract_strided_slice %92 {offsets = [0, 96], sizes = [2, 32], strides = [1, 1]} : vector<2x128xf32> to vector<2x32xf32>
    %97 = vector.extract_strided_slice %93 {offsets = [0, 64], sizes = [2, 32], strides = [1, 1]} : vector<2x128xf32> to vector<2x32xf32>
    %98 = arith.mulf %95, %82 : vector<2x32xf32>
    %99 = arith.mulf %94, %97 : vector<2x32xf32>
    %100 = arith.addf %98, %99 : vector<2x32xf32>
    %101 = math.tanh %100 : vector<2x32xf32>
    %102 = arith.mulf %96, %101 : vector<2x32xf32>
    %c0_57 = arith.constant 0 : index
    %c0_58 = arith.constant 0 : index
    %103 = vector.load %arg7[%c0_57, %c0_58] : memref<2x32xf32, #tpu.memory_space<vmem>>, vector<2x32xf32>
    tpu.vector_store %arg7[%c0_57, %c0_58], %102 {strides = array<i32>} : memref<2x32xf32, #tpu.memory_space<vmem>>, vector<2x32xf32>,
    %c0_59 = arith.constant 0 : index
    %c0_60 = arith.constant 0 : index
    %104 = vector.load %arg8[%c0_59, %c0_60] : memref<2x32xf32, #tpu.memory_space<vmem>>, vector<2x32xf32>
    tpu.vector_store %arg8[%c0_59, %c0_60], %100 {strides = array<i32>} : memref<2x32xf32, #tpu.memory_space<vmem>>, vector<2x32xf32>,
    %c0_61 = arith.constant 0 : index
    %105 = arith.index_cast %80 : i32 to index
    %c0_62 = arith.constant 0 : index
    %c0_63 = arith.constant 0 : index
    %106 = vector.load %arg5[%c0_61, %105, %c0_62, %c0_63] : memref<1x8x2x32xf32, #tpu.memory_space<vmem>>, vector<1x1x2x32xf32>
    %107 = vector.shape_cast %106 : vector<1x1x2x32xf32> to vector<2x32xf32>
    %108 = vector.shape_cast %102 : vector<2x32xf32> to vector<1x1x2x32xf32>
    tpu.vector_store %arg5[%c0_61, %105, %c0_62, %c0_63], %108 {strides = array<i32>} : memref<1x8x2x32xf32, #tpu.memory_space<vmem>>, vector<1x1x2x32xf32>,
    %c2_i32_64 = arith.constant 2 : i32
    %109 = arith.muli %48, %c2_i32_64 : i32
    %110 = arith.addi %46, %109 : i32
    %c0_65 = arith.constant 0 : index
    %c0_66 = arith.constant 0 : index
    %111 = vector.load %arg7[%c0_65, %c0_66] : memref<2x32xf32, #tpu.memory_space<vmem>>, vector<2x32xf32>
    %c0_67 = arith.constant 0 : index
    %c0_68 = arith.constant 0 : index
    %112 = vector.load %arg8[%c0_67, %c0_68] : memref<2x32xf32, #tpu.memory_space<vmem>>, vector<2x32xf32>
    %113 = arith.index_cast %110 : i32 to index
    %c0_69 = arith.constant 0 : index
    %c0_70 = arith.constant 0 : index
    %114 = vector.load %arg6[%113, %c0_69, %c0_70] : memref<8x2x128xf32, #tpu.memory_space<vmem>>, vector<1x2x128xf32>
    %115 = vector.shape_cast %114 : vector<1x2x128xf32> to vector<2x128xf32>
    %cst_71 = arith.constant dense<0.000000e+00> : vector<2x128xf32>
    %116 = tpu.matmul %111, %45, %cst_71 {dimension_numbers = #tpu.dot_dimension_numbers<[1], [0], [0], [1], [0, 0, 1, 1], [], []>} : vector<2x32xf32>, vector<32x128xf32>, vector<2x128xf32> -> vector<2x128xf32>
    %117 = arith.addf %115, %116 : vector<2x128xf32>
    %118 = arith.negf %117 : vector<2x128xf32>
    %119 = math.exp %118 : vector<2x128xf32>
    %cst_72 = arith.constant 1.000000e+00 : f32
    %120 = vector.broadcast %cst_72 : f32 to vector<2x128xf32>
    %121 = arith.addf %120, %119 : vector<2x128xf32>
    %122 = arith.divf %120, %121 : vector<2x128xf32>
    %123 = math.tanh %117 : vector<2x128xf32>
    %124 = vector.extract_strided_slice %122 {offsets = [0, 0], sizes = [2, 32], strides = [1, 1]} : vector<2x128xf32> to vector<2x32xf32>
    %125 = vector.extract_strided_slice %122 {offsets = [0, 32], sizes = [2, 32], strides = [1, 1]} : vector<2x128xf32> to vector<2x32xf32>
    %126 = vector.extract_strided_slice %122 {offsets = [0, 96], sizes = [2, 32], strides = [1, 1]} : vector<2x128xf32> to vector<2x32xf32>
    %127 = vector.extract_strided_slice %123 {offsets = [0, 64], sizes = [2, 32], strides = [1, 1]} : vector<2x128xf32> to vector<2x32xf32>
    %128 = arith.mulf %125, %112 : vector<2x32xf32>
    %129 = arith.mulf %124, %127 : vector<2x32xf32>
    %130 = arith.addf %128, %129 : vector<2x32xf32>
    %131 = math.tanh %130 : vector<2x32xf32>
    %132 = arith.mulf %126, %131 : vector<2x32xf32>
    %c0_73 = arith.constant 0 : index
    %c0_74 = arith.constant 0 : index
    %133 = vector.load %arg7[%c0_73, %c0_74] : memref<2x32xf32, #tpu.memory_space<vmem>>, vector<2x32xf32>
    tpu.vector_store %arg7[%c0_73, %c0_74], %132 {strides = array<i32>} : memref<2x32xf32, #tpu.memory_space<vmem>>, vector<2x32xf32>,
    %c0_75 = arith.constant 0 : index
    %c0_76 = arith.constant 0 : index
    %134 = vector.load %arg8[%c0_75, %c0_76] : memref<2x32xf32, #tpu.memory_space<vmem>>, vector<2x32xf32>
    tpu.vector_store %arg8[%c0_75, %c0_76], %130 {strides = array<i32>} : memref<2x32xf32, #tpu.memory_space<vmem>>, vector<2x32xf32>,
    %c0_77 = arith.constant 0 : index
    %135 = arith.index_cast %110 : i32 to index
    %c0_78 = arith.constant 0 : index
    %c0_79 = arith.constant 0 : index
    %136 = vector.load %arg5[%c0_77, %135, %c0_78, %c0_79] : memref<1x8x2x32xf32, #tpu.memory_space<vmem>>, vector<1x1x2x32xf32>
    %137 = vector.shape_cast %136 : vector<1x1x2x32xf32> to vector<2x32xf32>
    %138 = vector.shape_cast %132 : vector<2x32xf32> to vector<1x1x2x32xf32>
    tpu.vector_store %arg5[%c0_77, %135, %c0_78, %c0_79], %138 {strides = array<i32>} : memref<1x8x2x32xf32, #tpu.memory_space<vmem>>, vector<1x1x2x32xf32>,
    %c3_i32 = arith.constant 3 : i32
    %139 = arith.muli %48, %c3_i32 : i32
    %140 = arith.addi %46, %139 : i32
    %c0_80 = arith.constant 0 : index
    %c0_81 = arith.constant 0 : index
    %141 = vector.load %arg7[%c0_80, %c0_81] : memref<2x32xf32, #tpu.memory_space<vmem>>, vector<2x32xf32>
    %c0_82 = arith.constant 0 : index
    %c0_83 = arith.constant 0 : index
    %142 = vector.load %arg8[%c0_82, %c0_83] : memref<2x32xf32, #tpu.memory_space<vmem>>, vector<2x32xf32>
    %143 = arith.index_cast %140 : i32 to index
    %c0_84 = arith.constant 0 : index
    %c0_85 = arith.constant 0 : index
    %144 = vector.load %arg6[%143, %c0_84, %c0_85] : memref<8x2x128xf32, #tpu.memory_space<vmem>>, vector<1x2x128xf32>
    %145 = vector.shape_cast %144 : vector<1x2x128xf32> to vector<2x128xf32>
    %cst_86 = arith.constant dense<0.000000e+00> : vector<2x128xf32>
    %146 = tpu.matmul %141, %45, %cst_86 {dimension_numbers = #tpu.dot_dimension_numbers<[1], [0], [0], [1], [0, 0, 1, 1], [], []>} : vector<2x32xf32>, vector<32x128xf32>, vector<2x128xf32> -> vector<2x128xf32>
    %147 = arith.addf %145, %146 : vector<2x128xf32>
    %148 = arith.negf %147 : vector<2x128xf32>
    %149 = math.exp %148 : vector<2x128xf32>
    %cst_87 = arith.constant 1.000000e+00 : f32
    %150 = vector.broadcast %cst_87 : f32 to vector<2x128xf32>
    %151 = arith.addf %150, %149 : vector<2x128xf32>
    %152 = arith.divf %150, %151 : vector<2x128xf32>
    %153 = math.tanh %147 : vector<2x128xf32>
    %154 = vector.extract_strided_slice %152 {offsets = [0, 0], sizes = [2, 32], strides = [1, 1]} : vector<2x128xf32> to vector<2x32xf32>
    %155 = vector.extract_strided_slice %152 {offsets = [0, 32], sizes = [2, 32], strides = [1, 1]} : vector<2x128xf32> to vector<2x32xf32>
    %156 = vector.extract_strided_slice %152 {offsets = [0, 96], sizes = [2, 32], strides = [1, 1]} : vector<2x128xf32> to vector<2x32xf32>
    %157 = vector.extract_strided_slice %153 {offsets = [0, 64], sizes = [2, 32], strides = [1, 1]} : vector<2x128xf32> to vector<2x32xf32>
    %158 = arith.mulf %155, %142 : vector<2x32xf32>
    %159 = arith.mulf %154, %157 : vector<2x32xf32>
    %160 = arith.addf %158, %159 : vector<2x32xf32>
    %161 = math.tanh %160 : vector<2x32xf32>
    %162 = arith.mulf %156, %161 : vector<2x32xf32>
    %c0_88 = arith.constant 0 : index
    %c0_89 = arith.constant 0 : index
    %163 = vector.load %arg7[%c0_88, %c0_89] : memref<2x32xf32, #tpu.memory_space<vmem>>, vector<2x32xf32>
    tpu.vector_store %arg7[%c0_88, %c0_89], %162 {strides = array<i32>} : memref<2x32xf32, #tpu.memory_space<vmem>>, vector<2x32xf32>,
    %c0_90 = arith.constant 0 : index
    %c0_91 = arith.constant 0 : index
    %164 = vector.load %arg8[%c0_90, %c0_91] : memref<2x32xf32, #tpu.memory_space<vmem>>, vector<2x32xf32>
    tpu.vector_store %arg8[%c0_90, %c0_91], %160 {strides = array<i32>} : memref<2x32xf32, #tpu.memory_space<vmem>>, vector<2x32xf32>,
    %c0_92 = arith.constant 0 : index
    %165 = arith.index_cast %140 : i32 to index
    %c0_93 = arith.constant 0 : index
    %c0_94 = arith.constant 0 : index
    %166 = vector.load %arg5[%c0_92, %165, %c0_93, %c0_94] : memref<1x8x2x32xf32, #tpu.memory_space<vmem>>, vector<1x1x2x32xf32>
    %167 = vector.shape_cast %166 : vector<1x1x2x32xf32> to vector<2x32xf32>
    %168 = vector.shape_cast %162 : vector<2x32xf32> to vector<1x1x2x32xf32>
    tpu.vector_store %arg5[%c0_92, %165, %c0_93, %c0_94], %168 {strides = array<i32>} : memref<1x8x2x32xf32, #tpu.memory_space<vmem>>, vector<1x1x2x32xf32>,
    %c4_i32 = arith.constant 4 : i32
    %169 = arith.muli %48, %c4_i32 : i32
    %170 = arith.addi %46, %169 : i32
    %c0_95 = arith.constant 0 : index
    %c0_96 = arith.constant 0 : index
    %171 = vector.load %arg7[%c0_95, %c0_96] : memref<2x32xf32, #tpu.memory_space<vmem>>, vector<2x32xf32>
    %c0_97 = arith.constant 0 : index
    %c0_98 = arith.constant 0 : index
    %172 = vector.load %arg8[%c0_97, %c0_98] : memref<2x32xf32, #tpu.memory_space<vmem>>, vector<2x32xf32>
    %173 = arith.index_cast %170 : i32 to index
    %c0_99 = arith.constant 0 : index
    %c0_100 = arith.constant 0 : index
    %174 = vector.load %arg6[%173, %c0_99, %c0_100] : memref<8x2x128xf32, #tpu.memory_space<vmem>>, vector<1x2x128xf32>
    %175 = vector.shape_cast %174 : vector<1x2x128xf32> to vector<2x128xf32>
    %cst_101 = arith.constant dense<0.000000e+00> : vector<2x128xf32>
    %176 = tpu.matmul %171, %45, %cst_101 {dimension_numbers = #tpu.dot_dimension_numbers<[1], [0], [0], [1], [0, 0, 1, 1], [], []>} : vector<2x32xf32>, vector<32x128xf32>, vector<2x128xf32> -> vector<2x128xf32>
    %177 = arith.addf %175, %176 : vector<2x128xf32>
    %178 = arith.negf %177 : vector<2x128xf32>
    %179 = math.exp %178 : vector<2x128xf32>
    %cst_102 = arith.constant 1.000000e+00 : f32
    %180 = vector.broadcast %cst_102 : f32 to vector<2x128xf32>
    %181 = arith.addf %180, %179 : vector<2x128xf32>
    %182 = arith.divf %180, %181 : vector<2x128xf32>
    %183 = math.tanh %177 : vector<2x128xf32>
    %184 = vector.extract_strided_slice %182 {offsets = [0, 0], sizes = [2, 32], strides = [1, 1]} : vector<2x128xf32> to vector<2x32xf32>
    %185 = vector.extract_strided_slice %182 {offsets = [0, 32], sizes = [2, 32], strides = [1, 1]} : vector<2x128xf32> to vector<2x32xf32>
    %186 = vector.extract_strided_slice %182 {offsets = [0, 96], sizes = [2, 32], strides = [1, 1]} : vector<2x128xf32> to vector<2x32xf32>
    %187 = vector.extract_strided_slice %183 {offsets = [0, 64], sizes = [2, 32], strides = [1, 1]} : vector<2x128xf32> to vector<2x32xf32>
    %188 = arith.mulf %185, %172 : vector<2x32xf32>
    %189 = arith.mulf %184, %187 : vector<2x32xf32>
    %190 = arith.addf %188, %189 : vector<2x32xf32>
    %191 = math.tanh %190 : vector<2x32xf32>
    %192 = arith.mulf %186, %191 : vector<2x32xf32>
    %c0_103 = arith.constant 0 : index
    %c0_104 = arith.constant 0 : index
    %193 = vector.load %arg7[%c0_103, %c0_104] : memref<2x32xf32, #tpu.memory_space<vmem>>, vector<2x32xf32>
    tpu.vector_store %arg7[%c0_103, %c0_104], %192 {strides = array<i32>} : memref<2x32xf32, #tpu.memory_space<vmem>>, vector<2x32xf32>,
    %c0_105 = arith.constant 0 : index
    %c0_106 = arith.constant 0 : index
    %194 = vector.load %arg8[%c0_105, %c0_106] : memref<2x32xf32, #tpu.memory_space<vmem>>, vector<2x32xf32>
    tpu.vector_store %arg8[%c0_105, %c0_106], %190 {strides = array<i32>} : memref<2x32xf32, #tpu.memory_space<vmem>>, vector<2x32xf32>,
    %c0_107 = arith.constant 0 : index
    %195 = arith.index_cast %170 : i32 to index
    %c0_108 = arith.constant 0 : index
    %c0_109 = arith.constant 0 : index
    %196 = vector.load %arg5[%c0_107, %195, %c0_108, %c0_109] : memref<1x8x2x32xf32, #tpu.memory_space<vmem>>, vector<1x1x2x32xf32>
    %197 = vector.shape_cast %196 : vector<1x1x2x32xf32> to vector<2x32xf32>
    %198 = vector.shape_cast %192 : vector<2x32xf32> to vector<1x1x2x32xf32>
    tpu.vector_store %arg5[%c0_107, %195, %c0_108, %c0_109], %198 {strides = array<i32>} : memref<1x8x2x32xf32, #tpu.memory_space<vmem>>, vector<1x1x2x32xf32>,
    %c5_i32 = arith.constant 5 : i32
    %199 = arith.muli %48, %c5_i32 : i32
    %200 = arith.addi %46, %199 : i32
    %c0_110 = arith.constant 0 : index
    %c0_111 = arith.constant 0 : index
    %201 = vector.load %arg7[%c0_110, %c0_111] : memref<2x32xf32, #tpu.memory_space<vmem>>, vector<2x32xf32>
    %c0_112 = arith.constant 0 : index
    %c0_113 = arith.constant 0 : index
    %202 = vector.load %arg8[%c0_112, %c0_113] : memref<2x32xf32, #tpu.memory_space<vmem>>, vector<2x32xf32>
    %203 = arith.index_cast %200 : i32 to index
    %c0_114 = arith.constant 0 : index
    %c0_115 = arith.constant 0 : index
    %204 = vector.load %arg6[%203, %c0_114, %c0_115] : memref<8x2x128xf32, #tpu.memory_space<vmem>>, vector<1x2x128xf32>
    %205 = vector.shape_cast %204 : vector<1x2x128xf32> to vector<2x128xf32>
    %cst_116 = arith.constant dense<0.000000e+00> : vector<2x128xf32>
    %206 = tpu.matmul %201, %45, %cst_116 {dimension_numbers = #tpu.dot_dimension_numbers<[1], [0], [0], [1], [0, 0, 1, 1], [], []>} : vector<2x32xf32>, vector<32x128xf32>, vector<2x128xf32> -> vector<2x128xf32>
    %207 = arith.addf %205, %206 : vector<2x128xf32>
    %208 = arith.negf %207 : vector<2x128xf32>
    %209 = math.exp %208 : vector<2x128xf32>
    %cst_117 = arith.constant 1.000000e+00 : f32
    %210 = vector.broadcast %cst_117 : f32 to vector<2x128xf32>
    %211 = arith.addf %210, %209 : vector<2x128xf32>
    %212 = arith.divf %210, %211 : vector<2x128xf32>
    %213 = math.tanh %207 : vector<2x128xf32>
    %214 = vector.extract_strided_slice %212 {offsets = [0, 0], sizes = [2, 32], strides = [1, 1]} : vector<2x128xf32> to vector<2x32xf32>
    %215 = vector.extract_strided_slice %212 {offsets = [0, 32], sizes = [2, 32], strides = [1, 1]} : vector<2x128xf32> to vector<2x32xf32>
    %216 = vector.extract_strided_slice %212 {offsets = [0, 96], sizes = [2, 32], strides = [1, 1]} : vector<2x128xf32> to vector<2x32xf32>
    %217 = vector.extract_strided_slice %213 {offsets = [0, 64], sizes = [2, 32], strides = [1, 1]} : vector<2x128xf32> to vector<2x32xf32>
    %218 = arith.mulf %215, %202 : vector<2x32xf32>
    %219 = arith.mulf %214, %217 : vector<2x32xf32>
    %220 = arith.addf %218, %219 : vector<2x32xf32>
    %221 = math.tanh %220 : vector<2x32xf32>
    %222 = arith.mulf %216, %221 : vector<2x32xf32>
    %c0_118 = arith.constant 0 : index
    %c0_119 = arith.constant 0 : index
    %223 = vector.load %arg7[%c0_118, %c0_119] : memref<2x32xf32, #tpu.memory_space<vmem>>, vector<2x32xf32>
    tpu.vector_store %arg7[%c0_118, %c0_119], %222 {strides = array<i32>} : memref<2x32xf32, #tpu.memory_space<vmem>>, vector<2x32xf32>,
    %c0_120 = arith.constant 0 : index
    %c0_121 = arith.constant 0 : index
    %224 = vector.load %arg8[%c0_120, %c0_121] : memref<2x32xf32, #tpu.memory_space<vmem>>, vector<2x32xf32>
    tpu.vector_store %arg8[%c0_120, %c0_121], %220 {strides = array<i32>} : memref<2x32xf32, #tpu.memory_space<vmem>>, vector<2x32xf32>,
    %c0_122 = arith.constant 0 : index
    %225 = arith.index_cast %200 : i32 to index
    %c0_123 = arith.constant 0 : index
    %c0_124 = arith.constant 0 : index
    %226 = vector.load %arg5[%c0_122, %225, %c0_123, %c0_124] : memref<1x8x2x32xf32, #tpu.memory_space<vmem>>, vector<1x1x2x32xf32>
    %227 = vector.shape_cast %226 : vector<1x1x2x32xf32> to vector<2x32xf32>
    %228 = vector.shape_cast %222 : vector<2x32xf32> to vector<1x1x2x32xf32>
    tpu.vector_store %arg5[%c0_122, %225, %c0_123, %c0_124], %228 {strides = array<i32>} : memref<1x8x2x32xf32, #tpu.memory_space<vmem>>, vector<1x1x2x32xf32>,
    %c6_i32 = arith.constant 6 : i32
    %229 = arith.muli %48, %c6_i32 : i32
    %230 = arith.addi %46, %229 : i32
    %c0_125 = arith.constant 0 : index
    %c0_126 = arith.constant 0 : index
    %231 = vector.load %arg7[%c0_125, %c0_126] : memref<2x32xf32, #tpu.memory_space<vmem>>, vector<2x32xf32>
    %c0_127 = arith.constant 0 : index
    %c0_128 = arith.constant 0 : index
    %232 = vector.load %arg8[%c0_127, %c0_128] : memref<2x32xf32, #tpu.memory_space<vmem>>, vector<2x32xf32>
    %233 = arith.index_cast %230 : i32 to index
    %c0_129 = arith.constant 0 : index
    %c0_130 = arith.constant 0 : index
    %234 = vector.load %arg6[%233, %c0_129, %c0_130] : memref<8x2x128xf32, #tpu.memory_space<vmem>>, vector<1x2x128xf32>
    %235 = vector.shape_cast %234 : vector<1x2x128xf32> to vector<2x128xf32>
    %cst_131 = arith.constant dense<0.000000e+00> : vector<2x128xf32>
    %236 = tpu.matmul %231, %45, %cst_131 {dimension_numbers = #tpu.dot_dimension_numbers<[1], [0], [0], [1], [0, 0, 1, 1], [], []>} : vector<2x32xf32>, vector<32x128xf32>, vector<2x128xf32> -> vector<2x128xf32>
    %237 = arith.addf %235, %236 : vector<2x128xf32>
    %238 = arith.negf %237 : vector<2x128xf32>
    %239 = math.exp %238 : vector<2x128xf32>
    %cst_132 = arith.constant 1.000000e+00 : f32
    %240 = vector.broadcast %cst_132 : f32 to vector<2x128xf32>
    %241 = arith.addf %240, %239 : vector<2x128xf32>
    %242 = arith.divf %240, %241 : vector<2x128xf32>
    %243 = math.tanh %237 : vector<2x128xf32>
    %244 = vector.extract_strided_slice %242 {offsets = [0, 0], sizes = [2, 32], strides = [1, 1]} : vector<2x128xf32> to vector<2x32xf32>
    %245 = vector.extract_strided_slice %242 {offsets = [0, 32], sizes = [2, 32], strides = [1, 1]} : vector<2x128xf32> to vector<2x32xf32>
    %246 = vector.extract_strided_slice %242 {offsets = [0, 96], sizes = [2, 32], strides = [1, 1]} : vector<2x128xf32> to vector<2x32xf32>
    %247 = vector.extract_strided_slice %243 {offsets = [0, 64], sizes = [2, 32], strides = [1, 1]} : vector<2x128xf32> to vector<2x32xf32>
    %248 = arith.mulf %245, %232 : vector<2x32xf32>
    %249 = arith.mulf %244, %247 : vector<2x32xf32>
    %250 = arith.addf %248, %249 : vector<2x32xf32>
    %251 = math.tanh %250 : vector<2x32xf32>
    %252 = arith.mulf %246, %251 : vector<2x32xf32>
    %c0_133 = arith.constant 0 : index
    %c0_134 = arith.constant 0 : index
    %253 = vector.load %arg7[%c0_133, %c0_134] : memref<2x32xf32, #tpu.memory_space<vmem>>, vector<2x32xf32>
    tpu.vector_store %arg7[%c0_133, %c0_134], %252 {strides = array<i32>} : memref<2x32xf32, #tpu.memory_space<vmem>>, vector<2x32xf32>,
    %c0_135 = arith.constant 0 : index
    %c0_136 = arith.constant 0 : index
    %254 = vector.load %arg8[%c0_135, %c0_136] : memref<2x32xf32, #tpu.memory_space<vmem>>, vector<2x32xf32>
    tpu.vector_store %arg8[%c0_135, %c0_136], %250 {strides = array<i32>} : memref<2x32xf32, #tpu.memory_space<vmem>>, vector<2x32xf32>,
    %c0_137 = arith.constant 0 : index
    %255 = arith.index_cast %230 : i32 to index
    %c0_138 = arith.constant 0 : index
    %c0_139 = arith.constant 0 : index
    %256 = vector.load %arg5[%c0_137, %255, %c0_138, %c0_139] : memref<1x8x2x32xf32, #tpu.memory_space<vmem>>, vector<1x1x2x32xf32>
    %257 = vector.shape_cast %256 : vector<1x1x2x32xf32> to vector<2x32xf32>
    %258 = vector.shape_cast %252 : vector<2x32xf32> to vector<1x1x2x32xf32>
    tpu.vector_store %arg5[%c0_137, %255, %c0_138, %c0_139], %258 {strides = array<i32>} : memref<1x8x2x32xf32, #tpu.memory_space<vmem>>, vector<1x1x2x32xf32>,
    %c7_i32_140 = arith.constant 7 : i32
    %259 = arith.muli %48, %c7_i32_140 : i32
    %260 = arith.addi %46, %259 : i32
    %c0_141 = arith.constant 0 : index
    %c0_142 = arith.constant 0 : index
    %261 = vector.load %arg7[%c0_141, %c0_142] : memref<2x32xf32, #tpu.memory_space<vmem>>, vector<2x32xf32>
    %c0_143 = arith.constant 0 : index
    %c0_144 = arith.constant 0 : index
    %262 = vector.load %arg8[%c0_143, %c0_144] : memref<2x32xf32, #tpu.memory_space<vmem>>, vector<2x32xf32>
    %263 = arith.index_cast %260 : i32 to index
    %c0_145 = arith.constant 0 : index
    %c0_146 = arith.constant 0 : index
    %264 = vector.load %arg6[%263, %c0_145, %c0_146] : memref<8x2x128xf32, #tpu.memory_space<vmem>>, vector<1x2x128xf32>
    %265 = vector.shape_cast %264 : vector<1x2x128xf32> to vector<2x128xf32>
    %cst_147 = arith.constant dense<0.000000e+00> : vector<2x128xf32>
    %266 = tpu.matmul %261, %45, %cst_147 {dimension_numbers = #tpu.dot_dimension_numbers<[1], [0], [0], [1], [0, 0, 1, 1], [], []>} : vector<2x32xf32>, vector<32x128xf32>, vector<2x128xf32> -> vector<2x128xf32>
    %267 = arith.addf %265, %266 : vector<2x128xf32>
    %268 = arith.negf %267 : vector<2x128xf32>
    %269 = math.exp %268 : vector<2x128xf32>
    %cst_148 = arith.constant 1.000000e+00 : f32
    %270 = vector.broadcast %cst_148 : f32 to vector<2x128xf32>
    %271 = arith.addf %270, %269 : vector<2x128xf32>
    %272 = arith.divf %270, %271 : vector<2x128xf32>
    %273 = math.tanh %267 : vector<2x128xf32>
    %274 = vector.extract_strided_slice %272 {offsets = [0, 0], sizes = [2, 32], strides = [1, 1]} : vector<2x128xf32> to vector<2x32xf32>
    %275 = vector.extract_strided_slice %272 {offsets = [0, 32], sizes = [2, 32], strides = [1, 1]} : vector<2x128xf32> to vector<2x32xf32>
    %276 = vector.extract_strided_slice %272 {offsets = [0, 96], sizes = [2, 32], strides = [1, 1]} : vector<2x128xf32> to vector<2x32xf32>
    %277 = vector.extract_strided_slice %273 {offsets = [0, 64], sizes = [2, 32], strides = [1, 1]} : vector<2x128xf32> to vector<2x32xf32>
    %278 = arith.mulf %275, %262 : vector<2x32xf32>
    %279 = arith.mulf %274, %277 : vector<2x32xf32>
    %280 = arith.addf %278, %279 : vector<2x32xf32>
    %281 = math.tanh %280 : vector<2x32xf32>
    %282 = arith.mulf %276, %281 : vector<2x32xf32>
    %c0_149 = arith.constant 0 : index
    %c0_150 = arith.constant 0 : index
    %283 = vector.load %arg7[%c0_149, %c0_150] : memref<2x32xf32, #tpu.memory_space<vmem>>, vector<2x32xf32>
    tpu.vector_store %arg7[%c0_149, %c0_150], %282 {strides = array<i32>} : memref<2x32xf32, #tpu.memory_space<vmem>>, vector<2x32xf32>,
    %c0_151 = arith.constant 0 : index
    %c0_152 = arith.constant 0 : index
    %284 = vector.load %arg8[%c0_151, %c0_152] : memref<2x32xf32, #tpu.memory_space<vmem>>, vector<2x32xf32>
    tpu.vector_store %arg8[%c0_151, %c0_152], %280 {strides = array<i32>} : memref<2x32xf32, #tpu.memory_space<vmem>>, vector<2x32xf32>,
    %c0_153 = arith.constant 0 : index
    %285 = arith.index_cast %260 : i32 to index
    %c0_154 = arith.constant 0 : index
    %c0_155 = arith.constant 0 : index
    %286 = vector.load %arg5[%c0_153, %285, %c0_154, %c0_155] : memref<1x8x2x32xf32, #tpu.memory_space<vmem>>, vector<1x1x2x32xf32>
    %287 = vector.shape_cast %286 : vector<1x1x2x32xf32> to vector<2x32xf32>
    %288 = vector.shape_cast %282 : vector<2x32xf32> to vector<1x1x2x32xf32>
    tpu.vector_store %arg5[%c0_153, %285, %c0_154, %c0_155], %288 {strides = array<i32>} : memref<1x8x2x32xf32, #tpu.memory_space<vmem>>, vector<1x1x2x32xf32>,
    %c8_i32 = arith.constant 8 : i32
    return
  }
  func.func @transform_0(%arg0: i32) -> (i32, i32) {
    %c0_i32 = arith.constant 0 : i32
    %c0_i32_0 = arith.constant 0 : i32
    %c0_i32_1 = arith.constant 0 : i32
    return %c0_i32, %c0_i32_0 : i32, i32
  }
  func.func @transform_1(%arg0: i32) -> (i32, i32, i32) {
    %c0_i32 = arith.constant 0 : i32
    %c0_i32_0 = arith.constant 0 : i32
    %c0_i32_1 = arith.constant 0 : i32
    return %arg0, %c0_i32, %c0_i32_0 : i32, i32, i32
  }
  func.func @transform_2(%arg0: i32) -> (i32, i32, i32) {
    %c0_i32 = arith.constant 0 : i32
    %c0_i32_0 = arith.constant 0 : i32
    %c0_i32_1 = arith.constant 0 : i32
    return %arg0, %c0_i32, %c0_i32_0 : i32, i32, i32
  }
  func.func @transform_3(%arg0: i32) -> (i32, i32, i32) {
    %c0_i32 = arith.constant 0 : i32
    %c0_i32_0 = arith.constant 0 : i32
    %c0_i32_1 = arith.constant 0 : i32
    return %arg0, %c0_i32, %c0_i32_0 : i32, i32, i32
  }
  func.func @transform_4(%arg0: i32) -> (i32, i32, i32, i32) {
    %c0_i32 = arith.constant 0 : i32
    %c0_i32_0 = arith.constant 0 : i32
    %c0_i32_1 = arith.constant 0 : i32
    %c0_i32_2 = arith.constant 0 : i32
    return %arg0, %c0_i32, %c0_i32_0, %c0_i32_1 : i32, i32, i32, i32
  }
}

</mosaic_0001>

<bundles_post_ra>
// kernel: seq_to_emb_forward.3
= control target key start
LH: loop header
LB: loop body
LE: loop exit
PB: predicated region body
PF: predicated region fallthrough
CT: control target
= control target key end

     0   :  { %s1411_s21 = smov 0   ;;  %s1670_s0 = inlined_call_operand.vmem [shape: f32[16,32], index: 0, kind: input, shape index: {}]   ;;  %s1671_s1 = inlined_call_operand.vmem [shape: f32[16,32], index: 1, kind: input, shape index: {}]   ;;  %s1672_s2 = inlined_call_operand.vmem [shape: f32[2,32,128], index: 2, kind: input, shape index: {}]   ;;  %s1673_s3 = inlined_call_operand.vmem [shape: f32[2,32,128], index: 3, kind: input, shape index: {}]   ;;  %s1674_s4 = inlined_call_operand.vmem [shape: f32[2,32,128], index: 4, kind: input, shape index: {}]   ;;  %s1675_s5 = inlined_call_operand.vmem [shape: f32[2,1,128], index: 5, kind: input, shape index: {}]   ;;  %s1676_s6 = inlined_call_operand.vmem [shape: f32[2,8,2,32], index: 6, kind: output, shape index: {}]  }
   0x1 LB: > { %s1417_s22 = sadd.s32 4294967295, %s1370_s21   ;;  %p1241_p0 = scmp.ge.s32.totalorder %s1370_s21, 1  ;;  %s1370_s21 = sphi %s1411_s21, %s16_s21  }
   0x2   : > { %p240_p1 = scmp.lt.s32.totalorder %s1370_s21, 3 }
   0x4   : > { %p241_p2 = pnand %p1241_p0, %p240_p1 }
   0x5   : > { %p283_p3 = scmp.lt.s32.totalorder (!%p241_p2), %s1417_s22, 1  ;;  %s1496_s26 = smul.u32 (!%p241_p2), 7, %s1417_s22 }
   0x6   : > { %244 = sbr.rel (%p241_p2) target bundleno = 4806 (0x12c6), region = 44  ;;  %s1374_s20 = smov (!%p241_p2), 32  }
   0x7   : > { %s1255_s18 = smul.u32 (!%p241_p2), 14, %s1417_s22 }
   0x9   : > { %s411_s19 = scalar_lea.vmem (!%p241_p2), [#allocation2], %s1255_s18 }
   0xb   : > { %vm398_vm0 = vcmask 254976   ;;  %s1423_s23 = scalar_select %p283_p3, %s1417_s22, 1  ;;  %v1372_v0 = vmov 0.0   ;;  %v312_v12 = vld [vmem:[%s1671_s1] sm:$0xff]  ;;  %vm318_vm1 = vcmask 261120   ;;  %v313_v16 = vld [vmem:[%s1671_s1 + $0x8] sm:$0xff] }
   0xc   : > { %399 = vst.msk [vmem:[#allocation3] sm:$0x3] %vm398_vm0, %v1372_v0  ;;  %v306_v14 = vld [vmem:[%s1670_s0] sm:$0xff]  ;;  %v307_v17 = vld [vmem:[%s1670_s0 + $0x8] sm:$0xff] }
   0xd   : > { %400 = vst.msk [vmem:[#allocation4] sm:$0x3] %vm398_vm0, %v1372_v0  ;;  %s1283_s24 = sshll.u32 %s1423_s23, 5  ;;  %s300_s14 = scalar_lea.vmem %s1675_s5, %s1423_s23 }
   0xe   : > { %s292_s27 = scalar_lea.vmem %s1673_s3, %s1283_s24  ;;  %s297_s30 = scalar_lea.vmem %s1674_s4, %s1283_s24  ;;  %v1299_v19 = vld [vmem:[%s300_s14] ss:$0 sm:$0xff] }
   0xf   : > { %v317_v1 = vld [vmem:[%s292_s27 + $0x18] sm:$0xff]  ;;  %s287_s9 = scalar_lea.vmem %s1672_s2, %s1283_s24  ;;  %v1437_v2 = vld [vmem:[%s297_s30 + $0x10] sm:$0xff]  ;;  %v315_v7 = vld [vmem:[%s292_s27 + $0x8] sm:$0xff]  ;;  %s1254_s24 = sshll.u32 %s1417_s22, 1 }
  0x10   : > { %337 = vmatpush.msra.mxu0 %v317_v1  ;;  %v1439_v3 = vld [vmem:[%s297_s30 + $0x18] sm:$0xff]  ;;  %v316_v5 = vld [vmem:[%s292_s27 + $0x10] sm:$0xff]  ;;  %v1442_v8 = vld [vmem:[%s297_s30 + $0x8] sm:$0xff]  ;;  %s1493_s25 = ssub.s32 1, %s1254_s24  ;;  %s1373_s14 = smov 64  }
  0x11   : > { %v311_v4 = vld [vmem:[%s287_s9 + $0x18] sm:$0xff]  ;;  %v310_v6 = vld [vmem:[%s287_s9 + $0x10] sm:$0xff]  ;;  %428 = vmatpush.msra.mxu2 %v1439_v3  ;;  %v309_v9 = vld [vmem:[%s287_s9 + $0x8] sm:$0xff]  ;;  %511 = vmatpush.msra.mxu3 %v1439_v3  ;;  %s657_s28 = smul.u32 3, %s1493_s25  ;;  %s1268_s7 = sshll.u32 %s1493_s25, 2 }
  0x12   : > { %366 = vmatpush.msra.mxu1 %v311_v4  ;;  %338 = vmatpush.msra.mxu0 %v316_v5  ;;  %v314_v10 = vld [vmem:[%s292_s27] sm:$0xff]  ;;  %s1261_s27 = sshll.u32 %s1493_s25, 1  ;;  %s1510_s8 = sadd.s32 %s1268_s7, %s1496_s26 }
  0x13   : > { %429 = vmatpush.msra.mxu2 %v1437_v2  ;;  %v308_v11 = vld [vmem:[%s287_s9] sm:$0xff]  ;;  %512 = vmatpush.msra.mxu3 %v1437_v2  ;;  %v408_v15 = vld [vmem:[#allocation3] sm:$0x3]  ;;  %s1502_s29 = sadd.s32 %s1261_s27, %s1496_s26  ;;  %s825_s9 = smul.u32 5, %s1493_s25 }
  0x14   : > { %367 = vmatpush.msra.mxu1 %v310_v6  ;;  %339 = vmatpush.msra.mxu0 %v315_v7  ;;  %v1454_v13 = vld [vmem:[%s297_s30] sm:$0xff]  ;;  %s1506_s30 = sadd.s32 %s657_s28, %s1496_s26  ;;  %s909_s10 = smul.u32 6, %s1493_s25  ;;  %v409_v31 = vld [vmem:[#allocation4] sm:$0x3] }
  0x15   : > { %430 = vmatpush.msra.mxu2 %v1442_v8  ;;  %513 = vmatpush.msra.mxu3 %v1442_v8  ;;  %s1515_s11 = sadd.s32 %s825_s9, %s1496_s26  ;;  %s993_s12 = smul.u32 7, %s1493_s25 }
  0x16   : > { %368 = vmatpush.msra.mxu1 %v309_v9  ;;  %340 = vmatpush.msra.mxu0 %v314_v10  ;;  %s1519_s13 = sadd.s32 %s909_s10, %s1496_s26  ;;  %s1375_s24 = smov 96  }
  0x17   : > { %1250 = vmatmul.msk.f32.vlgmr.msra.gmra.mxu0 %vm318_vm1, %v312_v12  ;;  %431 = vmatpush.msra.mxu2 %v1454_v13  ;;  %s1522_s15 = sadd.s32 %s993_s12, %s1496_s26  ;;  %s1286_s27 = sshll.u32 %s1423_s23, 4 }
  0x18   : > { %369 = vmatpush.msra.mxu1 %v308_v11  ;;  %1256 = vmatmul.msk.f32.vlgmr.msra.gmra.mxu2 %vm318_vm1, %v408_v15  ;;  %s1542_s9 = scalar_lea.vmem %s1676_s6, %s1286_s27  ;;  %s490_s22 = sadd.s32 %s1493_s25, %s1496_s26 }
  0x19   : > { %1252 = vmatmul.msk.f32.vlgmr.msra.gmra.mxu1 %vm318_vm1, %v306_v14  ;;  %514 = vmatpush.msra.mxu3 %v1454_v13  ;;  %s488_s10 = scalar_lea.vmem %s1542_s9, %s1255_s18  ;;  %s1558_s23 = sshll.u32 %s490_s22, 1 }
  0x1a   : > { %595 = vmatpush.msrb.mxu2 %v1439_v3  ;;  %763 = vmatpush.msrb.mxu0 %v1439_v3  ;;  %s494_s12 = scalar_lea.vmem [#allocation2], %s1558_s23  ;;  %s571_s25 = scalar_lea.vmem %s1542_s9, %s1558_s23 }
  0x1b   : > { %679 = vmatpush.msrb.mxu3 %v1439_v3  ;;  %847 = vmatpush.msrb.mxu1 %v1439_v3  ;;  %s1262_s26 = sshll.u32 %s1502_s29, 1  ;;  %s1265_s18 = sshll.u32 %s1506_s30, 1 }
  0x1c   : > { %596 = vmatpush.msrb.mxu2 %v1437_v2  ;;  %764 = vmatpush.msrb.mxu0 %v1437_v2  ;;  %s578_s16 = scalar_lea.vmem [#allocation2], %s1262_s26  ;;  %s655_s17 = scalar_lea.vmem %s1542_s9, %s1262_s26 }
  0x1d   : > { %680 = vmatpush.msrb.mxu3 %v1437_v2  ;;  %848 = vmatpush.msrb.mxu1 %v1437_v2  ;;  %s739_s29 = scalar_lea.vmem %s1542_s9, %s1265_s18  ;;  %s1269_s27 = sshll.u32 %s1510_s8, 1 }
  0x1e   : > { %597 = vmatpush.msrb.mxu2 %v1442_v8  ;;  %765 = vmatpush.msrb.mxu0 %v1442_v8  ;;  %s746_s28 = scalar_lea.vmem [#allocation2], %s1269_s27  ;;  %s823_s30 = scalar_lea.vmem %s1542_s9, %s1269_s27 }
  0x1f   : > { %681 = vmatpush.msrb.mxu3 %v1442_v8  ;;  %1251 = vmatmul.msk.f32.gmra.mxu0 %vm318_vm1, %v313_v16  ;;  %s1272_s7 = sshll.u32 %s1515_s11, 1  ;;  %s1275_s22 = sshll.u32 %s1519_s13, 1 }
  0x20   : > { %849 = vmatpush.msrb.mxu1 %v1442_v8  ;;  %598 = vmatpush.msrb.mxu2 %v1454_v13  ;;  %s907_s8 = scalar_lea.vmem %s1542_s9, %s1272_s7  ;;  %s914_s23 = scalar_lea.vmem [#allocation2], %s1275_s22 }
  0x21   : > { %1253 = vmatmul.msk.f32.gmra.mxu1 %vm318_vm1, %v307_v17  ;;  %682 = vmatpush.msrb.mxu3 %v1454_v13  ;;  %s991_s11 = scalar_lea.vmem %s1542_s9, %s1275_s22 }
  0x22   : > { %850 = vmatpush.msrb.mxu1 %v1454_v13  ;;  %931 = vmatpush.msra.mxu2 %v1439_v3 }
  0x23   : > { %766 = vmatpush.msrb.mxu0 %v1454_v13 }
  0x24   : > { %932 = vmatpush.msra.mxu2 %v1437_v2 }
  0x26   : > { %933 = vmatpush.msra.mxu2 %v1442_v8 }
  0x28   : > { %934 = vmatpush.msra.mxu2 %v1454_v13 }
  0x94   : > { %v342_v18 = vpop.f32.mrf.mxu0 }
  0x96   : > { %v371_v20 = vpop.f32.mrf.mxu1 }
  0x97   : > { %v372_v21 = vadd.f32 %v371_v20, %v342_v18 }
  0x99   : > { %v381_v22 = vadd.f32 %v1299_v19, %v372_v21 }
  0x9b   : > { %383 = vst [vmem:[#allocation2] sm:$0xf] %v381_v22   ;;  %v433_v27 = vpop.f32.mrf.mxu2 }
  0x9c   : > { %387 = vst [vmem:[#allocation2] sm:$0xf0] %v381_v22   ;;  %v345_v23 = vpop.f32.mrf.mxu0 }
  0x9e   : > { %v374_v24 = vpop.f32.mrf.mxu1 }
  0x9f   : > { %v375_v25 = vadd.f32 %v374_v24, %v345_v23 }
  0xa1   : > { %v382_v26 = vadd.f32 %v1299_v19, %v375_v25 }
  0xa3   : > { %391 = vst [vmem:[#allocation2 + $0x8] sm:$0xf] %v382_v26  }
  0xa4   : > { %395 = vst [vmem:[#allocation2 + $0x8] sm:$0xf0] %v382_v26  }
  0xab   : > { %v412_v28 = vld [vmem:[%s411_s19] sm:$0x3]  ;;  %s662_s19 = scalar_lea.vmem [#allocation2], %s1265_s18 }
  0xac   : > { %v436_v29 = vadd.f32 %v433_v27, %v412_v28  ;;  %v495_v58 = vld [vmem:[%s494_s12] sm:$0x3]  ;;  %s1278_s12 = sshll.u32 %s1522_s15, 1 }
  0xad   : > { %v579_v24 = vld [vmem:[%s578_s16] sm:$0x3]  ;;  %s1075_s13 = scalar_lea.vmem %s1542_s9, %s1278_s12 }
  0xae   : > { %1300 = vtanh.f32 %v436_v29  ;;  %v1257_v32 = vmul.f32 -1.442695, %v436_v29 }
  0xb0   : > { %1302 = vpow2.f32 %v1257_v32 }
  0xb4   : > { %v1301_v30 = vpop.eup %1300 }
  0xb5   : > { %463 = vrot.lane.b32.xlu0 %v1301_v30, %s1373_s14 }
  0xb6   : > { %v1303_v33 = vpop.eup %1302 }
  0xb7   : > { %v440_v34 = vadd.f32 1.0, %v1303_v33 }
  0xb9   : > { %1304 = vrcp.f32 %v440_v34  ;;  %v452_v40 = vand.u32 2147483648, %v440_v34  ;;  %vm446_vm3 = vweird.f32 %v440_v34  ;;  %v450_v41 = vand.u32 2147483647, %v440_v34 }
  0xbb   : > { %v453_v43 = vor.u32 1.1754944e-38, %v452_v40  ;;  %vm451_vm5 = vcmp.eq.f32.partialorder %v450_v41, 8.507059e+37 }
  0xbd   : > { %458 = vrot.lane.b32.xlu0 %v409_v31, %s1374_s20 }
  0xbf   : > { %v1305_v35 = vpop.eup %1304 }
  0xc0   : > { %v442_v36 = vmul.f32 %v1305_v35, %v440_v34  ;;  %vm447_vm2 = vweird.f32 %v1305_v35 }
  0xc1   : > { %vm448_vm4 = vmor %vm446_vm3, %vm447_vm2 }
  0xc2   : > { %v443_v37 = vsub.f32 1.0, %v442_v36 }
  0xc4   : > { %v444_v38 = vmul.f32 %v1305_v35, %v443_v37 }
  0xc6   : > { %v445_v39 = vadd.f32 %v1305_v35, %v444_v38 }
  0xc8   : > { %v449_v42 = vsel %vm448_vm4, %v1305_v35, %v445_v39 }
  0xc9   : > { %v454_v45 = vsel %vm451_vm5, %v453_v43, %v449_v42 }
 0x127   : > { %v464_v44 = vpop.permute.xlu0 %463 }
 0x128   : > { %v466_v46 = vmul.f32 %v464_v44, %v454_v45 }
 0x12a   : > { %468 = vrot.lane.b32.xlu1 %v466_v46, %s1374_s20 }
 0x12f   : > { %v459_v47 = vpop.permute.xlu0 %458 }
 0x130   : > { %v461_v48 = vmul.f32 %v459_v47, %v454_v45 }
 0x19c   : > { %v469_v49 = vpop.permute.xlu1 %468 }
 0x19d   : > { %v471_v50 = vadd.f32 %v469_v49, %v461_v48 }
 0x19f   : > { %1306 = vtanh.f32 %v471_v50 }
 0x1a5   : > { %v1307_v51 = vpop.eup %1306 }
 0x1a6   : > { %474 = vrot.lane.b32.xlu1 %v1307_v51, %s1373_s14 }
 0x218   : > { %v475_v52 = vpop.permute.xlu1 %474 }
 0x219   : > { %v477_v53 = vmul.f32 %v475_v52, %v454_v45 }
 0x21b   : > { %479 = vrot.lane.b32.xlu2 %v477_v53, %s1374_s20 }
 0x223   : > { %484 = vrot.lane.b32.xlu2 %v471_v50, %s1375_s24 }
 0x275   : > { %v480_v54 = vpop.permute.xlu2 %479 }
 0x276   : > { %482 = vst.msk [vmem:[#allocation3] sm:$0x3] %vm398_vm0, %v480_v54 }
 0x277   : > { %489 = vst.msk [vmem:[%s488_s10] sm:$0x3] %vm398_vm0, %v480_v54  ;;  %v663_v54 = vld [vmem:[%s662_s19] sm:$0x3]  ;;  %s830_s10 = scalar_lea.vmem [#allocation2], %s1272_s7 }
 0x27d   : > { %v485_v55 = vpop.permute.xlu2 %484  ;;  %v491_v56 = vld [vmem:[#allocation3] sm:$0x3] }
 0x27e   : > { %487 = vst.msk [vmem:[#allocation4] sm:$0x3] %vm398_vm0, %v485_v55  ;;  %1259 = vmatmul.msk.f32.vlgmr.msra.gmra.mxu3 %vm318_vm1, %v491_v56 }
 0x27f   : > { %1015 = vmatpush.msra.mxu3 %v1439_v3 }
 0x281   : > { %1016 = vmatpush.msra.mxu3 %v1437_v2 }
 0x283   : > { %1017 = vmatpush.msra.mxu3 %v1442_v8 }
 0x285   : > { %v492_v57 = vld [vmem:[#allocation4] sm:$0x3]  ;;  %1018 = vmatpush.msra.mxu3 %v1454_v13 }
 0x286   : > { %541 = vrot.lane.b32.xlu1 %v492_v57, %s1374_s20 }
 0x2f8   : > { %v542_v13 = vpop.permute.xlu1 %541 }
 0x301   : > { %v516_v59 = vpop.f32.mrf.mxu3 }
 0x302   : > { %v519_v60 = vadd.f32 %v516_v59, %v495_v58 }
 0x304   : > { %1308 = vtanh.f32 %v519_v60  ;;  %v1260_v62 = vmul.f32 -1.442695, %v519_v60 }
 0x306   : > { %1310 = vpow2.f32 %v1260_v62 }
 0x30a   : > { %v1309_v61 = vpop.eup %1308 }
 0x30b   : > { %546 = vrot.lane.b32.xlu0 %v1309_v61, %s1373_s14 }
 0x30c   : > { %v1311_v63 = vpop.eup %1310 }
 0x30d   : > { %v523_v0 = vadd.f32 1.0, %v1311_v63 }
 0x30f   : > { %1312 = vrcp.f32 %v523_v0  ;;  %v535_v6 = vand.u32 2147483648, %v523_v0  ;;  %vm529_vm7 = vweird.f32 %v523_v0  ;;  %v533_v7 = vand.u32 2147483647, %v523_v0 }
 0x311   : > { %v536_v9 = vor.u32 1.1754944e-38, %v535_v6  ;;  %vm534_vm9 = vcmp.eq.f32.partialorder %v533_v7, 8.507059e+37 }
 0x315   : > { %v1313_v1 = vpop.eup %1312 }
 0x316   : > { %v525_v2 = vmul.f32 %v1313_v1, %v523_v0  ;;  %vm530_vm6 = vweird.f32 %v1313_v1 }
 0x317   : > { %vm531_vm8 = vmor %vm529_vm7, %vm530_vm6 }
 0x318   : > { %v526_v3 = vsub.f32 1.0, %v525_v2 }
 0x31a   : > { %v527_v4 = vmul.f32 %v1313_v1, %v526_v3 }
 0x31c   : > { %v528_v5 = vadd.f32 %v1313_v1, %v527_v4 }
 0x31e   : > { %v532_v8 = vsel %vm531_vm8, %v1313_v1, %v528_v5 }
 0x31f   : > { %v537_v11 = vsel %vm534_vm9, %v536_v9, %v532_v8 }
 0x320   : > { %v544_v14 = vmul.f32 %v542_v13, %v537_v11 }
 0x37d   : > { %v547_v10 = vpop.permute.xlu0 %546 }
 0x37e   : > { %v549_v12 = vmul.f32 %v547_v10, %v537_v11 }
 0x380   : > { %551 = vrot.lane.b32.xlu2 %v549_v12, %s1374_s20 }
 0x3da   : > { %v552_v15 = vpop.permute.xlu2 %551 }
 0x3db   : > { %v554_v16 = vadd.f32 %v552_v15, %v544_v14 }
 0x3dd   : > { %1314 = vtanh.f32 %v554_v16  ;;  %567 = vrot.lane.b32.xlu2 %v554_v16, %s1375_s24 }
 0x3e3   : > { %v1315_v17 = vpop.eup %1314 }
 0x3e4   : > { %557 = vrot.lane.b32.xlu0 %v1315_v17, %s1373_s14 }
 0x437   : > { %v568_v18 = vpop.permute.xlu2 %567 }
 0x438   : > { %570 = vst.msk [vmem:[#allocation4] sm:$0x3] %vm398_vm0, %v568_v18 }
 0x43f   : > { %v576_v21 = vld [vmem:[#allocation4] sm:$0x3] }
 0x456   : > { %v558_v19 = vpop.permute.xlu0 %557 }
 0x457   : > { %v560_v20 = vmul.f32 %v558_v19, %v537_v11 }
 0x459   : > { %562 = vrot.lane.b32.xlu1 %v560_v20, %s1374_s20  ;;  %v747_v20 = vld [vmem:[%s746_s28] sm:$0x3] }
 0x461   : > { %625 = vrot.lane.b32.xlu1 %v576_v21, %s1374_s20 }
 0x4cb   : > { %v563_v22 = vpop.permute.xlu1 %562 }
 0x4cc   : > { %565 = vst.msk [vmem:[#allocation3] sm:$0x3] %vm398_vm0, %v563_v22 }
 0x4cd   : > { %572 = vst.msk [vmem:[%s571_s25] sm:$0x3] %vm398_vm0, %v563_v22  ;;  %s998_s25 = scalar_lea.vmem [#allocation2], %s1278_s12 }
 0x4d3   : > { %v575_v23 = vld [vmem:[#allocation3] sm:$0x3]  ;;  %v626_v43 = vpop.permute.xlu1 %625 }
 0x4d4   : > { %1263 = vmatmul.msk.f32.vlgmr.msrb.gmra.mxu2 %vm318_vm1, %v575_v23 }
 0x557   : > { %v600_v25 = vpop.f32.mrf.mxu2 }
 0x558   : > { %v603_v26 = vadd.f32 %v600_v25, %v579_v24 }
 0x55a   : > { %1316 = vtanh.f32 %v603_v26  ;;  %v1264_v28 = vmul.f32 -1.442695, %v603_v26 }
 0x55c   : > { %1318 = vpow2.f32 %v1264_v28 }
 0x560   : > { %v1317_v27 = vpop.eup %1316 }
 0x561   : > { %630 = vrot.lane.b32.xlu0 %v1317_v27, %s1373_s14 }
 0x562   : > { %v1319_v29 = vpop.eup %1318 }
 0x563   : > { %v607_v30 = vadd.f32 1.0, %v1319_v29 }
 0x565   : > { %1320 = vrcp.f32 %v607_v30  ;;  %v619_v36 = vand.u32 2147483648, %v607_v30  ;;  %vm613_vm11 = vweird.f32 %v607_v30  ;;  %v617_v37 = vand.u32 2147483647, %v607_v30 }
 0x567   : > { %v620_v39 = vor.u32 1.1754944e-38, %v619_v36  ;;  %vm618_vm13 = vcmp.eq.f32.partialorder %v617_v37, 8.507059e+37 }
 0x56b   : > { %v1321_v31 = vpop.eup %1320 }
 0x56c   : > { %v609_v32 = vmul.f32 %v1321_v31, %v607_v30  ;;  %vm614_vm10 = vweird.f32 %v1321_v31 }
 0x56d   : > { %vm615_vm12 = vmor %vm613_vm11, %vm614_vm10 }
 0x56e   : > { %v610_v33 = vsub.f32 1.0, %v609_v32 }
 0x570   : > { %v611_v34 = vmul.f32 %v1321_v31, %v610_v33 }
 0x572   : > { %v612_v35 = vadd.f32 %v1321_v31, %v611_v34 }
 0x574   : > { %v616_v38 = vsel %vm615_vm12, %v1321_v31, %v612_v35 }
 0x575   : > { %v621_v41 = vsel %vm618_vm13, %v620_v39, %v616_v38 }
 0x576   : > { %v628_v44 = vmul.f32 %v626_v43, %v621_v41 }
 0x5d3   : > { %v631_v40 = vpop.permute.xlu0 %630 }
 0x5d4   : > { %v633_v42 = vmul.f32 %v631_v40, %v621_v41 }
 0x5d6   : > { %635 = vrot.lane.b32.xlu2 %v633_v42, %s1374_s20 }
 0x630   : > { %v636_v45 = vpop.permute.xlu2 %635 }
 0x631   : > { %v638_v46 = vadd.f32 %v636_v45, %v628_v44 }
 0x633   : > { %1322 = vtanh.f32 %v638_v46  ;;  %651 = vrot.lane.b32.xlu2 %v638_v46, %s1375_s24 }
 0x639   : > { %v1323_v47 = vpop.eup %1322 }
 0x63a   : > { %641 = vrot.lane.b32.xlu0 %v1323_v47, %s1373_s14 }
 0x68d   : > { %v652_v48 = vpop.permute.xlu2 %651 }
 0x68e   : > { %654 = vst.msk [vmem:[#allocation4] sm:$0x3] %vm398_vm0, %v652_v48 }
 0x695   : > { %v660_v51 = vld [vmem:[#allocation4] sm:$0x3] }
 0x6ac   : > { %v642_v49 = vpop.permute.xlu0 %641 }
 0x6ad   : > { %v644_v50 = vmul.f32 %v642_v49, %v621_v41 }
 0x6af   : > { %646 = vrot.lane.b32.xlu1 %v644_v50, %s1374_s20  ;;  %v831_v50 = vld [vmem:[%s830_s10] sm:$0x3] }
 0x6b7   : > { %709 = vrot.lane.b32.xlu1 %v660_v51, %s1374_s20 }
 0x721   : > { %v647_v52 = vpop.permute.xlu1 %646 }
 0x722   : > { %649 = vst.msk [vmem:[#allocation3] sm:$0x3] %vm398_vm0, %v647_v52 }
 0x723   : > { %656 = vst.msk [vmem:[%s655_s17] sm:$0x3] %vm398_vm0, %v647_v52 }
 0x729   : > { %v659_v53 = vld [vmem:[#allocation3] sm:$0x3]  ;;  %v710_v9 = vpop.permute.xlu1 %709 }
 0x72a   : > { %1266 = vmatmul.msk.f32.vlgmr.msrb.gmra.mxu3 %vm318_vm1, %v659_v53 }
 0x7ad   : > { %v684_v55 = vpop.f32.mrf.mxu3 }
 0x7ae   : > { %v687_v56 = vadd.f32 %v684_v55, %v663_v54 }
 0x7b0   : > { %1324 = vtanh.f32 %v687_v56  ;;  %v1267_v58 = vmul.f32 -1.442695, %v687_v56 }
 0x7b2   : > { %1326 = vpow2.f32 %v1267_v58 }
 0x7b6   : > { %v1325_v57 = vpop.eup %1324 }
 0x7b7   : > { %714 = vrot.lane.b32.xlu0 %v1325_v57, %s1373_s14 }
 0x7b8   : > { %v1327_v59 = vpop.eup %1326 }
 0x7b9   : > { %v691_v60 = vadd.f32 1.0, %v1327_v59 }
 0x7bb   : > { %1328 = vrcp.f32 %v691_v60  ;;  %v703_v2 = vand.u32 2147483648, %v691_v60  ;;  %vm697_vm15 = vweird.f32 %v691_v60  ;;  %v701_v3 = vand.u32 2147483647, %v691_v60 }
 0x7bd   : > { %v704_v5 = vor.u32 1.1754944e-38, %v703_v2  ;;  %vm702_vm3 = vcmp.eq.f32.partialorder %v701_v3, 8.507059e+37 }
 0x7c1   : > { %v1329_v61 = vpop.eup %1328 }
 0x7c2   : > { %v693_v62 = vmul.f32 %v1329_v61, %v691_v60  ;;  %vm698_vm14 = vweird.f32 %v1329_v61 }
 0x7c3   : > { %vm699_vm2 = vmor %vm697_vm15, %vm698_vm14 }
 0x7c4   : > { %v694_v63 = vsub.f32 1.0, %v693_v62 }
 0x7c6   : > { %v695_v0 = vmul.f32 %v1329_v61, %v694_v63 }
 0x7c8   : > { %v696_v1 = vadd.f32 %v1329_v61, %v695_v0 }
 0x7ca   : > { %v700_v4 = vsel %vm699_vm2, %v1329_v61, %v696_v1 }
 0x7cb   : > { %v705_v7 = vsel %vm702_vm3, %v704_v5, %v700_v4 }
 0x7cc   : > { %v712_v10 = vmul.f32 %v710_v9, %v705_v7 }
 0x829   : > { %v715_v6 = vpop.permute.xlu0 %714 }
 0x82a   : > { %v717_v8 = vmul.f32 %v715_v6, %v705_v7 }
 0x82c   : > { %719 = vrot.lane.b32.xlu2 %v717_v8, %s1374_s20 }
 0x886   : > { %v720_v11 = vpop.permute.xlu2 %719 }
 0x887   : > { %v722_v12 = vadd.f32 %v720_v11, %v712_v10 }
 0x889   : > { %1330 = vtanh.f32 %v722_v12  ;;  %735 = vrot.lane.b32.xlu2 %v722_v12, %s1375_s24 }
 0x88f   : > { %v1331_v13 = vpop.eup %1330 }
 0x890   : > { %725 = vrot.lane.b32.xlu0 %v1331_v13, %s1373_s14 }
 0x8e3   : > { %v736_v14 = vpop.permute.xlu2 %735 }
 0x8e4   : > { %738 = vst.msk [vmem:[#allocation4] sm:$0x3] %vm398_vm0, %v736_v14 }
 0x8eb   : > { %v744_v17 = vld [vmem:[#allocation4] sm:$0x3] }
 0x902   : > { %v726_v15 = vpop.permute.xlu0 %725 }
 0x903   : > { %v728_v16 = vmul.f32 %v726_v15, %v705_v7 }
 0x905   : > { %730 = vrot.lane.b32.xlu1 %v728_v16, %s1374_s20  ;;  %v915_v16 = vld [vmem:[%s914_s23] sm:$0x3] }
 0x90d   : > { %793 = vrot.lane.b32.xlu1 %v744_v17, %s1374_s20 }
 0x977   : > { %v731_v18 = vpop.permute.xlu1 %730 }
 0x978   : > { %733 = vst.msk [vmem:[#allocation3] sm:$0x3] %vm398_vm0, %v731_v18 }
 0x979   : > { %740 = vst.msk [vmem:[%s739_s29] sm:$0x3] %vm398_vm0, %v731_v18 }
 0x97f   : > { %v743_v19 = vld [vmem:[#allocation3] sm:$0x3]  ;;  %v794_v39 = vpop.permute.xlu1 %793 }
 0x980   : > { %1270 = vmatmul.msk.f32.vlgmr.msrb.gmra.mxu0 %vm318_vm1, %v743_v19 }
 0x9fd   : > { %v768_v21 = vpop.f32.mrf.mxu0 }
 0x9fe   : > { %v771_v22 = vadd.f32 %v768_v21, %v747_v20 }
 0xa00   : > { %1332 = vtanh.f32 %v771_v22  ;;  %v1271_v24 = vmul.f32 -1.442695, %v771_v22 }
 0xa02   : > { %1334 = vpow2.f32 %v1271_v24 }
 0xa06   : > { %v1333_v23 = vpop.eup %1332 }
 0xa07   : > { %798 = vrot.lane.b32.xlu0 %v1333_v23, %s1373_s14 }
 0xa08   : > { %v1335_v25 = vpop.eup %1334 }
 0xa09   : > { %v775_v26 = vadd.f32 1.0, %v1335_v25 }
 0xa0b   : > { %1336 = vrcp.f32 %v775_v26  ;;  %v787_v32 = vand.u32 2147483648, %v775_v26  ;;  %vm781_vm5 = vweird.f32 %v775_v26  ;;  %v785_v33 = vand.u32 2147483647, %v775_v26 }
 0xa0d   : > { %v788_v35 = vor.u32 1.1754944e-38, %v787_v32  ;;  %vm786_vm7 = vcmp.eq.f32.partialorder %v785_v33, 8.507059e+37 }
 0xa11   : > { %v1337_v27 = vpop.eup %1336 }
 0xa12   : > { %v777_v28 = vmul.f32 %v1337_v27, %v775_v26  ;;  %vm782_vm4 = vweird.f32 %v1337_v27 }
 0xa13   : > { %vm783_vm6 = vmor %vm781_vm5, %vm782_vm4 }
 0xa14   : > { %v778_v29 = vsub.f32 1.0, %v777_v28 }
 0xa16   : > { %v779_v30 = vmul.f32 %v1337_v27, %v778_v29 }
 0xa18   : > { %v780_v31 = vadd.f32 %v1337_v27, %v779_v30 }
 0xa1a   : > { %v784_v34 = vsel %vm783_vm6, %v1337_v27, %v780_v31 }
 0xa1b   : > { %v789_v37 = vsel %vm786_vm7, %v788_v35, %v784_v34 }
 0xa1c   : > { %v796_v40 = vmul.f32 %v794_v39, %v789_v37 }
 0xa79   : > { %v799_v36 = vpop.permute.xlu0 %798 }
 0xa7a   : > { %v801_v38 = vmul.f32 %v799_v36, %v789_v37 }
 0xa7c   : > { %803 = vrot.lane.b32.xlu2 %v801_v38, %s1374_s20 }
 0xad6   : > { %v804_v41 = vpop.permute.xlu2 %803 }
 0xad7   : > { %v806_v42 = vadd.f32 %v804_v41, %v796_v40 }
 0xad9   : > { %1338 = vtanh.f32 %v806_v42  ;;  %819 = vrot.lane.b32.xlu2 %v806_v42, %s1375_s24 }
 0xadf   : > { %v1339_v43 = vpop.eup %1338 }
 0xae0   : > { %809 = vrot.lane.b32.xlu0 %v1339_v43, %s1373_s14 }
 0xb33   : > { %v820_v44 = vpop.permute.xlu2 %819 }
 0xb34   : > { %822 = vst.msk [vmem:[#allocation4] sm:$0x3] %vm398_vm0, %v820_v44 }
 0xb3b   : > { %v828_v47 = vld [vmem:[#allocation4] sm:$0x3] }
 0xb52   : > { %v810_v45 = vpop.permute.xlu0 %809 }
 0xb53   : > { %v812_v46 = vmul.f32 %v810_v45, %v789_v37 }
 0xb55   : > { %814 = vrot.lane.b32.xlu1 %v812_v46, %s1374_s20  ;;  %v999_v46 = vld [vmem:[%s998_s25] sm:$0x3] }
 0xb5d   : > { %877 = vrot.lane.b32.xlu1 %v828_v47, %s1374_s20 }
 0xbc7   : > { %v815_v48 = vpop.permute.xlu1 %814 }
 0xbc8   : > { %817 = vst.msk [vmem:[#allocation3] sm:$0x3] %vm398_vm0, %v815_v48 }
 0xbc9   : > { %824 = vst.msk [vmem:[%s823_s30] sm:$0x3] %vm398_vm0, %v815_v48 }
 0xbcf   : > { %v827_v49 = vld [vmem:[#allocation3] sm:$0x3]  ;;  %v878_v5 = vpop.permute.xlu1 %877 }
 0xbd0   : > { %1273 = vmatmul.msk.f32.vlgmr.msrb.gmra.mxu1 %vm318_vm1, %v827_v49 }
 0xc4d   : > { %v852_v51 = vpop.f32.mrf.mxu1 }
 0xc4e   : > { %v855_v52 = vadd.f32 %v852_v51, %v831_v50 }
 0xc50   : > { %1340 = vtanh.f32 %v855_v52  ;;  %v1274_v54 = vmul.f32 -1.442695, %v855_v52 }
 0xc52   : > { %1342 = vpow2.f32 %v1274_v54 }
 0xc56   : > { %v1341_v53 = vpop.eup %1340 }
 0xc57   : > { %882 = vrot.lane.b32.xlu0 %v1341_v53, %s1373_s14 }
 0xc58   : > { %v1343_v55 = vpop.eup %1342 }
 0xc59   : > { %v859_v56 = vadd.f32 1.0, %v1343_v55 }
 0xc5b   : > { %1344 = vrcp.f32 %v859_v56  ;;  %v871_v62 = vand.u32 2147483648, %v859_v56  ;;  %vm865_vm9 = vweird.f32 %v859_v56  ;;  %v869_v63 = vand.u32 2147483647, %v859_v56 }
 0xc5d   : > { %v872_v1 = vor.u32 1.1754944e-38, %v871_v62  ;;  %vm870_vm11 = vcmp.eq.f32.partialorder %v869_v63, 8.507059e+37 }
 0xc61   : > { %v1345_v57 = vpop.eup %1344 }
 0xc62   : > { %v861_v58 = vmul.f32 %v1345_v57, %v859_v56  ;;  %vm866_vm8 = vweird.f32 %v1345_v57 }
 0xc63   : > { %vm867_vm10 = vmor %vm865_vm9, %vm866_vm8 }
 0xc64   : > { %v862_v59 = vsub.f32 1.0, %v861_v58 }
 0xc66   : > { %v863_v60 = vmul.f32 %v1345_v57, %v862_v59 }
 0xc68   : > { %v864_v61 = vadd.f32 %v1345_v57, %v863_v60 }
 0xc6a   : > { %v868_v0 = vsel %vm867_vm10, %v1345_v57, %v864_v61 }
 0xc6b   : > { %v873_v3 = vsel %vm870_vm11, %v872_v1, %v868_v0 }
 0xc6c   : > { %v880_v6 = vmul.f32 %v878_v5, %v873_v3 }
 0xcc9   : > { %v883_v2 = vpop.permute.xlu0 %882 }
 0xcca   : > { %v885_v4 = vmul.f32 %v883_v2, %v873_v3 }
 0xccc   : > { %887 = vrot.lane.b32.xlu2 %v885_v4, %s1374_s20 }
 0xd26   : > { %v888_v7 = vpop.permute.xlu2 %887 }
 0xd27   : > { %v890_v8 = vadd.f32 %v888_v7, %v880_v6 }
 0xd29   : > { %1346 = vtanh.f32 %v890_v8  ;;  %903 = vrot.lane.b32.xlu2 %v890_v8, %s1375_s24 }
 0xd2f   : > { %v1347_v9 = vpop.eup %1346 }
 0xd30   : > { %893 = vrot.lane.b32.xlu0 %v1347_v9, %s1373_s14 }
 0xd83   : > { %v904_v10 = vpop.permute.xlu2 %903 }
 0xd84   : > { %906 = vst.msk [vmem:[#allocation4] sm:$0x3] %vm398_vm0, %v904_v10 }
 0xd8b   : > { %v912_v13 = vld [vmem:[#allocation4] sm:$0x3] }
 0xda2   : > { %v894_v11 = vpop.permute.xlu0 %893 }
 0xda3   : > { %v896_v12 = vmul.f32 %v894_v11, %v873_v3 }
 0xda5   : > { %898 = vrot.lane.b32.xlu1 %v896_v12, %s1374_s20 }
 0xdad   : > { %961 = vrot.lane.b32.xlu1 %v912_v13, %s1374_s20 }
 0xe17   : > { %v899_v14 = vpop.permute.xlu1 %898 }
 0xe18   : > { %901 = vst.msk [vmem:[#allocation3] sm:$0x3] %vm398_vm0, %v899_v14 }
 0xe19   : > { %908 = vst.msk [vmem:[%s907_s8] sm:$0x3] %vm398_vm0, %v899_v14 }
 0xe1f   : > { %v911_v15 = vld [vmem:[#allocation3] sm:$0x3]  ;;  %v962_v35 = vpop.permute.xlu1 %961 }
 0xe20   : > { %1276 = vmatmul.msk.f32.vlgmr.msra.gmra.mxu2 %vm318_vm1, %v911_v15 }
 0xea3   : > { %v936_v17 = vpop.f32.mrf.mxu2 }
 0xea4   : > { %v939_v18 = vadd.f32 %v936_v17, %v915_v16 }
 0xea6   : > { %1348 = vtanh.f32 %v939_v18  ;;  %v1277_v20 = vmul.f32 -1.442695, %v939_v18 }
 0xea8   : > { %1350 = vpow2.f32 %v1277_v20 }
 0xeac   : > { %v1349_v19 = vpop.eup %1348 }
 0xead   : > { %966 = vrot.lane.b32.xlu0 %v1349_v19, %s1373_s14 }
 0xeae   : > { %v1351_v21 = vpop.eup %1350 }
 0xeaf   : > { %v943_v22 = vadd.f32 1.0, %v1351_v21 }
 0xeb1   : > { %1352 = vrcp.f32 %v943_v22  ;;  %v955_v28 = vand.u32 2147483648, %v943_v22  ;;  %vm949_vm13 = vweird.f32 %v943_v22  ;;  %v953_v29 = vand.u32 2147483647, %v943_v22 }
 0xeb3   : > { %v956_v31 = vor.u32 1.1754944e-38, %v955_v28  ;;  %vm954_vm15 = vcmp.eq.f32.partialorder %v953_v29, 8.507059e+37 }
 0xeb7   : > { %v1353_v23 = vpop.eup %1352 }
 0xeb8   : > { %v945_v24 = vmul.f32 %v1353_v23, %v943_v22  ;;  %vm950_vm12 = vweird.f32 %v1353_v23 }
 0xeb9   : > { %vm951_vm14 = vmor %vm949_vm13, %vm950_vm12 }
 0xeba   : > { %v946_v25 = vsub.f32 1.0, %v945_v24 }
 0xebc   : > { %v947_v26 = vmul.f32 %v1353_v23, %v946_v25 }
 0xebe   : > { %v948_v27 = vadd.f32 %v1353_v23, %v947_v26 }
 0xec0   : > { %v952_v30 = vsel %vm951_vm14, %v1353_v23, %v948_v27 }
 0xec1   : > { %v957_v33 = vsel %vm954_vm15, %v956_v31, %v952_v30 }
 0xec2   : > { %v964_v36 = vmul.f32 %v962_v35, %v957_v33 }
 0xf1f   : > { %v967_v32 = vpop.permute.xlu0 %966 }
 0xf20   : > { %v969_v34 = vmul.f32 %v967_v32, %v957_v33 }
 0xf22   : > { %971 = vrot.lane.b32.xlu2 %v969_v34, %s1374_s20 }
 0xf7c   : > { %v972_v37 = vpop.permute.xlu2 %971 }
 0xf7d   : > { %v974_v38 = vadd.f32 %v972_v37, %v964_v36 }
 0xf7f   : > { %1354 = vtanh.f32 %v974_v38  ;;  %987 = vrot.lane.b32.xlu2 %v974_v38, %s1375_s24 }
 0xf85   : > { %v1355_v39 = vpop.eup %1354 }
 0xf86   : > { %977 = vrot.lane.b32.xlu0 %v1355_v39, %s1373_s14 }
 0xfd9   : > { %v988_v40 = vpop.permute.xlu2 %987 }
 0xfda   : > { %990 = vst.msk [vmem:[#allocation4] sm:$0x3] %vm398_vm0, %v988_v40 }
 0xfe1   : > { %v996_v43 = vld [vmem:[#allocation4] sm:$0x3] }
 0xff8   : > { %v978_v41 = vpop.permute.xlu0 %977 }
 0xff9   : > { %v980_v42 = vmul.f32 %v978_v41, %v957_v33 }
 0xffb   : > { %982 = vrot.lane.b32.xlu1 %v980_v42, %s1374_s20 }
0x1003   : > { %1045 = vrot.lane.b32.xlu1 %v996_v43, %s1374_s20 }
0x106d   : > { %v983_v44 = vpop.permute.xlu1 %982 }
0x106e   : > { %985 = vst.msk [vmem:[#allocation3] sm:$0x3] %vm398_vm0, %v983_v44 }
0x106f   : > { %992 = vst.msk [vmem:[%s991_s11] sm:$0x3] %vm398_vm0, %v983_v44 }
0x1075   : > { %v995_v45 = vld [vmem:[#allocation3] sm:$0x3]  ;;  %v1046_v1 = vpop.permute.xlu1 %1045 }
0x1076   : > { %1279 = vmatmul.msk.f32.vlgmr.msra.gmra.mxu3 %vm318_vm1, %v995_v45 }
0x10f9   : > { %v1020_v47 = vpop.f32.mrf.mxu3 }
0x10fa   : > { %v1023_v48 = vadd.f32 %v1020_v47, %v999_v46 }
0x10fc   : > { %1356 = vtanh.f32 %v1023_v48  ;;  %v1280_v50 = vmul.f32 -1.442695, %v1023_v48 }
0x10fe   : > { %1358 = vpow2.f32 %v1280_v50 }
0x1102   : > { %v1357_v49 = vpop.eup %1356 }
0x1103   : > { %1050 = vrot.lane.b32.xlu0 %v1357_v49, %s1373_s14 }
0x1104   : > { %v1359_v51 = vpop.eup %1358 }
0x1105   : > { %v1027_v52 = vadd.f32 1.0, %v1359_v51 }
0x1107   : > { %1360 = vrcp.f32 %v1027_v52  ;;  %v1039_v58 = vand.u32 2147483648, %v1027_v52  ;;  %vm1033_vm2 = vweird.f32 %v1027_v52  ;;  %v1037_v59 = vand.u32 2147483647, %v1027_v52 }
0x1109   : > { %v1040_v61 = vor.u32 1.1754944e-38, %v1039_v58  ;;  %vm1038_vm4 = vcmp.eq.f32.partialorder %v1037_v59, 8.507059e+37 }
0x110d   : > { %v1361_v53 = vpop.eup %1360 }
0x110e   : > { %v1029_v54 = vmul.f32 %v1361_v53, %v1027_v52  ;;  %vm1034_vm1 = vweird.f32 %v1361_v53 }
0x110f   : > { %vm1035_vm3 = vmor %vm1033_vm2, %vm1034_vm1 }
0x1110   : > { %v1030_v55 = vsub.f32 1.0, %v1029_v54 }
0x1112   : > { %v1031_v56 = vmul.f32 %v1361_v53, %v1030_v55 }
0x1114   : > { %v1032_v57 = vadd.f32 %v1361_v53, %v1031_v56 }
0x1116   : > { %v1036_v60 = vsel %vm1035_vm3, %v1361_v53, %v1032_v57 }
0x1117   : > { %v1041_v63 = vsel %vm1038_vm4, %v1040_v61, %v1036_v60 }
0x1118   : > { %v1048_v2 = vmul.f32 %v1046_v1, %v1041_v63 }
0x1175   : > { %v1051_v62 = vpop.permute.xlu0 %1050 }
0x1176   : > { %v1053_v0 = vmul.f32 %v1051_v62, %v1041_v63 }
0x1178   : > { %1055 = vrot.lane.b32.xlu2 %v1053_v0, %s1374_s20 }
0x11d2   : > { %v1056_v3 = vpop.permute.xlu2 %1055 }
0x11d3   : > { %v1058_v4 = vadd.f32 %v1056_v3, %v1048_v2 }
0x11d5   : > { %1362 = vtanh.f32 %v1058_v4  ;;  %1071 = vrot.lane.b32.xlu2 %v1058_v4, %s1375_s24 }
0x11db   : > { %v1363_v5 = vpop.eup %1362 }
0x11dc   : > { %1061 = vrot.lane.b32.xlu0 %v1363_v5, %s1373_s14 }
0x122f   : > { %v1072_v6 = vpop.permute.xlu2 %1071 }
0x1230   : > { %1074 = vst.msk [vmem:[#allocation4] sm:$0x3] %vm398_vm0, %v1072_v6 }
0x124e   : > { %v1062_v7 = vpop.permute.xlu0 %1061 }
0x124f   : > { %v1064_v8 = vmul.f32 %v1062_v7, %v1041_v63 }
0x1251   : > { %1066 = vrot.lane.b32.xlu1 %v1064_v8, %s1374_s20 }
0x12c3   : > { %v1067_v9 = vpop.permute.xlu1 %1066 }
0x12c4   : > { %1069 = vst.msk [vmem:[#allocation3] sm:$0x3] %vm398_vm0, %v1067_v9 }
0x12c5   : > { %1076 = vst.msk [vmem:[%s1075_s13] sm:$0x3] %vm398_vm0, %v1067_v9 }
0x12c6 PF: > { %s16_s21 = sadd.s32 1, %s1370_s21  }
0x12c7   : > { %p13_p4 = scmp.ge.s32.totalorder %s16_s21, 4  }
0x12c9   :  { %15 = sbr.rel (!%p13_p4) target bundleno = 1 (0x1), region = 106 }

// kernel: seq_to_emb_forward.2
= control target key start
LH: loop header
LB: loop body
LE: loop exit
PB: predicated region body
PF: predicated region fallthrough
CT: control target
= control target key end

     0   :  { %9 = vsyncpa [#allocation6], 0  ;;  %s1860_s0 = inlined_call_operand.hbm [shape: f32[16,16], index: 0, kind: input, shape index: {}]   ;;  %s1861_s1 = inlined_call_operand.hbm [shape: f32[2,16,128], index: 1, kind: input, shape index: {}]   ;;  %s1862_s2 = inlined_call_operand.hbm [shape: f32[2,32,128], index: 2, kind: input, shape index: {}]   ;;  %s1863_s3 = inlined_call_operand.vmem [shape: f32[2,1,128], index: 3, kind: input, shape index: {}]   ;;  %s1864_s4 = inlined_call_operand.vmem [shape: f32[2,8,2,32], index: 4, kind: output, shape index: {}]  }
   0x1   :  { %10 = vsyncpa [#allocation8], 0 }
   0x2   :  { %12 = vsyncpa [#allocation8 + $0x1], 0  ;;  %s1541_s15 = smov 0   ;;  %s1543_s16 = smov 0  }
   0x3   :  { %s1545_s17 = smov 0   ;;  %s1547_s18 = smov 0  }
   0x4 LB: > { %s1562_s19 = sadd.s32 1, %s1507_s18   ;;  %s46_s20 = sadd.s32 1, %s1503_s17  ;;  %s1507_s18 = sphi %s1547_s18, %s1871_s18   ;;  %s1503_s17 = sphi %s1545_s17, %s1870_s17   ;;  %s1499_s16 = sphi %s1543_s16, %s1869_s16   ;;  %s1495_s15 = sphi %s1541_s15, %s1868_s15  }
   0x5   : > { %s43_s21 = ssub.s32 %s1507_s18, %s1562_s19  ;;  %p53_p0 = scmp.ne.s32.totalorder %s1503_s17, %s1499_s16 }
   0x6   : > { %p44_p1 = scmp.eq.s32.totalorder %s43_s21, 0  ;;  %p54_p2 = scmp.eq.s32.totalorder %s1507_s18, 0 }
   0x7   : > { %p1273_p4 = scmp.lt.s32.totalorder %s1507_s18, 2  ;;  %s175_s23 = sand.u32 1, %s1507_s18  }
   0x8   : > { %s1571_s22 = scalar_select %p44_p1, %s1503_s17, %s46_s20  }
   0x9   : > { %p55_p3 = por %p54_p2, %p53_p0  ;;  %s177_s24 = sand.u32 1, %s1503_s17  }
   0xa   : > { %s1207_s25 = sshll.u32 %s177_s24, 4  ;;  %s1250_s26 = sshll.u32 %s1507_s18, 4 }
   0xb   : > { %s184_s29 = scalar_lea.hbm %s1861_s1, %s1250_s26  ;;  %s179_s5 = scalar_lea.vmem [#allocation7], %s1207_s25 }
   0xc   : > { %s185_s30 = sshll.u32 %s184_s29, 4  ;;  %s187_s6 = sshll.u32 %s179_s5, 4  ;;  %s186_s30 = int_to_ptr.hbm [resolvable:$true] %s185_s30  ;;  %s188_s6 = int_to_ptr.vmem [resolvable:$true] %s187_s6 }
   0xd   : > { %p1580_p5 = pnand %p1273_p4, %p55_p3  ;;  %s1210_s8 = sshll.u32 %s177_s24, 5 }
   0xe   : > { %s201_s9 = scalar_lea.vmem [#allocation9], %s1210_s8  ;;  %s1586_s11 = scalar_lea.sflag [#allocation8], %s175_s23 }
   0xf   : > { %s1584_s10 = sshll.u32 %s201_s9, 4  ;;  %s1379_s12 = sshra.s32 %s186_s30, 4  ;;  %s1380_s12 = int_to_ptr.hbm [resolvable:$true] %s1379_s12  ;;  %s210_s10 = int_to_ptr.vmem [resolvable:$true] %s1584_s10 }
  0x10   : > { %s1381_s13 = scalar_lea.hbm %s1380_s12, 16  ;;  %p1383_p7 = pneg %p1580_p5 }
  0x11   : > { %p1382_p6 = scmp.ne.s32.totalorder %s1380_s12, %s1381_s13  ;;  %s1386_s21 = scalar_lea.hbm %s1861_s1, 32 }
  0x12   : > { %p1387_p10 = scmp.lt.s32.totalorder %s1380_s12, %s1861_s1  ;;  %p1388_p11 = scmp.lt.s32.totalorder %s1386_s21, %s1381_s13 }
  0x13   : > { %p1384_p8 = pnand %p1383_p7, %p1382_p6 }
  0x14   : > { %p1389_p12 = por %p1388_p11, %p1387_p10 }
  0x15   : > { %p1385_p9 = pneg %p1384_p8 }
  0x17   : > { %p1390_p13 = pnand %p1389_p12, %p1385_p9 }
  0x19   : > { %1393 = shalt.err (!%p1390_p13)
}
  0x1a   : > { %s1509_s23 = smov 128   ;;  %s1510_s26 = smov 8  }
  0x1b   : > { %1268 = dma.hbm_to_vmem [thread:$0]  (!%p1580_p5), %s186_s30, 256, %s188_s6, %s1586_s11, %s1509_s23, %s1509_s23, %s1510_s26  }
  0x1c   : > { %s1606_s27 = sadd.s32 4294967295, %s1507_s18   ;;  %p59_p0 = scmp.ne.s32.totalorder %s1499_s16, %s1495_s15 }
  0x1d   : > { %p60_p1 = scmp.eq.s32.totalorder %s1606_s27, 0  ;;  %p1204_p2 = scmp.ge.s32.totalorder %s1507_s18, 1 }
  0x1e   : > { %p148_p3 = scmp.lt.s32.totalorder %s1507_s18, 3  ;;  %s159_s6 = sshll.u32 %s1860_s0, 4  ;;  %s160_s6 = int_to_ptr.hbm [resolvable:$true] %s159_s6 }
  0x1f   : > { %p1615_p4 = por %p60_p1, %p59_p0  ;;  %s1511_s15 = smov [#allocation5]  }
  0x20   : > { %p1619_p6 = pnand %p1204_p2, %p148_p3  ;;  %s161_s8 = sshll.u32 %s1511_s15, 4  ;;  %s162_s8 = int_to_ptr.vmem [resolvable:$true] %s161_s8 }
  0x21   : > { %s1251_s9 = sshll.u32 %s1507_s18, 5  ;;  %s1446_s30 = scalar_lea.hbm %s1862_s2, 64 }
  0x22   : > { %p1261_p8 = pneg %p1619_p6  ;;  %s206_s14 = scalar_lea.hbm %s1862_s2, %s1251_s9 }
  0x23   : > { %s207_s20 = sshll.u32 %s206_s14, 4  ;;  %s208_s20 = int_to_ptr.hbm [resolvable:$true] %s207_s20 }
  0x24   : > { %p1262_p9 = pnand %p1261_p8, %p60_p1  ;;  %s1439_s21 = sshra.s32 %s208_s20, 4  ;;  %s1440_s21 = int_to_ptr.hbm [resolvable:$true] %s1439_s21 }
  0x25   : > { %s1441_s24 = scalar_lea.hbm %s1440_s21, 32  ;;  %p1447_p13 = scmp.lt.s32.totalorder %s1440_s21, %s1862_s2 }
  0x26   : > { %1264 = dma.hbm_to_vmem [thread:$0]  (!%p1262_p9), %s160_s6, 256, %s162_s8, [#allocation6], %s1509_s23, %s1509_s23, %s1510_s26  }
  0x27   : > { %p1442_p10 = scmp.ne.s32.totalorder %s1440_s21, %s1441_s24  ;;  %p1448_p0 = scmp.lt.s32.totalorder %s1446_s30, %s1441_s24 }
  0x29   : > { %p1444_p11 = pnand %p1442_p10, %p1383_p7  ;;  %p1449_p2 = por %p1448_p0, %p1447_p13 }
  0x2b   : > { %p1445_p12 = pneg %p1444_p11 }
  0x2d   : > { %p1450_p3 = pnand %p1449_p2, %p1445_p12 }
  0x2f   : > { %1453 = shalt.err (!%p1450_p3)
}
  0x30   : > { %1271 = dma.hbm_to_vmem [thread:$0]  (!%p1580_p5), %s208_s20, 512, %s210_s10, %s1586_s11, %s1509_s23, %s1509_s23, %s1510_s26  }
  0x31   : > { %227 = sbr.rel (%p1619_p6) target bundleno = 4837 (0x12e5), region = 36 }
  0x36   : > { %1486 = dma.done.wait (%p60_p1), [#allocation6], 256  }
  0x37   : > { %1488 = vsyncadd (%p60_p1), [#allocation6], 4294967040  ;;  %s234_s6 = sand.u32 1, %s1606_s27   ;;  %s236_s8 = sand.u32 1, %s1499_s16  }
  0x38   : > { %s1215_s7 = sshll.u32 %s236_s8, 4  ;;  %s235_s9 = scalar_lea.sflag [#allocation8], %s234_s6 }
  0x39   : > { %s238_s12 = scalar_lea.vmem [#allocation7], %s1215_s7 }
  0x3a   : > { %1490 = dma.done.wait (%p1615_p4), %s235_s9, 768  }
  0x3b   : > { %1492 = vsyncadd (%p1615_p4), %s235_s9, 4294966528  ;;  %vm343_vm0 = vcmask 254976   ;;  %s1216_s10 = sshll.u32 %s236_s8, 5  ;;  %v1512_v0 = vmov 0.0   ;;  %p282_p5 = scmp.lt.s32.totalorder %s1606_s27, 1  ;;  %v293_v1 = vld [vmem:[%s238_s12 + $0x8] sm:$0xff] }
  0x3c   : > { %344 = vst.msk [vmem:[#allocation3] sm:$0x3] %vm343_vm0, %v1512_v0  ;;  %v292_v2 = vld [vmem:[%s238_s12] sm:$0xff]  ;;  %319 = vmatpush.msra.mxu0 %v293_v1  ;;  %vm298_vm1 = vcmask 130048   ;;  %s248_s23 = scalar_lea.vmem [#allocation9], %s1216_s10  ;;  %s1677_s13 = smul.u32 7, %s1606_s27 }
  0x3d   : > { %345 = vst.msk [vmem:[#allocation4] sm:$0x3] %vm343_vm0, %v1512_v0  ;;  %s1669_s11 = scalar_select %p282_p5, %s1606_s27, 1  ;;  %v290_v3 = vld [vmem:[#allocation5] sm:$0xff]  ;;  %v349_v4 = vld [vmem:[%s248_s23 + $0x18] sm:$0xff]  ;;  %v347_v6 = vld [vmem:[%s248_s23 + $0x8] sm:$0xff] }
  0x3e   : > { %v348_v5 = vld [vmem:[%s248_s23 + $0x10] sm:$0xff]  ;;  %374 = vmatpush.msra.mxu1 %v349_v4  ;;  %457 = vmatpush.msra.mxu2 %v349_v4  ;;  %v346_v7 = vld [vmem:[%s248_s23] sm:$0xff]  ;;  %s1221_s14 = sshll.u32 %s1606_s27, 1  ;;  %vm358_vm2 = vcmask 261120   ;;  %v291_v9 = vld [vmem:[#allocation5 + $0x8] sm:$0xff]  ;;  %s1222_s26 = smul.u32 14, %s1606_s27 }
  0x3f   : > { %s284_s29 = scalar_lea.vmem %s1863_s3, %s1669_s11  ;;  %320 = vmatpush.msra.mxu0 %v292_v2  ;;  %541 = vmatpush.msra.mxu3 %v349_v4  ;;  %s1680_s20 = ssub.s32 1, %s1221_s14 }
  0x40   : > { %1219 = vmatmul.msk.f32.vlgmr.msra.gmra.mxu0 %vm298_vm1, %v290_v3  ;;  %375 = vmatpush.msra.mxu1 %v348_v5  ;;  %s1235_s21 = sshll.u32 %s1680_s20, 2  ;;  %s771_s24 = smul.u32 5, %s1680_s20  ;;  %v1314_v10 = vld [vmem:[%s284_s29] ss:$0 sm:$0xff] }
  0x41   : > { %458 = vmatpush.msra.mxu2 %v348_v5  ;;  %542 = vmatpush.msra.mxu3 %v348_v5  ;;  %s1685_s18 = sadd.s32 %s1235_s21, %s1677_s13  ;;  %s855_s25 = smul.u32 6, %s1680_s20 }
  0x42   : > { %376 = vmatpush.msra.mxu1 %v347_v6  ;;  %877 = vmatpush.msrb.mxu0 %v349_v4  ;;  %s1690_s30 = sadd.s32 %s771_s24, %s1677_s13  ;;  %s939_s15 = smul.u32 7, %s1680_s20 }
  0x43   : > { %v353_v8 = vld [vmem:[#allocation3] sm:$0x3]  ;;  %459 = vmatpush.msra.mxu2 %v347_v6  ;;  %543 = vmatpush.msra.mxu3 %v347_v6  ;;  %s1693_s5 = sadd.s32 %s855_s25, %s1677_s13  ;;  %s603_s8 = smul.u32 3, %s1680_s20 }
  0x44   : > { %377 = vmatpush.msra.mxu1 %v346_v7  ;;  %878 = vmatpush.msrb.mxu0 %v348_v5  ;;  %s1698_s6 = sadd.s32 %s939_s15, %s1677_s13  ;;  %s1228_s7 = sshll.u32 %s1680_s20, 1  ;;  %v354_v19 = vld [vmem:[#allocation4] sm:$0x3] }
  0x45   : > { %1223 = vmatmul.msk.f32.vlgmr.msra.gmra.mxu1 %vm358_vm2, %v353_v8  ;;  %460 = vmatpush.msra.mxu2 %v346_v7  ;;  %s1703_s9 = sadd.s32 %s1228_s7, %s1677_s13  ;;  %s1706_s12 = sadd.s32 %s603_s8, %s1677_s13 }
  0x46   : > { %544 = vmatpush.msra.mxu3 %v346_v7  ;;  %625 = vmatpush.msrb.mxu1 %v349_v4  ;;  %s356_s28 = scalar_lea.vmem [#allocation2], %s1222_s26  ;;  %s1513_s14 = smov 64  }
  0x47   : > { %709 = vmatpush.msrb.mxu2 %v349_v4  ;;  %879 = vmatpush.msrb.mxu0 %v347_v6  ;;  %s1514_s29 = smov 32   ;;  %s1515_s21 = smov 96  }
  0x48   : > { %793 = vmatpush.msrb.mxu3 %v349_v4  ;;  %1220 = vmatmul.msk.f32.gmra.mxu0 %vm298_vm1, %v291_v9  ;;  %s1252_s24 = sshll.u32 %s1669_s11, 4  ;;  %s436_s11 = sadd.s32 %s1680_s20, %s1677_s13 }
  0x49   : > { %626 = vmatpush.msrb.mxu1 %v348_v5  ;;  %710 = vmatpush.msrb.mxu2 %v348_v5  ;;  %s1726_s8 = scalar_lea.vmem %s1864_s4, %s1252_s24  ;;  %s1738_s10 = sshll.u32 %s436_s11, 1 }
  0x4a   : > { %794 = vmatpush.msrb.mxu3 %v348_v5  ;;  %880 = vmatpush.msrb.mxu0 %v346_v7  ;;  %s434_s7 = scalar_lea.vmem %s1726_s8, %s1222_s26  ;;  %s440_s27 = scalar_lea.vmem [#allocation2], %s1738_s10 }
  0x4b   : > { %627 = vmatpush.msrb.mxu1 %v347_v6  ;;  %711 = vmatpush.msrb.mxu2 %v347_v6  ;;  %s517_s13 = scalar_lea.vmem %s1726_s8, %s1738_s10  ;;  %s1229_s20 = sshll.u32 %s1703_s9, 1 }
  0x4c   : > { %795 = vmatpush.msrb.mxu3 %v347_v6  ;;  %s524_s23 = scalar_lea.vmem [#allocation2], %s1229_s20  ;;  %s601_s26 = scalar_lea.vmem %s1726_s8, %s1229_s20 }
  0x4d   : > { %628 = vmatpush.msrb.mxu1 %v346_v7  ;;  %712 = vmatpush.msrb.mxu2 %v346_v7  ;;  %s1236_s25 = sshll.u32 %s1685_s18, 1  ;;  %s1242_s10 = sshll.u32 %s1693_s5, 1 }
  0x4e   : > { %796 = vmatpush.msrb.mxu3 %v346_v7  ;;  %s692_s15 = scalar_lea.vmem [#allocation2], %s1236_s25 }
  0x4f   : > { %961 = vmatpush.msra.mxu1 %v349_v4 }
  0x51   : > { %962 = vmatpush.msra.mxu1 %v348_v5 }
  0x53   : > { %963 = vmatpush.msra.mxu1 %v347_v6 }
  0x55   : > { %964 = vmatpush.msra.mxu1 %v346_v7 }
  0xbd   : > { %v322_v11 = vpop.f32.mrf.mxu0 }
  0xbe   : > { %v323_v12 = vadd.f32 %v1314_v10, %v322_v11 }
  0xc0   : > { %328 = vst [vmem:[#allocation2] sm:$0xf] %v323_v12  }
  0xc1   : > { %332 = vst [vmem:[#allocation2] sm:$0xf0] %v323_v12  }
  0xc2   : > { %v379_v15 = vpop.f32.mrf.mxu1 }
  0xc5   : > { %v325_v13 = vpop.f32.mrf.mxu0 }
  0xc6   : > { %v326_v14 = vadd.f32 %v1314_v10, %v325_v13 }
  0xc8   : > { %336 = vst [vmem:[#allocation2 + $0x8] sm:$0xf] %v326_v14  }
  0xc9   : > { %340 = vst [vmem:[#allocation2 + $0x8] sm:$0xf0] %v326_v14  }
  0xd0   : > { %v357_v16 = vld [vmem:[%s356_s28] sm:$0x3]  ;;  %s1232_s28 = sshll.u32 %s1706_s12, 1  ;;  %s769_s12 = scalar_lea.vmem %s1726_s8, %s1236_s25 }
  0xd1   : > { %v382_v17 = vadd.f32 %v379_v15, %v357_v16  ;;  %v441_v46 = vld [vmem:[%s440_s27] sm:$0x3]  ;;  %s608_s24 = scalar_lea.vmem [#allocation2], %s1232_s28  ;;  %s685_s9 = scalar_lea.vmem %s1726_s8, %s1232_s28 }
  0xd2   : > { %v525_v12 = vld [vmem:[%s524_s23] sm:$0x3]  ;;  %s860_s27 = scalar_lea.vmem [#allocation2], %s1242_s10 }
  0xd3   : > { %1315 = vtanh.f32 %v382_v17  ;;  %v1224_v20 = vmul.f32 -1.442695, %v382_v17 }
  0xd5   : > { %1317 = vpow2.f32 %v1224_v20 }
  0xd9   : > { %v1316_v18 = vpop.eup %1315 }
  0xda   : > { %409 = vrot.lane.b32.xlu0 %v1316_v18, %s1513_s14 }
  0xdb   : > { %v1318_v21 = vpop.eup %1317 }
  0xdc   : > { %v386_v22 = vadd.f32 1.0, %v1318_v21 }
  0xde   : > { %1319 = vrcp.f32 %v386_v22  ;;  %v398_v28 = vand.u32 2147483648, %v386_v22  ;;  %vm392_vm4 = vweird.f32 %v386_v22  ;;  %v396_v29 = vand.u32 2147483647, %v386_v22 }
  0xe0   : > { %v399_v31 = vor.u32 1.1754944e-38, %v398_v28  ;;  %vm397_vm6 = vcmp.eq.f32.partialorder %v396_v29, 8.507059e+37 }
  0xe2   : > { %404 = vrot.lane.b32.xlu0 %v354_v19, %s1514_s29 }
  0xe4   : > { %v1320_v23 = vpop.eup %1319 }
  0xe5   : > { %v388_v24 = vmul.f32 %v1320_v23, %v386_v22  ;;  %vm393_vm3 = vweird.f32 %v1320_v23 }
  0xe6   : > { %vm394_vm5 = vmor %vm392_vm4, %vm393_vm3 }
  0xe7   : > { %v389_v25 = vsub.f32 1.0, %v388_v24 }
  0xe9   : > { %v390_v26 = vmul.f32 %v1320_v23, %v389_v25 }
  0xeb   : > { %v391_v27 = vadd.f32 %v1320_v23, %v390_v26 }
  0xed   : > { %v395_v30 = vsel %vm394_vm5, %v1320_v23, %v391_v27 }
  0xee   : > { %v400_v33 = vsel %vm397_vm6, %v399_v31, %v395_v30 }
 0x14c   : > { %v410_v32 = vpop.permute.xlu0 %409 }
 0x14d   : > { %v412_v34 = vmul.f32 %v410_v32, %v400_v33 }
 0x14f   : > { %414 = vrot.lane.b32.xlu1 %v412_v34, %s1514_s29 }
 0x154   : > { %v405_v35 = vpop.permute.xlu0 %404 }
 0x155   : > { %v407_v36 = vmul.f32 %v405_v35, %v400_v33 }
 0x1c1   : > { %v415_v37 = vpop.permute.xlu1 %414 }
 0x1c2   : > { %v417_v38 = vadd.f32 %v415_v37, %v407_v36 }
 0x1c4   : > { %1321 = vtanh.f32 %v417_v38 }
 0x1ca   : > { %v1322_v39 = vpop.eup %1321 }
 0x1cb   : > { %420 = vrot.lane.b32.xlu1 %v1322_v39, %s1513_s14 }
 0x23d   : > { %v421_v40 = vpop.permute.xlu1 %420 }
 0x23e   : > { %v423_v41 = vmul.f32 %v421_v40, %v400_v33 }
 0x240   : > { %425 = vrot.lane.b32.xlu2 %v423_v41, %s1514_s29 }
 0x248   : > { %430 = vrot.lane.b32.xlu2 %v417_v38, %s1515_s21 }
 0x29a   : > { %v426_v42 = vpop.permute.xlu2 %425 }
 0x29b   : > { %428 = vst.msk [vmem:[#allocation3] sm:$0x3] %vm343_vm0, %v426_v42 }
 0x29c   : > { %435 = vst.msk [vmem:[%s434_s7] sm:$0x3] %vm343_vm0, %v426_v42  ;;  %v609_v42 = vld [vmem:[%s608_s24] sm:$0x3]  ;;  %s1239_s7 = sshll.u32 %s1690_s30, 1  ;;  %s937_s30 = scalar_lea.vmem %s1726_s8, %s1242_s10 }
 0x29d   : > { %s776_s11 = scalar_lea.vmem [#allocation2], %s1239_s7  ;;  %s853_s18 = scalar_lea.vmem %s1726_s8, %s1239_s7 }
 0x2a2   : > { %v431_v43 = vpop.permute.xlu2 %430  ;;  %v437_v44 = vld [vmem:[#allocation3] sm:$0x3] }
 0x2a3   : > { %433 = vst.msk [vmem:[#allocation4] sm:$0x3] %vm343_vm0, %v431_v43  ;;  %1226 = vmatmul.msk.f32.vlgmr.msra.gmra.mxu2 %vm358_vm2, %v437_v44 }
 0x2aa   : > { %v438_v45 = vld [vmem:[#allocation4] sm:$0x3] }
 0x2ab   : > { %487 = vrot.lane.b32.xlu1 %v438_v45, %s1514_s29 }
 0x31d   : > { %v488_v1 = vpop.permute.xlu1 %487 }
 0x326   : > { %v462_v47 = vpop.f32.mrf.mxu2 }
 0x327   : > { %v465_v48 = vadd.f32 %v462_v47, %v441_v46 }
 0x329   : > { %1323 = vtanh.f32 %v465_v48  ;;  %v1227_v50 = vmul.f32 -1.442695, %v465_v48 }
 0x32b   : > { %1325 = vpow2.f32 %v1227_v50 }
 0x32f   : > { %v1324_v49 = vpop.eup %1323 }
 0x330   : > { %492 = vrot.lane.b32.xlu0 %v1324_v49, %s1513_s14 }
 0x331   : > { %v1326_v51 = vpop.eup %1325 }
 0x332   : > { %v469_v52 = vadd.f32 1.0, %v1326_v51 }
 0x334   : > { %1327 = vrcp.f32 %v469_v52  ;;  %v481_v58 = vand.u32 2147483648, %v469_v52  ;;  %vm475_vm8 = vweird.f32 %v469_v52  ;;  %v479_v59 = vand.u32 2147483647, %v469_v52 }
 0x336   : > { %v482_v61 = vor.u32 1.1754944e-38, %v481_v58  ;;  %vm480_vm10 = vcmp.eq.f32.partialorder %v479_v59, 8.507059e+37 }
 0x33a   : > { %v1328_v53 = vpop.eup %1327 }
 0x33b   : > { %v471_v54 = vmul.f32 %v1328_v53, %v469_v52  ;;  %vm476_vm7 = vweird.f32 %v1328_v53 }
 0x33c   : > { %vm477_vm9 = vmor %vm475_vm8, %vm476_vm7 }
 0x33d   : > { %v472_v55 = vsub.f32 1.0, %v471_v54 }
 0x33f   : > { %v473_v56 = vmul.f32 %v1328_v53, %v472_v55 }
 0x341   : > { %v474_v57 = vadd.f32 %v1328_v53, %v473_v56 }
 0x343   : > { %v478_v60 = vsel %vm477_vm9, %v1328_v53, %v474_v57 }
 0x344   : > { %v483_v63 = vsel %vm480_vm10, %v482_v61, %v478_v60 }
 0x345   : > { %v490_v2 = vmul.f32 %v488_v1, %v483_v63 }
 0x3a2   : > { %v493_v62 = vpop.permute.xlu0 %492 }
 0x3a3   : > { %v495_v0 = vmul.f32 %v493_v62, %v483_v63 }
 0x3a5   : > { %497 = vrot.lane.b32.xlu2 %v495_v0, %s1514_s29 }
 0x3ff   : > { %v498_v3 = vpop.permute.xlu2 %497 }
 0x400   : > { %v500_v4 = vadd.f32 %v498_v3, %v490_v2 }
 0x402   : > { %1329 = vtanh.f32 %v500_v4  ;;  %513 = vrot.lane.b32.xlu2 %v500_v4, %s1515_s21 }
 0x408   : > { %v1330_v5 = vpop.eup %1329 }
 0x409   : > { %503 = vrot.lane.b32.xlu0 %v1330_v5, %s1513_s14 }
 0x45c   : > { %v514_v6 = vpop.permute.xlu2 %513 }
 0x45d   : > { %516 = vst.msk [vmem:[#allocation4] sm:$0x3] %vm343_vm0, %v514_v6 }
 0x464   : > { %v522_v9 = vld [vmem:[#allocation4] sm:$0x3] }
 0x47b   : > { %v504_v7 = vpop.permute.xlu0 %503 }
 0x47c   : > { %v506_v8 = vmul.f32 %v504_v7, %v483_v63 }
 0x47e   : > { %508 = vrot.lane.b32.xlu1 %v506_v8, %s1514_s29  ;;  %v693_v8 = vld [vmem:[%s692_s15] sm:$0x3] }
 0x486   : > { %571 = vrot.lane.b32.xlu1 %v522_v9, %s1514_s29 }
 0x4f0   : > { %v509_v10 = vpop.permute.xlu1 %508 }
 0x4f1   : > { %511 = vst.msk [vmem:[#allocation3] sm:$0x3] %vm343_vm0, %v509_v10 }
 0x4f2   : > { %518 = vst.msk [vmem:[%s517_s13] sm:$0x3] %vm343_vm0, %v509_v10  ;;  %s1245_s13 = sshll.u32 %s1698_s6, 1 }
 0x4f3   : > { %s944_s20 = scalar_lea.vmem [#allocation2], %s1245_s13  ;;  %s1021_s5 = scalar_lea.vmem %s1726_s8, %s1245_s13 }
 0x4f8   : > { %v521_v11 = vld [vmem:[#allocation3] sm:$0x3]  ;;  %v572_v31 = vpop.permute.xlu1 %571 }
 0x4f9   : > { %1230 = vmatmul.msk.f32.vlgmr.msra.gmra.mxu3 %vm358_vm2, %v521_v11 }
 0x57c   : > { %v546_v13 = vpop.f32.mrf.mxu3 }
 0x57d   : > { %v549_v14 = vadd.f32 %v546_v13, %v525_v12 }
 0x57f   : > { %1331 = vtanh.f32 %v549_v14  ;;  %v1231_v16 = vmul.f32 -1.442695, %v549_v14 }
 0x581   : > { %1333 = vpow2.f32 %v1231_v16 }
 0x585   : > { %v1332_v15 = vpop.eup %1331 }
 0x586   : > { %576 = vrot.lane.b32.xlu0 %v1332_v15, %s1513_s14 }
 0x587   : > { %v1334_v17 = vpop.eup %1333 }
 0x588   : > { %v553_v18 = vadd.f32 1.0, %v1334_v17 }
 0x58a   : > { %1335 = vrcp.f32 %v553_v18  ;;  %v565_v24 = vand.u32 2147483648, %v553_v18  ;;  %vm559_vm12 = vweird.f32 %v553_v18  ;;  %v563_v25 = vand.u32 2147483647, %v553_v18 }
 0x58c   : > { %v566_v27 = vor.u32 1.1754944e-38, %v565_v24  ;;  %vm564_vm14 = vcmp.eq.f32.partialorder %v563_v25, 8.507059e+37 }
 0x590   : > { %v1336_v19 = vpop.eup %1335 }
 0x591   : > { %v555_v20 = vmul.f32 %v1336_v19, %v553_v18  ;;  %vm560_vm11 = vweird.f32 %v1336_v19 }
 0x592   : > { %vm561_vm13 = vmor %vm559_vm12, %vm560_vm11 }
 0x593   : > { %v556_v21 = vsub.f32 1.0, %v555_v20 }
 0x595   : > { %v557_v22 = vmul.f32 %v1336_v19, %v556_v21 }
 0x597   : > { %v558_v23 = vadd.f32 %v1336_v19, %v557_v22 }
 0x599   : > { %v562_v26 = vsel %vm561_vm13, %v1336_v19, %v558_v23 }
 0x59a   : > { %v567_v29 = vsel %vm564_vm14, %v566_v27, %v562_v26 }
 0x59b   : > { %v574_v32 = vmul.f32 %v572_v31, %v567_v29 }
 0x5f8   : > { %v577_v28 = vpop.permute.xlu0 %576 }
 0x5f9   : > { %v579_v30 = vmul.f32 %v577_v28, %v567_v29 }
 0x5fb   : > { %581 = vrot.lane.b32.xlu2 %v579_v30, %s1514_s29 }
 0x655   : > { %v582_v33 = vpop.permute.xlu2 %581 }
 0x656   : > { %v584_v34 = vadd.f32 %v582_v33, %v574_v32 }
 0x658   : > { %1337 = vtanh.f32 %v584_v34  ;;  %597 = vrot.lane.b32.xlu2 %v584_v34, %s1515_s21 }
 0x65e   : > { %v1338_v35 = vpop.eup %1337 }
 0x65f   : > { %587 = vrot.lane.b32.xlu0 %v1338_v35, %s1513_s14 }
 0x6b2   : > { %v598_v36 = vpop.permute.xlu2 %597 }
 0x6b3   : > { %600 = vst.msk [vmem:[#allocation4] sm:$0x3] %vm343_vm0, %v598_v36 }
 0x6ba   : > { %v606_v39 = vld [vmem:[#allocation4] sm:$0x3] }
 0x6d1   : > { %v588_v37 = vpop.permute.xlu0 %587 }
 0x6d2   : > { %v590_v38 = vmul.f32 %v588_v37, %v567_v29 }
 0x6d4   : > { %592 = vrot.lane.b32.xlu1 %v590_v38, %s1514_s29  ;;  %v777_v38 = vld [vmem:[%s776_s11] sm:$0x3] }
 0x6dc   : > { %655 = vrot.lane.b32.xlu1 %v606_v39, %s1514_s29 }
 0x746   : > { %v593_v40 = vpop.permute.xlu1 %592 }
 0x747   : > { %595 = vst.msk [vmem:[#allocation3] sm:$0x3] %vm343_vm0, %v593_v40 }
 0x748   : > { %602 = vst.msk [vmem:[%s601_s26] sm:$0x3] %vm343_vm0, %v593_v40 }
 0x74e   : > { %v605_v41 = vld [vmem:[#allocation3] sm:$0x3]  ;;  %v656_v61 = vpop.permute.xlu1 %655 }
 0x74f   : > { %1233 = vmatmul.msk.f32.vlgmr.msrb.gmra.mxu1 %vm358_vm2, %v605_v41 }
 0x7cc   : > { %v630_v43 = vpop.f32.mrf.mxu1 }
 0x7cd   : > { %v633_v44 = vadd.f32 %v630_v43, %v609_v42 }
 0x7cf   : > { %1339 = vtanh.f32 %v633_v44  ;;  %v1234_v46 = vmul.f32 -1.442695, %v633_v44 }
 0x7d1   : > { %1341 = vpow2.f32 %v1234_v46 }
 0x7d5   : > { %v1340_v45 = vpop.eup %1339 }
 0x7d6   : > { %660 = vrot.lane.b32.xlu0 %v1340_v45, %s1513_s14 }
 0x7d7   : > { %v1342_v47 = vpop.eup %1341 }
 0x7d8   : > { %v637_v48 = vadd.f32 1.0, %v1342_v47 }
 0x7da   : > { %1343 = vrcp.f32 %v637_v48  ;;  %v649_v54 = vand.u32 2147483648, %v637_v48  ;;  %vm643_vm1 = vweird.f32 %v637_v48  ;;  %v647_v55 = vand.u32 2147483647, %v637_v48 }
 0x7dc   : > { %v650_v57 = vor.u32 1.1754944e-38, %v649_v54  ;;  %vm648_vm4 = vcmp.eq.f32.partialorder %v647_v55, 8.507059e+37 }
 0x7e0   : > { %v1344_v49 = vpop.eup %1343 }
 0x7e1   : > { %v639_v50 = vmul.f32 %v1344_v49, %v637_v48  ;;  %vm644_vm15 = vweird.f32 %v1344_v49 }
 0x7e2   : > { %vm645_vm3 = vmor %vm643_vm1, %vm644_vm15 }
 0x7e3   : > { %v640_v51 = vsub.f32 1.0, %v639_v50 }
 0x7e5   : > { %v641_v52 = vmul.f32 %v1344_v49, %v640_v51 }
 0x7e7   : > { %v642_v53 = vadd.f32 %v1344_v49, %v641_v52 }
 0x7e9   : > { %v646_v56 = vsel %vm645_vm3, %v1344_v49, %v642_v53 }
 0x7ea   : > { %v651_v59 = vsel %vm648_vm4, %v650_v57, %v646_v56 }
 0x7eb   : > { %v658_v62 = vmul.f32 %v656_v61, %v651_v59 }
 0x848   : > { %v661_v58 = vpop.permute.xlu0 %660 }
 0x849   : > { %v663_v60 = vmul.f32 %v661_v58, %v651_v59 }
 0x84b   : > { %665 = vrot.lane.b32.xlu2 %v663_v60, %s1514_s29 }
 0x8a5   : > { %v666_v63 = vpop.permute.xlu2 %665 }
 0x8a6   : > { %v668_v0 = vadd.f32 %v666_v63, %v658_v62 }
 0x8a8   : > { %1345 = vtanh.f32 %v668_v0  ;;  %681 = vrot.lane.b32.xlu2 %v668_v0, %s1515_s21 }
 0x8ae   : > { %v1346_v1 = vpop.eup %1345 }
 0x8af   : > { %671 = vrot.lane.b32.xlu0 %v1346_v1, %s1513_s14 }
 0x902   : > { %v682_v2 = vpop.permute.xlu2 %681 }
 0x903   : > { %684 = vst.msk [vmem:[#allocation4] sm:$0x3] %vm343_vm0, %v682_v2 }
 0x90a   : > { %v690_v5 = vld [vmem:[#allocation4] sm:$0x3] }
 0x921   : > { %v672_v3 = vpop.permute.xlu0 %671 }
 0x922   : > { %v674_v4 = vmul.f32 %v672_v3, %v651_v59 }
 0x924   : > { %676 = vrot.lane.b32.xlu1 %v674_v4, %s1514_s29  ;;  %v861_v4 = vld [vmem:[%s860_s27] sm:$0x3] }
 0x92c   : > { %739 = vrot.lane.b32.xlu1 %v690_v5, %s1514_s29 }
 0x996   : > { %v677_v6 = vpop.permute.xlu1 %676 }
 0x997   : > { %679 = vst.msk [vmem:[#allocation3] sm:$0x3] %vm343_vm0, %v677_v6 }
 0x998   : > { %686 = vst.msk [vmem:[%s685_s9] sm:$0x3] %vm343_vm0, %v677_v6 }
 0x99e   : > { %v689_v7 = vld [vmem:[#allocation3] sm:$0x3]  ;;  %v740_v27 = vpop.permute.xlu1 %739 }
 0x99f   : > { %1237 = vmatmul.msk.f32.vlgmr.msrb.gmra.mxu2 %vm358_vm2, %v689_v7 }
 0xa22   : > { %v714_v9 = vpop.f32.mrf.mxu2 }
 0xa23   : > { %v717_v10 = vadd.f32 %v714_v9, %v693_v8 }
 0xa25   : > { %1347 = vtanh.f32 %v717_v10  ;;  %v1238_v12 = vmul.f32 -1.442695, %v717_v10 }
 0xa27   : > { %1349 = vpow2.f32 %v1238_v12 }
 0xa2b   : > { %v1348_v11 = vpop.eup %1347 }
 0xa2c   : > { %744 = vrot.lane.b32.xlu0 %v1348_v11, %s1513_s14 }
 0xa2d   : > { %v1350_v13 = vpop.eup %1349 }
 0xa2e   : > { %v721_v14 = vadd.f32 1.0, %v1350_v13 }
 0xa30   : > { %1351 = vrcp.f32 %v721_v14  ;;  %v733_v20 = vand.u32 2147483648, %v721_v14  ;;  %vm727_vm6 = vweird.f32 %v721_v14  ;;  %v731_v21 = vand.u32 2147483647, %v721_v14 }
 0xa32   : > { %v734_v23 = vor.u32 1.1754944e-38, %v733_v20  ;;  %vm732_vm8 = vcmp.eq.f32.partialorder %v731_v21, 8.507059e+37 }
 0xa36   : > { %v1352_v15 = vpop.eup %1351 }
 0xa37   : > { %v723_v16 = vmul.f32 %v1352_v15, %v721_v14  ;;  %vm728_vm5 = vweird.f32 %v1352_v15 }
 0xa38   : > { %vm729_vm7 = vmor %vm727_vm6, %vm728_vm5 }
 0xa39   : > { %v724_v17 = vsub.f32 1.0, %v723_v16 }
 0xa3b   : > { %v725_v18 = vmul.f32 %v1352_v15, %v724_v17 }
 0xa3d   : > { %v726_v19 = vadd.f32 %v1352_v15, %v725_v18 }
 0xa3f   : > { %v730_v22 = vsel %vm729_vm7, %v1352_v15, %v726_v19 }
 0xa40   : > { %v735_v25 = vsel %vm732_vm8, %v734_v23, %v730_v22 }
 0xa41   : > { %v742_v28 = vmul.f32 %v740_v27, %v735_v25 }
 0xa9e   : > { %v745_v24 = vpop.permute.xlu0 %744 }
 0xa9f   : > { %v747_v26 = vmul.f32 %v745_v24, %v735_v25 }
 0xaa1   : > { %749 = vrot.lane.b32.xlu2 %v747_v26, %s1514_s29 }
 0xafb   : > { %v750_v29 = vpop.permute.xlu2 %749 }
 0xafc   : > { %v752_v30 = vadd.f32 %v750_v29, %v742_v28 }
 0xafe   : > { %1353 = vtanh.f32 %v752_v30  ;;  %765 = vrot.lane.b32.xlu2 %v752_v30, %s1515_s21 }
 0xb04   : > { %v1354_v31 = vpop.eup %1353 }
 0xb05   : > { %755 = vrot.lane.b32.xlu0 %v1354_v31, %s1513_s14 }
 0xb58   : > { %v766_v32 = vpop.permute.xlu2 %765 }
 0xb59   : > { %768 = vst.msk [vmem:[#allocation4] sm:$0x3] %vm343_vm0, %v766_v32 }
 0xb60   : > { %v774_v35 = vld [vmem:[#allocation4] sm:$0x3] }
 0xb77   : > { %v756_v33 = vpop.permute.xlu0 %755 }
 0xb78   : > { %v758_v34 = vmul.f32 %v756_v33, %v735_v25 }
 0xb7a   : > { %760 = vrot.lane.b32.xlu1 %v758_v34, %s1514_s29  ;;  %v945_v34 = vld [vmem:[%s944_s20] sm:$0x3] }
 0xb82   : > { %823 = vrot.lane.b32.xlu1 %v774_v35, %s1514_s29 }
 0xbec   : > { %v761_v36 = vpop.permute.xlu1 %760 }
 0xbed   : > { %763 = vst.msk [vmem:[#allocation3] sm:$0x3] %vm343_vm0, %v761_v36 }
 0xbee   : > { %770 = vst.msk [vmem:[%s769_s12] sm:$0x3] %vm343_vm0, %v761_v36 }
 0xbf4   : > { %v773_v37 = vld [vmem:[#allocation3] sm:$0x3]  ;;  %v824_v57 = vpop.permute.xlu1 %823 }
 0xbf5   : > { %1240 = vmatmul.msk.f32.vlgmr.msrb.gmra.mxu3 %vm358_vm2, %v773_v37 }
 0xc78   : > { %v798_v39 = vpop.f32.mrf.mxu3 }
 0xc79   : > { %v801_v40 = vadd.f32 %v798_v39, %v777_v38 }
 0xc7b   : > { %1355 = vtanh.f32 %v801_v40  ;;  %v1241_v42 = vmul.f32 -1.442695, %v801_v40 }
 0xc7d   : > { %1357 = vpow2.f32 %v1241_v42 }
 0xc81   : > { %v1356_v41 = vpop.eup %1355 }
 0xc82   : > { %828 = vrot.lane.b32.xlu0 %v1356_v41, %s1513_s14 }
 0xc83   : > { %v1358_v43 = vpop.eup %1357 }
 0xc84   : > { %v805_v44 = vadd.f32 1.0, %v1358_v43 }
 0xc86   : > { %1359 = vrcp.f32 %v805_v44  ;;  %v817_v50 = vand.u32 2147483648, %v805_v44  ;;  %vm811_vm10 = vweird.f32 %v805_v44  ;;  %v815_v51 = vand.u32 2147483647, %v805_v44 }
 0xc88   : > { %v818_v53 = vor.u32 1.1754944e-38, %v817_v50  ;;  %vm816_vm12 = vcmp.eq.f32.partialorder %v815_v51, 8.507059e+37 }
 0xc8c   : > { %v1360_v45 = vpop.eup %1359 }
 0xc8d   : > { %v807_v46 = vmul.f32 %v1360_v45, %v805_v44  ;;  %vm812_vm9 = vweird.f32 %v1360_v45 }
 0xc8e   : > { %vm813_vm11 = vmor %vm811_vm10, %vm812_vm9 }
 0xc8f   : > { %v808_v47 = vsub.f32 1.0, %v807_v46 }
 0xc91   : > { %v809_v48 = vmul.f32 %v1360_v45, %v808_v47 }
 0xc93   : > { %v810_v49 = vadd.f32 %v1360_v45, %v809_v48 }
 0xc95   : > { %v814_v52 = vsel %vm813_vm11, %v1360_v45, %v810_v49 }
 0xc96   : > { %v819_v55 = vsel %vm816_vm12, %v818_v53, %v814_v52 }
 0xc97   : > { %v826_v58 = vmul.f32 %v824_v57, %v819_v55 }
 0xcf4   : > { %v829_v54 = vpop.permute.xlu0 %828 }
 0xcf5   : > { %v831_v56 = vmul.f32 %v829_v54, %v819_v55 }
 0xcf7   : > { %833 = vrot.lane.b32.xlu2 %v831_v56, %s1514_s29 }
 0xd51   : > { %v834_v59 = vpop.permute.xlu2 %833 }
 0xd52   : > { %v836_v60 = vadd.f32 %v834_v59, %v826_v58 }
 0xd54   : > { %1361 = vtanh.f32 %v836_v60  ;;  %849 = vrot.lane.b32.xlu2 %v836_v60, %s1515_s21 }
 0xd5a   : > { %v1362_v61 = vpop.eup %1361 }
 0xd5b   : > { %839 = vrot.lane.b32.xlu0 %v1362_v61, %s1513_s14 }
 0xdae   : > { %v850_v62 = vpop.permute.xlu2 %849 }
 0xdaf   : > { %852 = vst.msk [vmem:[#allocation4] sm:$0x3] %vm343_vm0, %v850_v62 }
 0xdb6   : > { %v858_v1 = vld [vmem:[#allocation4] sm:$0x3] }
 0xdcd   : > { %v840_v63 = vpop.permute.xlu0 %839 }
 0xdce   : > { %v842_v0 = vmul.f32 %v840_v63, %v819_v55 }
 0xdd0   : > { %844 = vrot.lane.b32.xlu1 %v842_v0, %s1514_s29 }
 0xdd8   : > { %907 = vrot.lane.b32.xlu1 %v858_v1, %s1514_s29 }
 0xe42   : > { %v845_v2 = vpop.permute.xlu1 %844 }
 0xe43   : > { %847 = vst.msk [vmem:[#allocation3] sm:$0x3] %vm343_vm0, %v845_v2 }
 0xe44   : > { %854 = vst.msk [vmem:[%s853_s18] sm:$0x3] %vm343_vm0, %v845_v2 }
 0xe4a   : > { %v857_v3 = vld [vmem:[#allocation3] sm:$0x3]  ;;  %v908_v23 = vpop.permute.xlu1 %907 }
 0xe4b   : > { %1243 = vmatmul.msk.f32.vlgmr.msrb.gmra.mxu0 %vm358_vm2, %v857_v3 }
 0xec8   : > { %v882_v5 = vpop.f32.mrf.mxu0 }
 0xec9   : > { %v885_v6 = vadd.f32 %v882_v5, %v861_v4 }
 0xecb   : > { %1363 = vtanh.f32 %v885_v6  ;;  %v1244_v8 = vmul.f32 -1.442695, %v885_v6 }
 0xecd   : > { %1365 = vpow2.f32 %v1244_v8 }
 0xed1   : > { %v1364_v7 = vpop.eup %1363 }
 0xed2   : > { %912 = vrot.lane.b32.xlu0 %v1364_v7, %s1513_s14 }
 0xed3   : > { %v1366_v9 = vpop.eup %1365 }
 0xed4   : > { %v889_v10 = vadd.f32 1.0, %v1366_v9 }
 0xed6   : > { %1367 = vrcp.f32 %v889_v10  ;;  %v901_v16 = vand.u32 2147483648, %v889_v10  ;;  %vm895_vm14 = vweird.f32 %v889_v10  ;;  %v899_v17 = vand.u32 2147483647, %v889_v10 }
 0xed8   : > { %v902_v19 = vor.u32 1.1754944e-38, %v901_v16  ;;  %vm900_vm1 = vcmp.eq.f32.partialorder %v899_v17, 8.507059e+37 }
 0xedc   : > { %v1368_v11 = vpop.eup %1367 }
 0xedd   : > { %v891_v12 = vmul.f32 %v1368_v11, %v889_v10  ;;  %vm896_vm13 = vweird.f32 %v1368_v11 }
 0xede   : > { %vm897_vm15 = vmor %vm895_vm14, %vm896_vm13 }
 0xedf   : > { %v892_v13 = vsub.f32 1.0, %v891_v12 }
 0xee1   : > { %v893_v14 = vmul.f32 %v1368_v11, %v892_v13 }
 0xee3   : > { %v894_v15 = vadd.f32 %v1368_v11, %v893_v14 }
 0xee5   : > { %v898_v18 = vsel %vm897_vm15, %v1368_v11, %v894_v15 }
 0xee6   : > { %v903_v21 = vsel %vm900_vm1, %v902_v19, %v898_v18 }
 0xee7   : > { %v910_v24 = vmul.f32 %v908_v23, %v903_v21 }
 0xf44   : > { %v913_v20 = vpop.permute.xlu0 %912 }
 0xf45   : > { %v915_v22 = vmul.f32 %v913_v20, %v903_v21 }
 0xf47   : > { %917 = vrot.lane.b32.xlu2 %v915_v22, %s1514_s29 }
 0xfa1   : > { %v918_v25 = vpop.permute.xlu2 %917 }
 0xfa2   : > { %v920_v26 = vadd.f32 %v918_v25, %v910_v24 }
 0xfa4   : > { %1369 = vtanh.f32 %v920_v26  ;;  %933 = vrot.lane.b32.xlu2 %v920_v26, %s1515_s21 }
 0xfaa   : > { %v1370_v27 = vpop.eup %1369 }
 0xfab   : > { %923 = vrot.lane.b32.xlu0 %v1370_v27, %s1513_s14 }
 0xffe   : > { %v934_v28 = vpop.permute.xlu2 %933 }
 0xfff   : > { %936 = vst.msk [vmem:[#allocation4] sm:$0x3] %vm343_vm0, %v934_v28 }
0x1006   : > { %v942_v31 = vld [vmem:[#allocation4] sm:$0x3] }
0x101d   : > { %v924_v29 = vpop.permute.xlu0 %923 }
0x101e   : > { %v926_v30 = vmul.f32 %v924_v29, %v903_v21 }
0x1020   : > { %928 = vrot.lane.b32.xlu1 %v926_v30, %s1514_s29 }
0x1028   : > { %991 = vrot.lane.b32.xlu1 %v942_v31, %s1514_s29 }
0x1092   : > { %v929_v32 = vpop.permute.xlu1 %928 }
0x1093   : > { %931 = vst.msk [vmem:[#allocation3] sm:$0x3] %vm343_vm0, %v929_v32 }
0x1094   : > { %938 = vst.msk [vmem:[%s937_s30] sm:$0x3] %vm343_vm0, %v929_v32 }
0x109a   : > { %v941_v33 = vld [vmem:[#allocation3] sm:$0x3]  ;;  %v992_v53 = vpop.permute.xlu1 %991 }
0x109b   : > { %1246 = vmatmul.msk.f32.vlgmr.msra.gmra.mxu1 %vm358_vm2, %v941_v33 }
0x1118   : > { %v966_v35 = vpop.f32.mrf.mxu1 }
0x1119   : > { %v969_v36 = vadd.f32 %v966_v35, %v945_v34 }
0x111b   : > { %1371 = vtanh.f32 %v969_v36  ;;  %v1247_v38 = vmul.f32 -1.442695, %v969_v36 }
0x111d   : > { %1373 = vpow2.f32 %v1247_v38 }
0x1121   : > { %v1372_v37 = vpop.eup %1371 }
0x1122   : > { %996 = vrot.lane.b32.xlu0 %v1372_v37, %s1513_s14 }
0x1123   : > { %v1374_v39 = vpop.eup %1373 }
0x1124   : > { %v973_v40 = vadd.f32 1.0, %v1374_v39 }
0x1126   : > { %1375 = vrcp.f32 %v973_v40  ;;  %v985_v46 = vand.u32 2147483648, %v973_v40  ;;  %vm979_vm3 = vweird.f32 %v973_v40  ;;  %v983_v47 = vand.u32 2147483647, %v973_v40 }
0x1128   : > { %v986_v49 = vor.u32 1.1754944e-38, %v985_v46  ;;  %vm984_vm5 = vcmp.eq.f32.partialorder %v983_v47, 8.507059e+37 }
0x112c   : > { %v1376_v41 = vpop.eup %1375 }
0x112d   : > { %v975_v42 = vmul.f32 %v1376_v41, %v973_v40  ;;  %vm980_vm2 = vweird.f32 %v1376_v41 }
0x112e   : > { %vm981_vm4 = vmor %vm979_vm3, %vm980_vm2 }
0x112f   : > { %v976_v43 = vsub.f32 1.0, %v975_v42 }
0x1131   : > { %v977_v44 = vmul.f32 %v1376_v41, %v976_v43 }
0x1133   : > { %v978_v45 = vadd.f32 %v1376_v41, %v977_v44 }
0x1135   : > { %v982_v48 = vsel %vm981_vm4, %v1376_v41, %v978_v45 }
0x1136   : > { %v987_v51 = vsel %vm984_vm5, %v986_v49, %v982_v48 }
0x1137   : > { %v994_v54 = vmul.f32 %v992_v53, %v987_v51 }
0x1194   : > { %v997_v50 = vpop.permute.xlu0 %996 }
0x1195   : > { %v999_v52 = vmul.f32 %v997_v50, %v987_v51 }
0x1197   : > { %1001 = vrot.lane.b32.xlu2 %v999_v52, %s1514_s29 }
0x11f1   : > { %v1002_v55 = vpop.permute.xlu2 %1001 }
0x11f2   : > { %v1004_v56 = vadd.f32 %v1002_v55, %v994_v54 }
0x11f4   : > { %1377 = vtanh.f32 %v1004_v56  ;;  %1017 = vrot.lane.b32.xlu2 %v1004_v56, %s1515_s21 }
0x11fa   : > { %v1378_v57 = vpop.eup %1377 }
0x11fb   : > { %1007 = vrot.lane.b32.xlu0 %v1378_v57, %s1513_s14 }
0x124e   : > { %v1018_v58 = vpop.permute.xlu2 %1017 }
0x124f   : > { %1020 = vst.msk [vmem:[#allocation4] sm:$0x3] %vm343_vm0, %v1018_v58 }
0x126d   : > { %v1008_v59 = vpop.permute.xlu0 %1007 }
0x126e   : > { %v1010_v60 = vmul.f32 %v1008_v59, %v987_v51 }
0x1270   : > { %1012 = vrot.lane.b32.xlu1 %v1010_v60, %s1514_s29 }
0x12e2   : > { %v1013_v61 = vpop.permute.xlu1 %1012 }
0x12e3   : > { %1015 = vst.msk [vmem:[#allocation3] sm:$0x3] %vm343_vm0, %v1013_v61 }
0x12e4   : > { %1022 = vst.msk [vmem:[%s1021_s5] sm:$0x3] %vm343_vm0, %v1013_v61 }
0x12e5 PF: > { %p15_p7 = scmp.ge.s32.totalorder %s1562_s19, 4   ;;  %s1868_s15 = smov %s1499_s16 }
0x12e6   : > { %s1869_s16 = smov %s1503_s17  ;;  %s1870_s17 = smov %s1571_s22 }
0x12e7   : > { %s1871_s18 = smov %s1562_s19  ;;  %17 = sbr.rel (!%p15_p7) target bundleno = 4 (0x4), region = 118 }
0x12ec   :  { %1044 = vsyncpa [#allocation6], 1 }
0x12ed   :  { %1046 = vsyncpa [#allocation6 + $0x1], 1 }
0x12ee   :  { %1047 = vsyncpa [#allocation8], 1 }
0x12ef   :  { %1049 = vsyncpa [#allocation8 + $0x1], 1 }

</bundles_post_ra>
